<compile_context>
chip_gen: v6e
topology: v6e:2x2x1
jax: 0.10.0
libtpu: 0.0.40
codegen_flags: <defaults>
</compile_context>

<pallas_src>
import jax
import jax.numpy as jnp
from jax.experimental import pallas as pl
from jax.experimental.pallas import tpu as pltpu

IN_DIM = 2352          # 3 * 28 * 28
K_PAD = 2432           # next multiple of 128 (19 * 128)
H1 = 512
H2 = 256
LANE = 128


def _mlp_kernel(x_ref, w1_ref, b1_ref, w2_ref, b2_ref, w3_ref, b3_ref, o_ref):
    # fc1 + ReLU   (bf16 operands straight from the DMA'd tile, f32 MXU accumulate)
    h1 = jnp.dot(x_ref[...], w1_ref[...], preferred_element_type=jnp.float32)
    h1 = jnp.maximum(h1 + b1_ref[...], 0.0)
    # fc2 + ReLU
    h2 = jnp.dot(h1.astype(jnp.bfloat16), w2_ref[...],
                 preferred_element_type=jnp.float32)
    h2 = jnp.maximum(h2 + b2_ref[...], 0.0)
    # fc3 + ReLU (output dim zero-padded to a 128-lane multiple)
    h3 = jnp.dot(h2.astype(jnp.bfloat16), w3_ref[...],
                 preferred_element_type=jnp.float32)
    o_ref[...] = jnp.maximum(h3 + b3_ref[...], 0.0).astype(o_ref.dtype)


def prepare_params(params):
    """One-time preprocessing: transpose (out,in)->(in,out), cast weights to bf16,
    zero-pad fc1's K dim to 2432 and fc3's output dim to a multiple of 128 lanes."""
    out_dim = params["fc3_w"].shape[0]
    out_pad = ((out_dim + LANE - 1) // LANE) * LANE
    w1t = jnp.pad(params["fc1_w"].T.astype(jnp.bfloat16),
                  ((0, K_PAD - IN_DIM), (0, 0)))               # (2432, 512)
    w3t = jnp.pad(params["fc3_w"].T.astype(jnp.bfloat16),
                  ((0, 0), (0, out_pad - out_dim)))            # (256, out_pad)
    b3 = jnp.pad(params["fc3_b"].astype(jnp.float32), (0, out_pad - out_dim))
    return {
        "w1t": w1t,
        "b1": params["fc1_b"].astype(jnp.float32).reshape(1, H1),
        "w2t": params["fc2_w"].T.astype(jnp.bfloat16),          # (512, 256)
        "b2": params["fc2_b"].astype(jnp.float32).reshape(1, H2),
        "w3t": w3t,
        "b3": b3.reshape(1, out_pad),
        "out_dim": out_dim,
    }


def _choose_tm(B, tm):
    """Tile size: tiny batches get a single tile (weight-DMA-bound regime);
    once B >= 64, force >= 2 tiles so the parallel batch axis can shard across
    v7x's two TensorCores, capped at `tm` and rounded up to a sublane multiple."""
    if B <= 64:
        return B
    half = ((-(-B // 2)) + 7) // 8 * 8        # round_up(cdiv(B, 2), 8)
    return min(tm, max(8, half))


def discrete_encoder_forward(x, prep, *, tm=512):
    """x: (B, 3, 28, 28) or (B, 2352), any float dtype.
    Returns (B, latent*categorical) float32."""
    x2d = x.reshape(-1, IN_DIM)
    if x2d.dtype != jnp.bfloat16:
        # Net-neutral wrapper cast if x arrives in f32; upstream producers should
        # hand us bf16 directly to fully realize the halved x DMA stream.
        x2d = x2d.astype(jnp.bfloat16)
    x2d = jnp.pad(x2d, ((0, 0), (0, K_PAD - IN_DIM)))          # (B, 2432) bf16
    B = x2d.shape[0]
    out_dim = prep["out_dim"]
    out_pad = prep["w3t"].shape[1]

    tm = _choose_tm(B, tm)
    grid = (pl.cdiv(B, tm),)

    flops = int(2 * B * (K_PAD * H1 + H1 * H2 + H2 * out_pad))
    bytes_accessed = int(
        x2d.size * 2                                             # bf16 x stream
        + prep["w1t"].size * 2 + prep["w2t"].size * 2            # bf16 weights
        + prep["w3t"].size * 2                                   # (once per TC on v7x)
        + (H1 + H2 + out_pad) * 4                                # f32 biases
        + B * out_pad * 4)                                       # f32 output

    const = lambda i: (0, 0)

    out_padded = pl.pallas_call(
        _mlp_kernel,
        out_shape=jax.ShapeDtypeStruct((B, out_pad), jnp.float32),
        grid=grid,
        in_specs=[
            pl.BlockSpec((tm, K_PAD), lambda i: (i, 0)),    # x tile (pipelined, bf16)
            pl.BlockSpec((K_PAD, H1), const),               # weights: VMEM-resident
            pl.BlockSpec((1, H1), const),
            pl.BlockSpec((H1, H2), const),
            pl.BlockSpec((1, H2), const),
            pl.BlockSpec((H2, out_pad), const),
            pl.BlockSpec((1, out_pad), const),
        ],
        out_specs=pl.BlockSpec((tm, out_pad), lambda i: (i, 0)),
        compiler_params=pltpu.CompilerParams(
            dimension_semantics=("parallel",),   # batch tiles shard across TCs on v7x
            vmem_limit_bytes=32 << 20,           # safe on 64 MiB v7x and 128 MiB v5e/v6e
        ),
        cost_estimate=pl.CostEstimate(
            flops=flops, transcendentals=0, bytes_accessed=bytes_accessed),
    )(x2d, prep["w1t"], prep["b1"], prep["w2t"], prep["b2"],
      prep["w3t"], prep["b3"])

    return out_padded[:, :out_dim]


def init_params(key, latent_dim, categorical_dim):
    """Deterministic synthetic init (PyTorch Linear shapes: (out, in) weights)."""
    out_dim = latent_dim * categorical_dim
    shapes = {
        "fc1_w": (H1, IN_DIM), "fc1_b": (H1,),
        "fc2_w": (H2, H1), "fc2_b": (H2,),
        "fc3_w": (out_dim, H2), "fc3_b": (out_dim,),
    }
    params = {}
    keys = jax.random.split(key, len(shapes))
    for k, (name, shp) in zip(keys, shapes.items()):
        fan_in = shp[-1] if len(shp) > 1 else shp[0]
        bound = 1.0 / jnp.sqrt(fan_in)
        params[name] = jax.random.uniform(
            k, shp, dtype=jnp.float32, minval=-bound, maxval=bound)
    return params


def _reference_forward(x, params):
    """Precision-matched reference: bf16-rounded operands, f32 accumulate."""
    f32 = jnp.float32
    bf = lambda a: a.astype(jnp.bfloat16).astype(f32)
    x2d = bf(x.reshape(-1, IN_DIM).astype(f32))
    w1 = bf(params["fc1_w"].T)
    w2 = bf(params["fc2_w"].T)
    w3 = bf(params["fc3_w"].T)
    h1 = jnp.maximum(x2d @ w1 + params["fc1_b"], 0.0)
    h2 = jnp.maximum(bf(h1) @ w2 + params["fc2_b"], 0.0)
    return jnp.maximum(bf(h2) @ w3 + params["fc3_b"], 0.0)


if __name__ == "__main__":
    latent_dim, categorical_dim = 8, 4
    batch = 4

    key = jax.random.PRNGKey(0)
    k_x, k_p = jax.random.split(key)

    # NCHW input consistent with 2352 = 3 * 28 * 28
    x = jax.random.normal(k_x, (batch, 3, 28, 28), dtype=jnp.float32)
    params = init_params(k_p, latent_dim, categorical_dim)
    prep = prepare_params(params)   # one-time: transpose + bf16 cast + K/lane pad

    out = discrete_encoder_forward(x, prep)
    out = jax.block_until_ready(out)

    ref = _reference_forward(x, params)
    assert out.shape == (batch, latent_dim * categorical_dim), out.shape
    assert jnp.allclose(out, ref, atol=2e-3, rtol=2e-3), \
        float(jnp.max(jnp.abs(out - ref)))

    print("KERNEL_OK")
</pallas_src>

<mosaic_0001>
module attributes {stable_mosaic.version = 11 : i64} {
  func.func @_mlp_kernel(%arg0: i32, %arg1: memref<4x2432xbf16, #tpu.memory_space<vmem>>, %arg2: memref<2432x512xbf16, #tpu.memory_space<vmem>>, %arg3: memref<1x512xf32, #tpu.memory_space<vmem>>, %arg4: memref<512x256xbf16, #tpu.memory_space<vmem>>, %arg5: memref<1x256xf32, #tpu.memory_space<vmem>>, %arg6: memref<256x128xbf16, #tpu.memory_space<vmem>>, %arg7: memref<1x128xf32, #tpu.memory_space<vmem>>, %arg8: memref<4x128xf32, #tpu.memory_space<vmem>>) attributes {dimension_semantics = [#tpu.dimension_semantics<parallel>], iteration_bounds = array<i64: 1>, scalar_prefetch = 0 : i64, scratch_operands = 0 : i64, tpu.core_type = #tpu.core_type<tc>, window_params = [{transform_indices = @transform_0, window_bounds = array<i64: 4, 2432>}, {pipeline_mode = #tpu.pipeline_mode<synchronous>, transform_indices = @transform_1, window_bounds = array<i64: 2432, 512>}, {pipeline_mode = #tpu.pipeline_mode<synchronous>, transform_indices = @transform_2, window_bounds = array<i64: 1, 512>}, {pipeline_mode = #tpu.pipeline_mode<synchronous>, transform_indices = @transform_3, window_bounds = array<i64: 512, 256>}, {pipeline_mode = #tpu.pipeline_mode<synchronous>, transform_indices = @transform_4, window_bounds = array<i64: 1, 256>}, {pipeline_mode = #tpu.pipeline_mode<synchronous>, transform_indices = @transform_5, window_bounds = array<i64: 256, 128>}, {pipeline_mode = #tpu.pipeline_mode<synchronous>, transform_indices = @transform_6, window_bounds = array<i64: 1, 128>}, {transform_indices = @transform_7, window_bounds = array<i64: 4, 128>}]} {
    %c0 = arith.constant 0 : index
    %c0_0 = arith.constant 0 : index
    %0 = vector.load %arg1[%c0, %c0_0] : memref<4x2432xbf16, #tpu.memory_space<vmem>>, vector<4x2432xbf16>
    %c0_1 = arith.constant 0 : index
    %c0_2 = arith.constant 0 : index
    %1 = vector.load %arg2[%c0_1, %c0_2] : memref<2432x512xbf16, #tpu.memory_space<vmem>>, vector<2432x512xbf16>
    %cst = arith.constant dense<0.000000e+00> : vector<4x512xf32>
    %2 = tpu.matmul %0, %1, %cst {dimension_numbers = #tpu.dot_dimension_numbers<[1], [0], [0], [1], [0, 0, 1, 1], [], []>} : vector<4x2432xbf16>, vector<2432x512xbf16>, vector<4x512xf32> -> vector<4x512xf32>
    %c0_3 = arith.constant 0 : index
    %c0_4 = arith.constant 0 : index
    %3 = vector.load %arg3[%c0_3, %c0_4] : memref<1x512xf32, #tpu.memory_space<vmem>>, vector<1x512xf32>
    %4 = vector.broadcast %3 : vector<1x512xf32> to vector<4x512xf32>
    %5 = arith.addf %2, %4 : vector<4x512xf32>
    %cst_5 = arith.constant 0.000000e+00 : f32
    %6 = vector.broadcast %cst_5 : f32 to vector<4x512xf32>
    %7 = arith.maximumf %5, %6 : vector<4x512xf32>
    %8 = arith.truncf %7 : vector<4x512xf32> to vector<4x512xbf16>
    %c0_6 = arith.constant 0 : index
    %c0_7 = arith.constant 0 : index
    %9 = vector.load %arg4[%c0_6, %c0_7] : memref<512x256xbf16, #tpu.memory_space<vmem>>, vector<512x256xbf16>
    %cst_8 = arith.constant dense<0.000000e+00> : vector<4x256xf32>
    %10 = tpu.matmul %8, %9, %cst_8 {dimension_numbers = #tpu.dot_dimension_numbers<[1], [0], [0], [1], [0, 0, 1, 1], [], []>} : vector<4x512xbf16>, vector<512x256xbf16>, vector<4x256xf32> -> vector<4x256xf32>
    %c0_9 = arith.constant 0 : index
    %c0_10 = arith.constant 0 : index
    %11 = vector.load %arg5[%c0_9, %c0_10] : memref<1x256xf32, #tpu.memory_space<vmem>>, vector<1x256xf32>
    %12 = vector.broadcast %11 : vector<1x256xf32> to vector<4x256xf32>
    %13 = arith.addf %10, %12 : vector<4x256xf32>
    %cst_11 = arith.constant 0.000000e+00 : f32
    %14 = vector.broadcast %cst_11 : f32 to vector<4x256xf32>
    %15 = arith.maximumf %13, %14 : vector<4x256xf32>
    %16 = arith.truncf %15 : vector<4x256xf32> to vector<4x256xbf16>
    %c0_12 = arith.constant 0 : index
    %c0_13 = arith.constant 0 : index
    %17 = vector.load %arg6[%c0_12, %c0_13] : memref<256x128xbf16, #tpu.memory_space<vmem>>, vector<256x128xbf16>
    %cst_14 = arith.constant dense<0.000000e+00> : vector<4x128xf32>
    %18 = tpu.matmul %16, %17, %cst_14 {dimension_numbers = #tpu.dot_dimension_numbers<[1], [0], [0], [1], [0, 0, 1, 1], [], []>} : vector<4x256xbf16>, vector<256x128xbf16>, vector<4x128xf32> -> vector<4x128xf32>
    %c0_15 = arith.constant 0 : index
    %c0_16 = arith.constant 0 : index
    %19 = vector.load %arg7[%c0_15, %c0_16] : memref<1x128xf32, #tpu.memory_space<vmem>>, vector<1x128xf32>
    %20 = vector.broadcast %19 : vector<1x128xf32> to vector<4x128xf32>
    %21 = arith.addf %18, %20 : vector<4x128xf32>
    %cst_17 = arith.constant 0.000000e+00 : f32
    %22 = vector.broadcast %cst_17 : f32 to vector<4x128xf32>
    %23 = arith.maximumf %21, %22 : vector<4x128xf32>
    %c0_18 = arith.constant 0 : index
    %c0_19 = arith.constant 0 : index
    %24 = vector.load %arg8[%c0_18, %c0_19] : memref<4x128xf32, #tpu.memory_space<vmem>>, vector<4x128xf32>
    tpu.vector_store %arg8[%c0_18, %c0_19], %23 {strides = array<i32>} : memref<4x128xf32, #tpu.memory_space<vmem>>, vector<4x128xf32>,
    return
  }
  func.func @transform_0(%arg0: i32) -> (i32, i32) {
    %c0_i32 = arith.constant 0 : i32
    %c0_i32_0 = arith.constant 0 : i32
    return %arg0, %c0_i32 : i32, i32
  }
  func.func @transform_1(%arg0: i32) -> (i32, i32) {
    %c0_i32 = arith.constant 0 : i32
    %c0_i32_0 = arith.constant 0 : i32
    %c0_i32_1 = arith.constant 0 : i32
    return %c0_i32, %c0_i32_0 : i32, i32
  }
  func.func @transform_2(%arg0: i32) -> (i32, i32) {
    %c0_i32 = arith.constant 0 : i32
    %c0_i32_0 = arith.constant 0 : i32
    %c0_i32_1 = arith.constant 0 : i32
    return %c0_i32, %c0_i32_0 : i32, i32
  }
  func.func @transform_3(%arg0: i32) -> (i32, i32) {
    %c0_i32 = arith.constant 0 : i32
    %c0_i32_0 = arith.constant 0 : i32
    %c0_i32_1 = arith.constant 0 : i32
    return %c0_i32, %c0_i32_0 : i32, i32
  }
  func.func @transform_4(%arg0: i32) -> (i32, i32) {
    %c0_i32 = arith.constant 0 : i32
    %c0_i32_0 = arith.constant 0 : i32
    %c0_i32_1 = arith.constant 0 : i32
    return %c0_i32, %c0_i32_0 : i32, i32
  }
  func.func @transform_5(%arg0: i32) -> (i32, i32) {
    %c0_i32 = arith.constant 0 : i32
    %c0_i32_0 = arith.constant 0 : i32
    %c0_i32_1 = arith.constant 0 : i32
    return %c0_i32, %c0_i32_0 : i32, i32
  }
  func.func @transform_6(%arg0: i32) -> (i32, i32) {
    %c0_i32 = arith.constant 0 : i32
    %c0_i32_0 = arith.constant 0 : i32
    %c0_i32_1 = arith.constant 0 : i32
    return %c0_i32, %c0_i32_0 : i32, i32
  }
  func.func @transform_7(%arg0: i32) -> (i32, i32) {
    %c0_i32 = arith.constant 0 : i32
    %c0_i32_0 = arith.constant 0 : i32
    return %arg0, %c0_i32 : i32, i32
  }
}

</mosaic_0001>

<bundles_post_ra>
// kernel: tpu_custom_call.1
= control target key start
LH: loop header
LB: loop body
LE: loop exit
PB: predicated region body
PF: predicated region fallthrough
CT: control target
= control target key end

     0   :  { %12 = vsyncpa [#allocation3], 0  ;;  %s7595_s0 = inlined_call_operand.hbm [shape: bf16[4,2432], index: 0, kind: input, shape index: {}]   ;;  %s7596_s1 = inlined_call_operand.hbm [shape: bf16[2432,512], index: 1, kind: input, shape index: {}]   ;;  %s7597_s2 = inlined_call_operand.hbm [shape: f32[1,512], index: 2, kind: input, shape index: {}]   ;;  %s7598_s3 = inlined_call_operand.hbm [shape: bf16[512,256], index: 3, kind: input, shape index: {}]   ;;  %s7599_s4 = inlined_call_operand.hbm [shape: f32[1,256], index: 4, kind: input, shape index: {}]   ;;  %s7600_s5 = inlined_call_operand.hbm [shape: bf16[256,128], index: 5, kind: input, shape index: {}]   ;;  %s7601_s6 = inlined_call_operand.hbm [shape: f32[1,128], index: 6, kind: input, shape index: {}]   ;;  %s7602_s7 = inlined_call_operand.hbm [shape: f32[4,128], index: 7, kind: output, shape index: {}]  }
   0x1   :  { %13 = vsyncpa [#allocation6], 0 }
   0x2   :  { %14 = vsyncpa [#allocation9], 0 }
   0x3   :  { %15 = vsyncpa [#allocation12], 0 }
   0x4   :  { %16 = vsyncpa [#allocation4], 0  ;;  %s7330_s24 = smov [#allocation5]  }
   0x5   :  { %s32_s25 = sshll.u32 %s7330_s24, 4  ;;  %s33_s25 = int_to_ptr.vmem [resolvable:$true] %s32_s25 }
   0x6   :  { %s7168_s26 = scalar_lea.vmem %s33_s25, 77824  ;;  %p7173_p1 = scmp.lt.s32.totalorder %s33_s25, %s33_s25 }
   0x7   :  { %p7169_p0 = scmp.ne.s32.totalorder %s33_s25, %s7168_s26  ;;  %p7174_p2 = scmp.lt.s32.totalorder %s7168_s26, %s7168_s26 }
   0x9   :  { %p7175_p3 = por %p7174_p2, %p7173_p1 }
   0xb   :  { %p7176_p4 = pnand %p7175_p3, %p7169_p0 }
   0xd   :  { %7179 = shalt.err (!%p7176_p4)
}
   0xe   :  { %s7331_s27 = smov 256   ;;  %s7332_s28 = smov 16  }
   0xf   :  { %38 = dma.hbm_to_vmem [thread:$0]  %s7596_s1, 77824, %s33_s25, [#allocation6], %s7331_s27, %s7331_s27, %s7332_s28  }
  0x10   :  { %s7333_s8 = smov [#allocation8]  }
  0x11   :  { %s54_s9 = sshll.u32 %s7333_s8, 4  ;;  %s55_s9 = int_to_ptr.vmem [resolvable:$true] %s54_s9 }
  0x12   :  { %s7188_s10 = scalar_lea.vmem %s55_s9, 8192  ;;  %p7193_p6 = scmp.lt.s32.totalorder %s55_s9, %s55_s9 }
  0x13   :  { %p7189_p5 = scmp.ne.s32.totalorder %s55_s9, %s7188_s10  ;;  %p7194_p7 = scmp.lt.s32.totalorder %s7188_s10, %s7188_s10 }
  0x15   :  { %p7195_p8 = por %p7194_p7, %p7193_p6 }
  0x17   :  { %p7196_p9 = pnand %p7195_p8, %p7189_p5 }
  0x19   :  { %7199 = shalt.err (!%p7196_p9)
}
  0x1a   :  { %s7334_s11 = smov 128   ;;  %s7335_s12 = smov 8  }
  0x1b   :  { %60 = dma.hbm_to_vmem [thread:$0]  %s7598_s3, 8192, %s55_s9, [#allocation9], %s7334_s11, %s7334_s11, %s7335_s12  }
  0x1c   :  { %s7336_s15 = smov [#allocation11]  }
  0x1d   :  { %s76_s16 = sshll.u32 %s7336_s15, 4  ;;  %s77_s16 = int_to_ptr.vmem [resolvable:$true] %s76_s16 }
  0x1e   :  { %s7208_s1 = scalar_lea.vmem %s77_s16, 2048  ;;  %p7213_p11 = scmp.lt.s32.totalorder %s77_s16, %s77_s16 }
  0x1f   :  { %p7209_p10 = scmp.ne.s32.totalorder %s77_s16, %s7208_s1  ;;  %p7214_p12 = scmp.lt.s32.totalorder %s7208_s1, %s7208_s1 }
  0x21   :  { %p7215_p13 = por %p7214_p12, %p7213_p11 }
  0x23   :  { %p7216_p0 = pnand %p7215_p13, %p7209_p10 }
  0x25   :  { %7219 = shalt.err (!%p7216_p0)
}
  0x26   :  { %s7337_s17 = smov 64   ;;  %s7338_s18 = smov 4  }
  0x27   :  { %82 = dma.hbm_to_vmem [thread:$0]  %s7600_s5, 2048, %s77_s16, [#allocation12], %s7337_s17, %s7337_s17, %s7338_s18  }
  0x28   :  { %s7339_s21 = smov [#allocation2]   ;;  %s7340_s3 = smov [#allocation7]  }
  0x29   :  { %s23_s22 = sshll.u32 %s7339_s21, 4  ;;  %s45_s23 = sshll.u32 %s7340_s3, 4  ;;  %s24_s22 = int_to_ptr.vmem [resolvable:$true] %s23_s22  ;;  %s46_s23 = int_to_ptr.vmem [resolvable:$true] %s45_s23 }
  0x2a   :  { %s7228_s24 = scalar_lea.vmem %s24_s22, 608  ;;  %p7233_p2 = scmp.lt.s32.totalorder %s24_s22, %s24_s22 }
  0x2b   :  { %p7229_p1 = scmp.ne.s32.totalorder %s24_s22, %s7228_s24  ;;  %p7234_p3 = scmp.lt.s32.totalorder %s7228_s24, %s7228_s24 }
  0x2d   :  { %p7235_p4 = por %p7234_p3, %p7233_p2 }
  0x2f   :  { %p7236_p5 = pnand %p7235_p4, %p7229_p1 }
  0x31   :  { %7239 = shalt.err (!%p7236_p5)
}
  0x32   :  { %26 = dma.hbm_to_vmem [thread:$0]  %s7595_s0, 608, %s24_s22, [#allocation3]  }
  0x33   :  { %s7248_s27 = scalar_lea.vmem %s46_s23, 64  ;;  %p7253_p7 = scmp.lt.s32.totalorder %s46_s23, %s46_s23 }
  0x34   :  { %p7249_p6 = scmp.ne.s32.totalorder %s46_s23, %s7248_s27  ;;  %p7254_p8 = scmp.lt.s32.totalorder %s7248_s27, %s7248_s27 }
  0x36   :  { %p7255_p9 = por %p7254_p8, %p7253_p7 }
  0x38   :  { %p7256_p10 = pnand %p7255_p9, %p7249_p6 }
  0x3a   :  { %7259 = shalt.err (!%p7256_p10)
}
  0x3b   :  { %48 = dma.hbm_to_vmem [thread:$0]  %s7597_s2, 64, %s46_s23, [#allocation6]  }
  0x3c   :  { %s7341_s29 = smov [#allocation10]   ;;  %s7342_s8 = smov [#allocation13]  }
  0x3d   :  { %s67_s30 = sshll.u32 %s7341_s29, 4  ;;  %s89_s9 = sshll.u32 %s7342_s8, 4  ;;  %s68_s30 = int_to_ptr.vmem [resolvable:$true] %s67_s30  ;;  %s90_s9 = int_to_ptr.vmem [resolvable:$true] %s89_s9 }
  0x3e   :  { %s7268_s10 = scalar_lea.vmem %s68_s30, 32  ;;  %p7273_p12 = scmp.lt.s32.totalorder %s68_s30, %s68_s30 }
  0x3f   :  { %p7269_p11 = scmp.ne.s32.totalorder %s68_s30, %s7268_s10  ;;  %p7274_p13 = scmp.lt.s32.totalorder %s7268_s10, %s7268_s10 }
  0x41   :  { %p7275_p0 = por %p7274_p13, %p7273_p12 }
  0x43   :  { %p7276_p1 = pnand %p7275_p0, %p7269_p11 }
  0x45   :  { %7279 = shalt.err (!%p7276_p1)
}
  0x46   :  { %70 = dma.hbm_to_vmem [thread:$0]  %s7599_s4, 32, %s68_s30, [#allocation9]  }
  0x47   :  { %s7288_s12 = scalar_lea.vmem %s90_s9, 16  ;;  %s7292_s2 = scalar_lea.vmem %s90_s9, 32 }
  0x48   :  { %p7289_p2 = scmp.ne.s32.totalorder %s90_s9, %s7288_s12  ;;  %p7293_p3 = scmp.lt.s32.totalorder %s90_s9, %s90_s9 }
  0x49   :  { %p7294_p4 = scmp.lt.s32.totalorder %s7292_s2, %s7288_s12 }
  0x4b   :  { %p7295_p5 = por %p7294_p4, %p7293_p3 }
  0x4d   :  { %p7296_p6 = pnand %p7295_p5, %p7289_p2 }
  0x4f   :  { %7299 = shalt.err (!%p7296_p6)
}
  0x50   :  { %92 = dma.hbm_to_vmem [thread:$0]  %s7601_s6, 16, %s90_s9, [#allocation12]  }
  0x51   :  { %7320 = dma.done.wait [#allocation3], 608  }
  0x52   :  { %7321 = vsyncadd [#allocation3], 4294966688 }
  0x53   :  { %7322 = dma.done.wait [#allocation6], 77888  }
  0x54   :  { %7323 = vsyncadd [#allocation6], 4294889408 }
  0x55   :  { %7324 = dma.done.wait [#allocation9], 8224  }
  0x56   :  { %7325 = vsyncadd [#allocation9], 4294959072 }
  0x57   :  { %7326 = dma.done.wait [#allocation12], 2064  }
  0x58   :  { %7327 = vsyncadd [#allocation12], 4294965232  ;;  %v6130_v0 = vld [vmem:[#allocation5 + $0xe4] ss:$16 sps:$4 sm:$0xff]   ;;  %v6134_v2 = vld [vmem:[#allocation5 + $0xe0] ss:$16 sps:$4 sm:$0xff]   ;;  %v730_v36 = vlaneseq }
  0x59   :  { %v6132_v1 = vld [vmem:[#allocation5 + $0x2e4] ss:$16 sps:$4 sm:$0xff]   ;;  %3898 = vmatprep.subr.bf16.mxu0 %v6130_v0  ;;  %v6135_v3 = vld [vmem:[#allocation5 + $0x2e0] ss:$16 sps:$4 sm:$0xff]   ;;  %v7343_v37 = vmov 1983009808  }
  0x5a   :  { %3939 = vmatprep.subr.bf16.mxu1 %v6132_v1  ;;  %v6136_v4 = vld [vmem:[#allocation5 + $0xc4] ss:$16 sps:$4 sm:$0xff]   ;;  %3899 = vmatpush1.bf16.msra.mxu0 %v6134_v2  ;;  %v6140_v6 = vld [vmem:[#allocation5 + $0xc0] ss:$16 sps:$4 sm:$0xff]   ;;  %v757_v38 = vunpack.c.l.s4 %v7343_v37  ;;  %v7407_v42 = vshrl.u32 %v730_v36, 7  ;;  %s7345_s4 = smov [#allocation14]  }
  0x5b   :  { %3940 = vmatpush1.bf16.msra.mxu1 %v6135_v3  ;;  %v6138_v5 = vld [vmem:[#allocation5 + $0x2c4] ss:$16 sps:$4 sm:$0xff]   ;;  %3900 = vmatprep.subr.bf16.mxu0 %v6136_v4  ;;  %v6141_v7 = vld [vmem:[#allocation5 + $0x2c0] ss:$16 sps:$4 sm:$0xff]   ;;  %s5391_s6 = sshll.u32 %s7345_s4, 4  ;;  %s5392_s6 = int_to_ptr.vmem [resolvable:$true] %s5391_s6 }
  0x5c   :  { %3941 = vmatprep.subr.bf16.mxu1 %v6138_v5  ;;  %v6142_v8 = vld [vmem:[#allocation5 + $0xa4] ss:$16 sps:$4 sm:$0xff]   ;;  %v6146_v10 = vld [vmem:[#allocation5 + $0xa0] ss:$16 sps:$4 sm:$0xff]   ;;  %v758_v43 = vunpack.c.0.s8 %v757_v38  ;;  %s7300_s15 = scalar_lea.vmem %s5392_s6, 64  ;;  %p7305_p8 = scmp.lt.s32.totalorder %s5392_s6, %s5392_s6 }
  0x5d   :  { %v6144_v9 = vld [vmem:[#allocation5 + $0x2a4] ss:$16 sps:$4 sm:$0xff]   ;;  %v6147_v11 = vld [vmem:[#allocation5 + $0x2a0] ss:$16 sps:$4 sm:$0xff]   ;;  %p7301_p7 = scmp.ne.s32.totalorder %s5392_s6, %s7300_s15  ;;  %p7306_p9 = scmp.lt.s32.totalorder %s7300_s15, %s7300_s15 }
  0x5e   :  { %3901 = vmatpush1.bf16.msra.mxu0 %v6140_v6  ;;  %v6148_v12 = vld [vmem:[#allocation5 + $0x84] ss:$16 sps:$4 sm:$0xff]   ;;  %v6152_v14 = vld [vmem:[#allocation5 + $0x80] ss:$16 sps:$4 sm:$0xff]   ;;  %v7410_v49 = vsub.s32 %v758_v43, %v7407_v42 }
  0x5f   :  { %3942 = vmatpush1.bf16.msra.mxu1 %v6141_v7  ;;  %3902 = vmatprep.subr.bf16.mxu0 %v6142_v8  ;;  %v6150_v13 = vld [vmem:[#allocation5 + $0x284] ss:$16 sps:$4 sm:$0xff]   ;;  %v6153_v15 = vld [vmem:[#allocation5 + $0x280] ss:$16 sps:$4 sm:$0xff]   ;;  %p7307_p10 = por %p7306_p9, %p7305_p8 }
  0x60   :  { %3943 = vmatprep.subr.bf16.mxu1 %v6144_v9  ;;  %v6154_v16 = vld [vmem:[#allocation5 + $0x64] ss:$16 sps:$4 sm:$0xff]   ;;  %v6158_v18 = vld [vmem:[#allocation5 + $0x60] ss:$16 sps:$4 sm:$0xff]  }
  0x61   :  { %v6156_v17 = vld [vmem:[#allocation5 + $0x264] ss:$16 sps:$4 sm:$0xff]   ;;  %v6159_v19 = vld [vmem:[#allocation5 + $0x260] ss:$16 sps:$4 sm:$0xff]   ;;  %p7308_p11 = pnand %p7307_p10, %p7301_p7 }
  0x62   :  { %3903 = vmatpush1.bf16.msra.mxu0 %v6146_v10  ;;  %v6160_v20 = vld [vmem:[#allocation5 + $0x44] ss:$16 sps:$4 sm:$0xff]   ;;  %v6164_v22 = vld [vmem:[#allocation5 + $0x40] ss:$16 sps:$4 sm:$0xff]  }
  0x63   :  { %3944 = vmatpush1.bf16.msra.mxu1 %v6147_v11  ;;  %3904 = vmatprep.subr.bf16.mxu0 %v6148_v12  ;;  %v6162_v21 = vld [vmem:[#allocation5 + $0x244] ss:$16 sps:$4 sm:$0xff]   ;;  %v6165_v23 = vld [vmem:[#allocation5 + $0x240] ss:$16 sps:$4 sm:$0xff]  }
  0x64   :  { %3945 = vmatprep.subr.bf16.mxu1 %v6150_v13  ;;  %v6166_v24 = vld [vmem:[#allocation5 + $0x24] ss:$16 sps:$4 sm:$0xff]   ;;  %v6170_v26 = vld [vmem:[#allocation5 + $0x20] ss:$16 sps:$4 sm:$0xff]  }
  0x65   :  { %v6168_v25 = vld [vmem:[#allocation5 + $0x224] ss:$16 sps:$4 sm:$0xff]   ;;  %v6171_v27 = vld [vmem:[#allocation5 + $0x220] ss:$16 sps:$4 sm:$0xff]  }
  0x66   :  { %3905 = vmatpush1.bf16.msra.mxu0 %v6152_v14  ;;  %v6172_v28 = vld [vmem:[#allocation5 + $0x4] ss:$16 sps:$4 sm:$0xff]   ;;  %v6176_v30 = vld [vmem:[#allocation5] ss:$16 sps:$4 sm:$0xff]  }
  0x67   :  { %3946 = vmatpush1.bf16.msra.mxu1 %v6153_v15  ;;  %3906 = vmatprep.subr.bf16.mxu0 %v6154_v16  ;;  %v6174_v29 = vld [vmem:[#allocation5 + $0x204] ss:$16 sps:$4 sm:$0xff]   ;;  %v6177_v31 = vld [vmem:[#allocation5 + $0x200] ss:$16 sps:$4 sm:$0xff]  }
  0x68   :  { %3947 = vmatprep.subr.bf16.mxu1 %v6156_v17  ;;  %v6178_v32 = vld [vmem:[#allocation5 + $0x1e4] ss:$16 sps:$4 sm:$0xff]   ;;  %v6182_v34 = vld [vmem:[#allocation5 + $0x1e0] ss:$16 sps:$4 sm:$0xff]  }
  0x69   :  { %v6180_v33 = vld [vmem:[#allocation5 + $0x3e4] ss:$16 sps:$4 sm:$0xff]   ;;  %v6183_v35 = vld [vmem:[#allocation5 + $0x3e0] ss:$16 sps:$4 sm:$0xff]  }
  0x6a   :  { %3907 = vmatpush1.bf16.msra.mxu0 %v6158_v18  ;;  %v6184_v39 = vld [vmem:[#allocation5 + $0x1c4] ss:$16 sps:$4 sm:$0xff]   ;;  %v6188_v41 = vld [vmem:[#allocation5 + $0x1c0] ss:$16 sps:$4 sm:$0xff]  }
  0x6b   :  { %3948 = vmatpush1.bf16.msra.mxu1 %v6159_v19  ;;  %3908 = vmatprep.subr.bf16.mxu0 %v6160_v20  ;;  %v6186_v40 = vld [vmem:[#allocation5 + $0x3c4] ss:$16 sps:$4 sm:$0xff]   ;;  %v6189_v44 = vld [vmem:[#allocation5 + $0x3c0] ss:$16 sps:$4 sm:$0xff]  }
  0x6c   :  { %3949 = vmatprep.subr.bf16.mxu1 %v6162_v21  ;;  %v6190_v45 = vld [vmem:[#allocation5 + $0x1a4] ss:$16 sps:$4 sm:$0xff]   ;;  %v6194_v47 = vld [vmem:[#allocation5 + $0x1a0] ss:$16 sps:$4 sm:$0xff]  }
  0x6d   :  { %v6192_v46 = vld [vmem:[#allocation5 + $0x3a4] ss:$16 sps:$4 sm:$0xff]   ;;  %v6195_v48 = vld [vmem:[#allocation5 + $0x3a0] ss:$16 sps:$4 sm:$0xff]  }
  0x6e   :  { %3909 = vmatpush1.bf16.msra.mxu0 %v6164_v22  ;;  %v6196_v50 = vld [vmem:[#allocation5 + $0x184] ss:$16 sps:$4 sm:$0xff]   ;;  %v115_v52 = vld [vmem:[#allocation2] sm:$0xff] }
  0x6f   :  { %3950 = vmatpush1.bf16.msra.mxu1 %v6165_v23  ;;  %3910 = vmatprep.subr.bf16.mxu0 %v6166_v24  ;;  %v6198_v51 = vld [vmem:[#allocation5 + $0x384] ss:$16 sps:$4 sm:$0xff]   ;;  %v6200_v53 = vld [vmem:[#allocation5 + $0x180] ss:$16 sps:$4 sm:$0xff]   ;;  %v7413_v54 = vrot.slane %v115_v52, %v7410_v49  ;;  %v755_v55 = vcombine.high %v115_v52, %v115_v52 }
  0x70   :  { %3951 = vmatprep.subr.bf16.mxu1 %v6168_v25  ;;  %v6201_v56 = vld [vmem:[#allocation5 + $0x380] ss:$16 sps:$4 sm:$0xff]   ;;  %v6202_v57 = vld [vmem:[#allocation5 + $0x164] ss:$16 sps:$4 sm:$0xff]  }
  0x71   :  { %v6204_v58 = vld [vmem:[#allocation5 + $0x364] ss:$16 sps:$4 sm:$0xff]   ;;  %v7417_v59 = vcombine.high %v7413_v54, %v7413_v54  ;;  %v7420_v60 = vrot.slane %v755_v55, %v7410_v49  ;;  %v6206_v61 = vld [vmem:[#allocation5 + $0x160] ss:$16 sps:$4 sm:$0xff]  }
  0x72   :  { %3911 = vmatpush1.bf16.msra.mxu0 %v6170_v26  ;;  %v6207_v63 = vld [vmem:[#allocation5 + $0x360] ss:$16 sps:$4 sm:$0xff]   ;;  %v6208_v0 = vld [vmem:[#allocation5 + $0x144] ss:$16 sps:$4 sm:$0xff]  }
  0x73   :  { %3952 = vmatpush1.bf16.msra.mxu1 %v6171_v27  ;;  %3912 = vmatprep.subr.bf16.mxu0 %v6172_v28  ;;  %v7425_v62 = vcombine.high %v7420_v60, %v7420_v60  ;;  %v6210_v1 = vld [vmem:[#allocation5 + $0x344] ss:$16 sps:$4 sm:$0xff]   ;;  %v6212_v2 = vld [vmem:[#allocation5 + $0x140] ss:$16 sps:$4 sm:$0xff]  }
  0x74   :  { %3953 = vmatprep.subr.bf16.mxu1 %v6174_v29  ;;  %3930 = vmatprep.mubr.bf16.mxu0 %v7417_v59  ;;  %v6213_v3 = vld [vmem:[#allocation5 + $0x340] ss:$16 sps:$4 sm:$0xff]   ;;  %v6214_v4 = vld [vmem:[#allocation5 + $0x124] ss:$16 sps:$4 sm:$0xff]  }
  0x75   :  { %3971 = vmatprep.mubr.bf16.mxu1 %v7425_v62  ;;  %v6216_v5 = vld [vmem:[#allocation5 + $0x324] ss:$16 sps:$4 sm:$0xff]   ;;  %v6218_v6 = vld [vmem:[#allocation5 + $0x120] ss:$16 sps:$4 sm:$0xff]  }
  0x76   :  { %3913 = vmatpush1.bf16.msra.mxu0 %v6176_v30  ;;  %v6219_v7 = vld [vmem:[#allocation5 + $0x320] ss:$16 sps:$4 sm:$0xff]   ;;  %v6220_v8 = vld [vmem:[#allocation5 + $0x104] ss:$16 sps:$4 sm:$0xff]  }
  0x77   :  { %3954 = vmatpush1.bf16.msra.mxu1 %v6177_v31  ;;  %3914 = vmatprep.subr.bf16.mxu0 %v6178_v32  ;;  %v6222_v9 = vld [vmem:[#allocation5 + $0x304] ss:$16 sps:$4 sm:$0xff]   ;;  %v6224_v10 = vld [vmem:[#allocation5 + $0x100] ss:$16 sps:$4 sm:$0xff]  }
  0x78   :  { %3955 = vmatprep.subr.bf16.mxu1 %v6180_v33  ;;  %v6225_v11 = vld [vmem:[#allocation5 + $0x300] ss:$16 sps:$4 sm:$0xff]   ;;  %v6229_v12 = vld [vmem:[#allocation5 + $0x4e4] ss:$16 sps:$4 sm:$0xff]  }
  0x79   :  { %v6232_v13 = vld [vmem:[#allocation5 + $0x6e4] ss:$16 sps:$4 sm:$0xff]   ;;  %v6227_v14 = vld [vmem:[#allocation5 + $0x4e0] ss:$16 sps:$4 sm:$0xff]  }
  0x7a   :  { %3915 = vmatpush2.bf16.msra.mxu0 %v6182_v34  ;;  %v6230_v15 = vld [vmem:[#allocation5 + $0x6e0] ss:$16 sps:$4 sm:$0xff]   ;;  %v6235_v16 = vld [vmem:[#allocation5 + $0x4c4] ss:$16 sps:$4 sm:$0xff]  }
  0x7b   :  { %3956 = vmatpush2.bf16.msra.mxu1 %v6183_v35  ;;  %3916 = vmatprep.subr.bf16.mxu0 %v6184_v39  ;;  %v6238_v17 = vld [vmem:[#allocation5 + $0x6c4] ss:$16 sps:$4 sm:$0xff]   ;;  %v6233_v18 = vld [vmem:[#allocation5 + $0x4c0] ss:$16 sps:$4 sm:$0xff]  }
  0x7c   :  { %3957 = vmatprep.subr.bf16.mxu1 %v6186_v40  ;;  %v6236_v19 = vld [vmem:[#allocation5 + $0x6c0] ss:$16 sps:$4 sm:$0xff]   ;;  %v6241_v20 = vld [vmem:[#allocation5 + $0x4a4] ss:$16 sps:$4 sm:$0xff]  }
  0x7d   :  { %v6244_v21 = vld [vmem:[#allocation5 + $0x6a4] ss:$16 sps:$4 sm:$0xff]   ;;  %v6239_v22 = vld [vmem:[#allocation5 + $0x4a0] ss:$16 sps:$4 sm:$0xff]  }
  0x7e   :  { %3917 = vmatpush2.bf16.msra.mxu0 %v6188_v41  ;;  %v6242_v23 = vld [vmem:[#allocation5 + $0x6a0] ss:$16 sps:$4 sm:$0xff]   ;;  %v6247_v24 = vld [vmem:[#allocation5 + $0x484] ss:$16 sps:$4 sm:$0xff]  }
  0x7f   :  { %3958 = vmatpush2.bf16.msra.mxu1 %v6189_v44  ;;  %3918 = vmatprep.subr.bf16.mxu0 %v6190_v45  ;;  %v6250_v25 = vld [vmem:[#allocation5 + $0x684] ss:$16 sps:$4 sm:$0xff]   ;;  %v6245_v26 = vld [vmem:[#allocation5 + $0x480] ss:$16 sps:$4 sm:$0xff]  }
  0x80   :  { %3959 = vmatprep.subr.bf16.mxu1 %v6192_v46  ;;  %v6248_v27 = vld [vmem:[#allocation5 + $0x680] ss:$16 sps:$4 sm:$0xff]   ;;  %v6253_v28 = vld [vmem:[#allocation5 + $0x464] ss:$16 sps:$4 sm:$0xff]  }
  0x81   :  { %v6256_v29 = vld [vmem:[#allocation5 + $0x664] ss:$16 sps:$4 sm:$0xff]   ;;  %v6251_v30 = vld [vmem:[#allocation5 + $0x460] ss:$16 sps:$4 sm:$0xff]  }
  0x82   :  { %3919 = vmatpush2.bf16.msra.mxu0 %v6194_v47  ;;  %v6254_v31 = vld [vmem:[#allocation5 + $0x660] ss:$16 sps:$4 sm:$0xff]   ;;  %v6259_v32 = vld [vmem:[#allocation5 + $0x444] ss:$16 sps:$4 sm:$0xff]  }
  0x83   :  { %3960 = vmatpush2.bf16.msra.mxu1 %v6195_v48  ;;  %3920 = vmatprep.subr.bf16.mxu0 %v6196_v50  ;;  %v6262_v33 = vld [vmem:[#allocation5 + $0x644] ss:$16 sps:$4 sm:$0xff]   ;;  %v6257_v34 = vld [vmem:[#allocation5 + $0x440] ss:$16 sps:$4 sm:$0xff]  }
  0x84   :  { %3961 = vmatprep.subr.bf16.mxu1 %v6198_v51  ;;  %v6260_v35 = vld [vmem:[#allocation5 + $0x640] ss:$16 sps:$4 sm:$0xff]   ;;  %v6265_v36 = vld [vmem:[#allocation5 + $0x424] ss:$16 sps:$4 sm:$0xff]  }
  0x85   :  { %v6268_v37 = vld [vmem:[#allocation5 + $0x624] ss:$16 sps:$4 sm:$0xff]   ;;  %v6263_v41 = vld [vmem:[#allocation5 + $0x420] ss:$16 sps:$4 sm:$0xff]  }
  0x86   :  { %3921 = vmatpush2.bf16.msra.mxu0 %v6200_v53  ;;  %v116_v38 = vld [vmem:[#allocation2 + $0x8] sm:$0xff] }
  0x87   :  { %3962 = vmatpush2.bf16.msra.mxu1 %v6201_v56  ;;  %3922 = vmatprep.subr.bf16.mxu0 %v6202_v57  ;;  %v7431_v39 = vrot.slane %v116_v38, %v7410_v49  ;;  %v772_v40 = vcombine.high %v116_v38, %v116_v38  ;;  %v6266_v43 = vld [vmem:[#allocation5 + $0x620] ss:$16 sps:$4 sm:$0xff]   ;;  %v6271_v46 = vld [vmem:[#allocation5 + $0x404] ss:$16 sps:$4 sm:$0xff]  }
  0x88   :  { %3963 = vmatprep.subr.bf16.mxu1 %v6204_v58  ;;  %v6274_v47 = vld [vmem:[#allocation5 + $0x604] ss:$16 sps:$4 sm:$0xff]   ;;  %v6269_v50 = vld [vmem:[#allocation5 + $0x400] ss:$16 sps:$4 sm:$0xff]  }
  0x89   :  { %v7435_v44 = vcombine.high %v7431_v39, %v7431_v39  ;;  %v7438_v45 = vrot.slane %v772_v40, %v7410_v49  ;;  %v6272_v51 = vld [vmem:[#allocation5 + $0x600] ss:$16 sps:$4 sm:$0xff]   ;;  %v6277_v52 = vld [vmem:[#allocation5 + $0x5e4] ss:$16 sps:$4 sm:$0xff]  }
  0x8a   :  { %3923 = vmatpush2.bf16.msra.mxu0 %v6206_v61  ;;  %v6280_v53 = vld [vmem:[#allocation5 + $0x7e4] ss:$16 sps:$4 sm:$0xff]   ;;  %v6275_v55 = vld [vmem:[#allocation5 + $0x5e0] ss:$16 sps:$4 sm:$0xff]  }
  0x8b   :  { %3964 = vmatpush2.bf16.msra.mxu1 %v6207_v63  ;;  %3924 = vmatprep.subr.bf16.mxu0 %v6208_v0  ;;  %v7443_v48 = vcombine.high %v7438_v45, %v7438_v45  ;;  %v6278_v56 = vld [vmem:[#allocation5 + $0x7e0] ss:$16 sps:$4 sm:$0xff]   ;;  %v6283_v57 = vld [vmem:[#allocation5 + $0x5c4] ss:$16 sps:$4 sm:$0xff]  }
  0x8c   :  { %3965 = vmatprep.subr.bf16.mxu1 %v6210_v1  ;;  %v6286_v58 = vld [vmem:[#allocation5 + $0x7c4] ss:$16 sps:$4 sm:$0xff]   ;;  %v6281_v61 = vld [vmem:[#allocation5 + $0x5c0] ss:$16 sps:$4 sm:$0xff]  }
  0x8d   :  { %v6284_v63 = vld [vmem:[#allocation5 + $0x7c0] ss:$16 sps:$4 sm:$0xff]   ;;  %v6289_v0 = vld [vmem:[#allocation5 + $0x5a4] ss:$16 sps:$4 sm:$0xff]  }
  0x8e   :  { %3925 = vmatpush2.bf16.msra.mxu0 %v6212_v2  ;;  %v6292_v1 = vld [vmem:[#allocation5 + $0x7a4] ss:$16 sps:$4 sm:$0xff]   ;;  %v6287_v2 = vld [vmem:[#allocation5 + $0x5a0] ss:$16 sps:$4 sm:$0xff]  }
  0x8f   :  { %3966 = vmatpush2.bf16.msra.mxu1 %v6213_v3  ;;  %3926 = vmatprep.subr.bf16.mxu0 %v6214_v4  ;;  %v6290_v3 = vld [vmem:[#allocation5 + $0x7a0] ss:$16 sps:$4 sm:$0xff]   ;;  %v6295_v4 = vld [vmem:[#allocation5 + $0x584] ss:$16 sps:$4 sm:$0xff]  }
  0x90   :  { %3967 = vmatprep.subr.bf16.mxu1 %v6216_v5  ;;  %v6298_v5 = vld [vmem:[#allocation5 + $0x784] ss:$16 sps:$4 sm:$0xff]  }
  0x91   :  { %v6341_v38 = vld [vmem:[#allocation5 + $0xaa4] ss:$16 sps:$4 sm:$0xff]  }
  0x92   :  { %3927 = vmatpush2.bf16.msra.mxu0 %v6218_v6  ;;  %v6293_v6 = vld [vmem:[#allocation5 + $0x580] ss:$16 sps:$4 sm:$0xff]  }
  0x93   :  { %3968 = vmatpush2.bf16.msra.mxu1 %v6219_v7  ;;  %3928 = vmatprep.subr.bf16.mxu0 %v6220_v8  ;;  %v6296_v7 = vld [vmem:[#allocation5 + $0x780] ss:$16 sps:$4 sm:$0xff]   ;;  %v6301_v8 = vld [vmem:[#allocation5 + $0x564] ss:$16 sps:$4 sm:$0xff]  }
  0x94   :  { %3969 = vmatprep.subr.bf16.mxu1 %v6222_v9  ;;  %v6304_v9 = vld [vmem:[#allocation5 + $0x764] ss:$16 sps:$4 sm:$0xff]  }
  0x96   :  { %3929 = vmatpush2.bf16.msra.mxu0 %v6224_v10  ;;  %v6299_v10 = vld [vmem:[#allocation5 + $0x560] ss:$16 sps:$4 sm:$0xff]  }
  0x97   :  { %3970 = vmatpush2.bf16.msra.mxu1 %v6225_v11  ;;  %3980 = vmatprep.subr.bf16.mxu0 %v6229_v12  ;;  %v6302_v11 = vld [vmem:[#allocation5 + $0x760] ss:$16 sps:$4 sm:$0xff]   ;;  %v6307_v12 = vld [vmem:[#allocation5 + $0x544] ss:$16 sps:$4 sm:$0xff]  }
  0x98   :  { %4021 = vmatprep.subr.bf16.mxu1 %v6232_v13  ;;  %v6310_v13 = vld [vmem:[#allocation5 + $0x744] ss:$16 sps:$4 sm:$0xff]  }
  0x99   :  { %3931 = vmatmul.mubr.bf16.vlgmr.msra.gmra.mxu0 %v7413_v54 }
  0x9a   :  { %3972 = vmatmul.mubr.bf16.vlgmr.msra.gmra.mxu1 %v7420_v60  ;;  %3981 = vmatpush1.bf16.msra.mxu0 %v6227_v14  ;;  %v6305_v14 = vld [vmem:[#allocation5 + $0x540] ss:$16 sps:$4 sm:$0xff]  }
  0x9b   :  { %4022 = vmatpush1.bf16.msra.mxu1 %v6230_v15  ;;  %3982 = vmatprep.subr.bf16.mxu0 %v6235_v16  ;;  %v6308_v15 = vld [vmem:[#allocation5 + $0x740] ss:$16 sps:$4 sm:$0xff]   ;;  %v6313_v16 = vld [vmem:[#allocation5 + $0x524] ss:$16 sps:$4 sm:$0xff]  }
  0x9c   :  { %4023 = vmatprep.subr.bf16.mxu1 %v6238_v17  ;;  %4012 = vmatprep.mubr.bf16.mxu0 %v7435_v44  ;;  %v6316_v17 = vld [vmem:[#allocation5 + $0x724] ss:$16 sps:$4 sm:$0xff]  }
  0x9d   :  { %4053 = vmatprep.mubr.bf16.mxu1 %v7443_v48 }
  0x9e   :  { %3983 = vmatpush1.bf16.msra.mxu0 %v6233_v18  ;;  %v6311_v18 = vld [vmem:[#allocation5 + $0x520] ss:$16 sps:$4 sm:$0xff]  }
  0x9f   :  { %4024 = vmatpush1.bf16.msra.mxu1 %v6236_v19  ;;  %3984 = vmatprep.subr.bf16.mxu0 %v6241_v20  ;;  %v6314_v19 = vld [vmem:[#allocation5 + $0x720] ss:$16 sps:$4 sm:$0xff]   ;;  %v6319_v20 = vld [vmem:[#allocation5 + $0x504] ss:$16 sps:$4 sm:$0xff]  }
  0xa0   :  { %4025 = vmatprep.subr.bf16.mxu1 %v6244_v21  ;;  %v6322_v21 = vld [vmem:[#allocation5 + $0x704] ss:$16 sps:$4 sm:$0xff]  }
  0xa2   :  { %3985 = vmatpush1.bf16.msra.mxu0 %v6239_v22  ;;  %v6317_v22 = vld [vmem:[#allocation5 + $0x500] ss:$16 sps:$4 sm:$0xff]  }
  0xa3   :  { %4026 = vmatpush1.bf16.msra.mxu1 %v6242_v23  ;;  %3986 = vmatprep.subr.bf16.mxu0 %v6247_v24  ;;  %v6320_v23 = vld [vmem:[#allocation5 + $0x700] ss:$16 sps:$4 sm:$0xff]   ;;  %v6326_v24 = vld [vmem:[#allocation5 + $0x8e4] ss:$16 sps:$4 sm:$0xff]  }
  0xa4   :  { %4027 = vmatprep.subr.bf16.mxu1 %v6250_v25  ;;  %v6329_v25 = vld [vmem:[#allocation5 + $0xae4] ss:$16 sps:$4 sm:$0xff]  }
  0xa6   :  { %3987 = vmatpush1.bf16.msra.mxu0 %v6245_v26  ;;  %v6324_v26 = vld [vmem:[#allocation5 + $0x8e0] ss:$16 sps:$4 sm:$0xff]  }
  0xa7   :  { %4028 = vmatpush1.bf16.msra.mxu1 %v6248_v27  ;;  %3988 = vmatprep.subr.bf16.mxu0 %v6253_v28  ;;  %v6327_v27 = vld [vmem:[#allocation5 + $0xae0] ss:$16 sps:$4 sm:$0xff]   ;;  %v6332_v28 = vld [vmem:[#allocation5 + $0x8c4] ss:$16 sps:$4 sm:$0xff]  }
  0xa8   :  { %4029 = vmatprep.subr.bf16.mxu1 %v6256_v29  ;;  %v117_v29 = vld [vmem:[#allocation2 + $0x10] sm:$0xff] }
  0xaa   :  { %3989 = vmatpush1.bf16.msra.mxu0 %v6251_v30  ;;  %v6335_v30 = vld [vmem:[#allocation5 + $0xac4] ss:$16 sps:$4 sm:$0xff]  }
  0xab   :  { %4030 = vmatpush1.bf16.msra.mxu1 %v6254_v31  ;;  %3990 = vmatprep.subr.bf16.mxu0 %v6259_v32  ;;  %v7447_v31 = vrot.slane %v117_v29, %v7410_v49  ;;  %v789_v32 = vcombine.high %v117_v29, %v117_v29  ;;  %v6407_v29 = vld [vmem:[#allocation5 + $0xb44] ss:$16 sps:$4 sm:$0xff]  }
  0xac   :  { %4031 = vmatprep.subr.bf16.mxu1 %v6262_v33  ;;  %v6330_v33 = vld [vmem:[#allocation5 + $0x8c0] ss:$16 sps:$4 sm:$0xff]  }
  0xae   :  { %3991 = vmatpush1.bf16.msra.mxu0 %v6257_v34  ;;  %v7453_v34 = vcombine.high %v7447_v31, %v7447_v31 }
  0xaf   :  { %4032 = vmatpush1.bf16.msra.mxu1 %v6260_v35  ;;  %3992 = vmatprep.subr.bf16.mxu0 %v6265_v36  ;;  %v7456_v35 = vrot.slane %v789_v32, %v7410_v49  ;;  %v6333_v36 = vld [vmem:[#allocation5 + $0xac0] ss:$16 sps:$4 sm:$0xff]  }
  0xb0   :  { %4033 = vmatprep.subr.bf16.mxu1 %v6268_v37  ;;  %v6338_v37 = vld [vmem:[#allocation5 + $0x8a4] ss:$16 sps:$4 sm:$0xff]   ;;  %v6405_v32 = vld [vmem:[#allocation5 + $0xb40] ss:$16 sps:$4 sm:$0xff]  }
  0xb1   :  { %v7460_v40 = vcombine.high %v7456_v35, %v7456_v35 }
  0xb2   :  { %3993 = vmatpush1.bf16.msra.mxu0 %v6263_v41  ;;  %v6336_v41 = vld [vmem:[#allocation5 + $0x8a0] ss:$16 sps:$4 sm:$0xff]  }
  0xb3   :  { %4034 = vmatpush1.bf16.msra.mxu1 %v6266_v43  ;;  %3994 = vmatprep.subr.bf16.mxu0 %v6271_v46  ;;  %v6339_v43 = vld [vmem:[#allocation5 + $0xaa0] ss:$16 sps:$4 sm:$0xff]   ;;  %v6344_v46 = vld [vmem:[#allocation5 + $0x884] ss:$16 sps:$4 sm:$0xff]  }
  0xb4   :  { %4035 = vmatprep.subr.bf16.mxu1 %v6274_v47  ;;  %v6347_v47 = vld [vmem:[#allocation5 + $0xa84] ss:$16 sps:$4 sm:$0xff]  }
  0xb6   :  { %3995 = vmatpush1.bf16.msra.mxu0 %v6269_v50  ;;  %v6342_v50 = vld [vmem:[#allocation5 + $0x880] ss:$16 sps:$4 sm:$0xff]  }
  0xb7   :  { %4036 = vmatpush1.bf16.msra.mxu1 %v6272_v51  ;;  %3996 = vmatprep.subr.bf16.mxu0 %v6277_v52  ;;  %v6345_v51 = vld [vmem:[#allocation5 + $0xa80] ss:$16 sps:$4 sm:$0xff]   ;;  %v6350_v52 = vld [vmem:[#allocation5 + $0x864] ss:$16 sps:$4 sm:$0xff]  }
  0xb8   :  { %4037 = vmatprep.subr.bf16.mxu1 %v6280_v53  ;;  %v6353_v53 = vld [vmem:[#allocation5 + $0xa64] ss:$16 sps:$4 sm:$0xff]  }
  0xba   :  { %3997 = vmatpush2.bf16.msra.mxu0 %v6275_v55  ;;  %v6348_v55 = vld [vmem:[#allocation5 + $0x860] ss:$16 sps:$4 sm:$0xff]  }
  0xbb   :  { %4038 = vmatpush2.bf16.msra.mxu1 %v6278_v56  ;;  %3998 = vmatprep.subr.bf16.mxu0 %v6283_v57  ;;  %v6351_v56 = vld [vmem:[#allocation5 + $0xa60] ss:$16 sps:$4 sm:$0xff]   ;;  %v6356_v57 = vld [vmem:[#allocation5 + $0x844] ss:$16 sps:$4 sm:$0xff]  }
  0xbc   :  { %4039 = vmatprep.subr.bf16.mxu1 %v6286_v58  ;;  %v6359_v58 = vld [vmem:[#allocation5 + $0xa44] ss:$16 sps:$4 sm:$0xff]  }
  0xbe   :  { %3999 = vmatpush2.bf16.msra.mxu0 %v6281_v61  ;;  %v6354_v61 = vld [vmem:[#allocation5 + $0x840] ss:$16 sps:$4 sm:$0xff]  }
  0xbf   :  { %4040 = vmatpush2.bf16.msra.mxu1 %v6284_v63  ;;  %4000 = vmatprep.subr.bf16.mxu0 %v6289_v0  ;;  %v6357_v63 = vld [vmem:[#allocation5 + $0xa40] ss:$16 sps:$4 sm:$0xff]   ;;  %v6362_v0 = vld [vmem:[#allocation5 + $0x824] ss:$16 sps:$4 sm:$0xff]  }
  0xc0   :  { %4041 = vmatprep.subr.bf16.mxu1 %v6292_v1  ;;  %v6365_v1 = vld [vmem:[#allocation5 + $0xa24] ss:$16 sps:$4 sm:$0xff]  }
  0xc2   :  { %4001 = vmatpush2.bf16.msra.mxu0 %v6287_v2  ;;  %v6360_v2 = vld [vmem:[#allocation5 + $0x820] ss:$16 sps:$4 sm:$0xff]  }
  0xc3   :  { %4042 = vmatpush2.bf16.msra.mxu1 %v6290_v3  ;;  %4002 = vmatprep.subr.bf16.mxu0 %v6295_v4  ;;  %v6363_v3 = vld [vmem:[#allocation5 + $0xa20] ss:$16 sps:$4 sm:$0xff]   ;;  %v6368_v4 = vld [vmem:[#allocation5 + $0x804] ss:$16 sps:$4 sm:$0xff]  }
  0xc4   :  { %4043 = vmatprep.subr.bf16.mxu1 %v6298_v5  ;;  %v6371_v5 = vld [vmem:[#allocation5 + $0xa04] ss:$16 sps:$4 sm:$0xff]  }
  0xc6   :  { %4003 = vmatpush2.bf16.msra.mxu0 %v6293_v6  ;;  %v6366_v6 = vld [vmem:[#allocation5 + $0x800] ss:$16 sps:$4 sm:$0xff]  }
  0xc7   :  { %4044 = vmatpush2.bf16.msra.mxu1 %v6296_v7  ;;  %4004 = vmatprep.subr.bf16.mxu0 %v6301_v8  ;;  %v6369_v7 = vld [vmem:[#allocation5 + $0xa00] ss:$16 sps:$4 sm:$0xff]   ;;  %v6374_v8 = vld [vmem:[#allocation5 + $0x9e4] ss:$16 sps:$4 sm:$0xff]  }
  0xc8   :  { %4045 = vmatprep.subr.bf16.mxu1 %v6304_v9  ;;  %v6377_v9 = vld [vmem:[#allocation5 + $0xbe4] ss:$16 sps:$4 sm:$0xff]  }
  0xca   :  { %4005 = vmatpush2.bf16.msra.mxu0 %v6299_v10  ;;  %v6372_v10 = vld [vmem:[#allocation5 + $0x9e0] ss:$16 sps:$4 sm:$0xff]  }
  0xcb   :  { %4046 = vmatpush2.bf16.msra.mxu1 %v6302_v11  ;;  %4006 = vmatprep.subr.bf16.mxu0 %v6307_v12  ;;  %v6375_v11 = vld [vmem:[#allocation5 + $0xbe0] ss:$16 sps:$4 sm:$0xff]   ;;  %v6380_v12 = vld [vmem:[#allocation5 + $0x9c4] ss:$16 sps:$4 sm:$0xff]  }
  0xcc   :  { %4047 = vmatprep.subr.bf16.mxu1 %v6310_v13  ;;  %v6383_v13 = vld [vmem:[#allocation5 + $0xbc4] ss:$16 sps:$4 sm:$0xff]  }
  0xce   :  { %4007 = vmatpush2.bf16.msra.mxu0 %v6305_v14  ;;  %v6378_v14 = vld [vmem:[#allocation5 + $0x9c0] ss:$16 sps:$4 sm:$0xff]  }
  0xcf   :  { %4048 = vmatpush2.bf16.msra.mxu1 %v6308_v15  ;;  %4008 = vmatprep.subr.bf16.mxu0 %v6313_v16  ;;  %v6381_v15 = vld [vmem:[#allocation5 + $0xbc0] ss:$16 sps:$4 sm:$0xff]   ;;  %v6386_v16 = vld [vmem:[#allocation5 + $0x9a4] ss:$16 sps:$4 sm:$0xff]  }
  0xd0   :  { %4049 = vmatprep.subr.bf16.mxu1 %v6316_v17  ;;  %v6389_v17 = vld [vmem:[#allocation5 + $0xba4] ss:$16 sps:$4 sm:$0xff]  }
  0xd2   :  { %4009 = vmatpush2.bf16.msra.mxu0 %v6311_v18  ;;  %v6384_v18 = vld [vmem:[#allocation5 + $0x9a0] ss:$16 sps:$4 sm:$0xff]  }
  0xd3   :  { %4050 = vmatpush2.bf16.msra.mxu1 %v6314_v19  ;;  %4010 = vmatprep.subr.bf16.mxu0 %v6319_v20  ;;  %v6387_v19 = vld [vmem:[#allocation5 + $0xba0] ss:$16 sps:$4 sm:$0xff]   ;;  %v6392_v20 = vld [vmem:[#allocation5 + $0x984] ss:$16 sps:$4 sm:$0xff]  }
  0xd4   :  { %4051 = vmatprep.subr.bf16.mxu1 %v6322_v21  ;;  %v6395_v21 = vld [vmem:[#allocation5 + $0xb84] ss:$16 sps:$4 sm:$0xff]  }
  0xd6   :  { %4011 = vmatpush2.bf16.msra.mxu0 %v6317_v22  ;;  %v6390_v22 = vld [vmem:[#allocation5 + $0x980] ss:$16 sps:$4 sm:$0xff]  }
  0xd7   :  { %4052 = vmatpush2.bf16.msra.mxu1 %v6320_v23  ;;  %4062 = vmatprep.subr.bf16.mxu0 %v6326_v24  ;;  %v6393_v23 = vld [vmem:[#allocation5 + $0xb80] ss:$16 sps:$4 sm:$0xff]   ;;  %v6398_v24 = vld [vmem:[#allocation5 + $0x964] ss:$16 sps:$4 sm:$0xff]  }
  0xd8   :  { %4103 = vmatprep.subr.bf16.mxu1 %v6329_v25  ;;  %v6401_v25 = vld [vmem:[#allocation5 + $0xb64] ss:$16 sps:$4 sm:$0xff]  }
  0xd9   :  { %4013 = vmatmul.mubr.bf16.vlgmr.msra.gmra.mxu0 %v7431_v39 }
  0xda   :  { %4054 = vmatmul.mubr.bf16.vlgmr.msra.gmra.mxu1 %v7438_v45  ;;  %4063 = vmatpush1.bf16.msra.mxu0 %v6324_v26  ;;  %v6396_v26 = vld [vmem:[#allocation5 + $0x960] ss:$16 sps:$4 sm:$0xff]  }
  0xdb   :  { %4104 = vmatpush1.bf16.msra.mxu1 %v6327_v27  ;;  %4064 = vmatprep.subr.bf16.mxu0 %v6332_v28  ;;  %v6399_v27 = vld [vmem:[#allocation5 + $0xb60] ss:$16 sps:$4 sm:$0xff]   ;;  %v6404_v28 = vld [vmem:[#allocation5 + $0x944] ss:$16 sps:$4 sm:$0xff]  }
  0xdc   :  { %4105 = vmatprep.subr.bf16.mxu1 %v6335_v30  ;;  %4094 = vmatprep.mubr.bf16.mxu0 %v7453_v34  ;;  %v6402_v30 = vld [vmem:[#allocation5 + $0x940] ss:$16 sps:$4 sm:$0xff]  }
  0xdd   :  { %4135 = vmatprep.mubr.bf16.mxu1 %v7460_v40 }
  0xde   :  { %4065 = vmatpush1.bf16.msra.mxu0 %v6330_v33  ;;  %v6410_v33 = vld [vmem:[#allocation5 + $0x924] ss:$16 sps:$4 sm:$0xff]  }
  0xdf   :  { %4106 = vmatpush1.bf16.msra.mxu1 %v6333_v36  ;;  %4066 = vmatprep.subr.bf16.mxu0 %v6338_v37  ;;  %v6413_v36 = vld [vmem:[#allocation5 + $0xb24] ss:$16 sps:$4 sm:$0xff]   ;;  %v6408_v37 = vld [vmem:[#allocation5 + $0x920] ss:$16 sps:$4 sm:$0xff]  }
  0xe0   :  { %4107 = vmatprep.subr.bf16.mxu1 %v6341_v38  ;;  %v118_v38 = vld [vmem:[#allocation2 + $0x18] sm:$0xff] }
  0xe2   :  { %4067 = vmatpush1.bf16.msra.mxu0 %v6336_v41  ;;  %v6411_v41 = vld [vmem:[#allocation5 + $0xb20] ss:$16 sps:$4 sm:$0xff]  }
  0xe3   :  { %4108 = vmatpush1.bf16.msra.mxu1 %v6339_v43  ;;  %4068 = vmatprep.subr.bf16.mxu0 %v6344_v46  ;;  %v6416_v43 = vld [vmem:[#allocation5 + $0x904] ss:$16 sps:$4 sm:$0xff]  }
  0xe4   :  { %4109 = vmatprep.subr.bf16.mxu1 %v6347_v47  ;;  %v6419_v46 = vld [vmem:[#allocation5 + $0xb04] ss:$16 sps:$4 sm:$0xff]   ;;  %v806_v47 = vcombine.high %v118_v38, %v118_v38 }
  0xe6   :  { %4069 = vmatpush1.bf16.msra.mxu0 %v6342_v50  ;;  %v6414_v50 = vld [vmem:[#allocation5 + $0x900] ss:$16 sps:$4 sm:$0xff]  }
  0xe7   :  { %4110 = vmatpush1.bf16.msra.mxu1 %v6345_v51  ;;  %4070 = vmatprep.subr.bf16.mxu0 %v6350_v52  ;;  %v6417_v51 = vld [vmem:[#allocation5 + $0xb00] ss:$16 sps:$4 sm:$0xff]   ;;  %v6423_v52 = vld [vmem:[#allocation5 + $0xce4] ss:$16 sps:$4 sm:$0xff]  }
  0xe8   :  { %4111 = vmatprep.subr.bf16.mxu1 %v6353_v53  ;;  %v6426_v53 = vld [vmem:[#allocation5 + $0xee4] ss:$16 sps:$4 sm:$0xff]  }
  0xea   :  { %4071 = vmatpush1.bf16.msra.mxu0 %v6348_v55  ;;  %v7465_v55 = vrot.slane %v118_v38, %v7410_v49  ;;  %v6478_v38 = vld [vmem:[#allocation5 + $0xfc0] ss:$16 sps:$4 sm:$0xff]  }
  0xeb   :  { %4112 = vmatpush1.bf16.msra.mxu1 %v6351_v56  ;;  %4072 = vmatprep.subr.bf16.mxu0 %v6356_v57  ;;  %v7468_v56 = vrot.slane %v806_v47, %v7410_v49  ;;  %v6421_v57 = vld [vmem:[#allocation5 + $0xce0] ss:$16 sps:$4 sm:$0xff]  }
  0xec   :  { %4113 = vmatprep.subr.bf16.mxu1 %v6359_v58  ;;  %v6424_v58 = vld [vmem:[#allocation5 + $0xee0] ss:$16 sps:$4 sm:$0xff]  }
  0xed   :  { %v6484_v47 = vld [vmem:[#allocation5 + $0xfa0] ss:$16 sps:$4 sm:$0xff]  }
  0xee   :  { %4073 = vmatpush1.bf16.msra.mxu0 %v6354_v61  ;;  %v6429_v61 = vld [vmem:[#allocation5 + $0xcc4] ss:$16 sps:$4 sm:$0xff]  }
  0xef   :  { %4114 = vmatpush1.bf16.msra.mxu1 %v6357_v63  ;;  %4074 = vmatprep.subr.bf16.mxu0 %v6362_v0  ;;  %v6432_v63 = vld [vmem:[#allocation5 + $0xec4] ss:$16 sps:$4 sm:$0xff]   ;;  %v7472_v0 = vcombine.high %v7465_v55, %v7465_v55 }
  0xf0   :  { %4115 = vmatprep.subr.bf16.mxu1 %v6365_v1  ;;  %v7476_v1 = vcombine.high %v7468_v56, %v7468_v56 }
  0xf2   :  { %4075 = vmatpush1.bf16.msra.mxu0 %v6360_v2  ;;  %v6427_v2 = vld [vmem:[#allocation5 + $0xcc0] ss:$16 sps:$4 sm:$0xff]  }
  0xf3   :  { %4116 = vmatpush1.bf16.msra.mxu1 %v6363_v3  ;;  %4076 = vmatprep.subr.bf16.mxu0 %v6368_v4  ;;  %v6430_v3 = vld [vmem:[#allocation5 + $0xec0] ss:$16 sps:$4 sm:$0xff]   ;;  %v6435_v4 = vld [vmem:[#allocation5 + $0xca4] ss:$16 sps:$4 sm:$0xff]  }
  0xf4   :  { %4117 = vmatprep.subr.bf16.mxu1 %v6371_v5  ;;  %v6438_v5 = vld [vmem:[#allocation5 + $0xea4] ss:$16 sps:$4 sm:$0xff]  }
  0xf6   :  { %4077 = vmatpush1.bf16.msra.mxu0 %v6366_v6  ;;  %v6433_v6 = vld [vmem:[#allocation5 + $0xca0] ss:$16 sps:$4 sm:$0xff]  }
  0xf7   :  { %4118 = vmatpush1.bf16.msra.mxu1 %v6369_v7  ;;  %4078 = vmatprep.subr.bf16.mxu0 %v6374_v8  ;;  %v6436_v7 = vld [vmem:[#allocation5 + $0xea0] ss:$16 sps:$4 sm:$0xff]   ;;  %v6441_v8 = vld [vmem:[#allocation5 + $0xc84] ss:$16 sps:$4 sm:$0xff]  }
  0xf8   :  { %4119 = vmatprep.subr.bf16.mxu1 %v6377_v9  ;;  %v6444_v9 = vld [vmem:[#allocation5 + $0xe84] ss:$16 sps:$4 sm:$0xff]  }
  0xfa   :  { %4079 = vmatpush2.bf16.msra.mxu0 %v6372_v10  ;;  %v6439_v10 = vld [vmem:[#allocation5 + $0xc80] ss:$16 sps:$4 sm:$0xff]  }
  0xfb   :  { %4120 = vmatpush2.bf16.msra.mxu1 %v6375_v11  ;;  %4080 = vmatprep.subr.bf16.mxu0 %v6380_v12  ;;  %v6442_v11 = vld [vmem:[#allocation5 + $0xe80] ss:$16 sps:$4 sm:$0xff]   ;;  %v6447_v12 = vld [vmem:[#allocation5 + $0xc64] ss:$16 sps:$4 sm:$0xff]  }
  0xfc   :  { %4121 = vmatprep.subr.bf16.mxu1 %v6383_v13  ;;  %v6450_v13 = vld [vmem:[#allocation5 + $0xe64] ss:$16 sps:$4 sm:$0xff]  }
  0xfe   :  { %4081 = vmatpush2.bf16.msra.mxu0 %v6378_v14  ;;  %v6445_v14 = vld [vmem:[#allocation5 + $0xc60] ss:$16 sps:$4 sm:$0xff]  }
  0xff   :  { %4122 = vmatpush2.bf16.msra.mxu1 %v6381_v15  ;;  %4082 = vmatprep.subr.bf16.mxu0 %v6386_v16  ;;  %v6448_v15 = vld [vmem:[#allocation5 + $0xe60] ss:$16 sps:$4 sm:$0xff]   ;;  %v6453_v16 = vld [vmem:[#allocation5 + $0xc44] ss:$16 sps:$4 sm:$0xff]  }
 0x100   :  { %4123 = vmatprep.subr.bf16.mxu1 %v6389_v17  ;;  %v6456_v17 = vld [vmem:[#allocation5 + $0xe44] ss:$16 sps:$4 sm:$0xff]  }
 0x102   :  { %4083 = vmatpush2.bf16.msra.mxu0 %v6384_v18  ;;  %v6451_v18 = vld [vmem:[#allocation5 + $0xc40] ss:$16 sps:$4 sm:$0xff]  }
 0x103   :  { %4124 = vmatpush2.bf16.msra.mxu1 %v6387_v19  ;;  %4084 = vmatprep.subr.bf16.mxu0 %v6392_v20  ;;  %v6454_v19 = vld [vmem:[#allocation5 + $0xe40] ss:$16 sps:$4 sm:$0xff]   ;;  %v6459_v20 = vld [vmem:[#allocation5 + $0xc24] ss:$16 sps:$4 sm:$0xff]  }
 0x104   :  { %4125 = vmatprep.subr.bf16.mxu1 %v6395_v21  ;;  %v6462_v21 = vld [vmem:[#allocation5 + $0xe24] ss:$16 sps:$4 sm:$0xff]  }
 0x106   :  { %4085 = vmatpush2.bf16.msra.mxu0 %v6390_v22  ;;  %v6457_v22 = vld [vmem:[#allocation5 + $0xc20] ss:$16 sps:$4 sm:$0xff]  }
 0x107   :  { %4126 = vmatpush2.bf16.msra.mxu1 %v6393_v23  ;;  %4086 = vmatprep.subr.bf16.mxu0 %v6398_v24  ;;  %v6460_v23 = vld [vmem:[#allocation5 + $0xe20] ss:$16 sps:$4 sm:$0xff]   ;;  %v6465_v24 = vld [vmem:[#allocation5 + $0xc04] ss:$16 sps:$4 sm:$0xff]  }
 0x108   :  { %4127 = vmatprep.subr.bf16.mxu1 %v6401_v25  ;;  %v6468_v25 = vld [vmem:[#allocation5 + $0xe04] ss:$16 sps:$4 sm:$0xff]  }
 0x10a   :  { %4087 = vmatpush2.bf16.msra.mxu0 %v6396_v26  ;;  %v6463_v26 = vld [vmem:[#allocation5 + $0xc00] ss:$16 sps:$4 sm:$0xff]  }
 0x10b   :  { %4128 = vmatpush2.bf16.msra.mxu1 %v6399_v27  ;;  %4088 = vmatprep.subr.bf16.mxu0 %v6404_v28  ;;  %v6466_v27 = vld [vmem:[#allocation5 + $0xe00] ss:$16 sps:$4 sm:$0xff]   ;;  %v6471_v28 = vld [vmem:[#allocation5 + $0xde4] ss:$16 sps:$4 sm:$0xff]  }
 0x10c   :  { %4129 = vmatprep.subr.bf16.mxu1 %v6407_v29  ;;  %v6474_v29 = vld [vmem:[#allocation5 + $0xfe4] ss:$16 sps:$4 sm:$0xff]  }
 0x10e   :  { %4089 = vmatpush2.bf16.msra.mxu0 %v6402_v30  ;;  %v6469_v30 = vld [vmem:[#allocation5 + $0xde0] ss:$16 sps:$4 sm:$0xff]  }
 0x10f   :  { %4130 = vmatpush2.bf16.msra.mxu1 %v6405_v32  ;;  %4090 = vmatprep.subr.bf16.mxu0 %v6410_v33  ;;  %v6472_v32 = vld [vmem:[#allocation5 + $0xfe0] ss:$16 sps:$4 sm:$0xff]   ;;  %v6477_v33 = vld [vmem:[#allocation5 + $0xdc4] ss:$16 sps:$4 sm:$0xff]  }
 0x110   :  { %4131 = vmatprep.subr.bf16.mxu1 %v6413_v36  ;;  %v6480_v36 = vld [vmem:[#allocation5 + $0xfc4] ss:$16 sps:$4 sm:$0xff]  }
 0x112   :  { %4091 = vmatpush2.bf16.msra.mxu0 %v6408_v37  ;;  %v6475_v37 = vld [vmem:[#allocation5 + $0xdc0] ss:$16 sps:$4 sm:$0xff]  }
 0x113   :  { %4132 = vmatpush2.bf16.msra.mxu1 %v6411_v41  ;;  %4092 = vmatprep.subr.bf16.mxu0 %v6416_v43  ;;  %v6483_v41 = vld [vmem:[#allocation5 + $0xda4] ss:$16 sps:$4 sm:$0xff]  }
 0x114   :  { %4133 = vmatprep.subr.bf16.mxu1 %v6419_v46  ;;  %v6486_v43 = vld [vmem:[#allocation5 + $0xfa4] ss:$16 sps:$4 sm:$0xff]   ;;  %v6481_v46 = vld [vmem:[#allocation5 + $0xda0] ss:$16 sps:$4 sm:$0xff]  }
 0x116   :  { %4093 = vmatpush2.bf16.msra.mxu0 %v6414_v50  ;;  %v6489_v50 = vld [vmem:[#allocation5 + $0xd84] ss:$16 sps:$4 sm:$0xff]  }
 0x117   :  { %4134 = vmatpush2.bf16.msra.mxu1 %v6417_v51  ;;  %4144 = vmatprep.subr.bf16.mxu0 %v6423_v52  ;;  %v6492_v51 = vld [vmem:[#allocation5 + $0xf84] ss:$16 sps:$4 sm:$0xff]   ;;  %v6487_v52 = vld [vmem:[#allocation5 + $0xd80] ss:$16 sps:$4 sm:$0xff]  }
 0x118   :  { %4185 = vmatprep.subr.bf16.mxu1 %v6426_v53  ;;  %v6490_v53 = vld [vmem:[#allocation5 + $0xf80] ss:$16 sps:$4 sm:$0xff]  }
 0x119   :  { %4095 = vmatmul.mubr.bf16.vlgmr.msra.gmra.mxu0 %v7447_v31 }
 0x11a   :  { %4136 = vmatmul.mubr.bf16.vlgmr.msra.gmra.mxu1 %v7456_v35  ;;  %4145 = vmatpush1.bf16.msra.mxu0 %v6421_v57  ;;  %v6495_v57 = vld [vmem:[#allocation5 + $0xd64] ss:$16 sps:$4 sm:$0xff]  }
 0x11b   :  { %4186 = vmatpush1.bf16.msra.mxu1 %v6424_v58  ;;  %4146 = vmatprep.subr.bf16.mxu0 %v6429_v61  ;;  %v6498_v58 = vld [vmem:[#allocation5 + $0xf64] ss:$16 sps:$4 sm:$0xff]   ;;  %v6493_v61 = vld [vmem:[#allocation5 + $0xd60] ss:$16 sps:$4 sm:$0xff]  }
 0x11c   :  { %4187 = vmatprep.subr.bf16.mxu1 %v6432_v63  ;;  %4176 = vmatprep.mubr.bf16.mxu0 %v7472_v0  ;;  %v6496_v63 = vld [vmem:[#allocation5 + $0xf60] ss:$16 sps:$4 sm:$0xff]  }
 0x11d   :  { %4217 = vmatprep.mubr.bf16.mxu1 %v7476_v1 }
 0x11e   :  { %4147 = vmatpush1.bf16.msra.mxu0 %v6427_v2  ;;  %v6501_v2 = vld [vmem:[#allocation5 + $0xd44] ss:$16 sps:$4 sm:$0xff]  }
 0x11f   :  { %4188 = vmatpush1.bf16.msra.mxu1 %v6430_v3  ;;  %4148 = vmatprep.subr.bf16.mxu0 %v6435_v4  ;;  %v6504_v3 = vld [vmem:[#allocation5 + $0xf44] ss:$16 sps:$4 sm:$0xff]   ;;  %v6499_v4 = vld [vmem:[#allocation5 + $0xd40] ss:$16 sps:$4 sm:$0xff]  }
 0x120   :  { %4189 = vmatprep.subr.bf16.mxu1 %v6438_v5  ;;  %v6502_v5 = vld [vmem:[#allocation5 + $0xf40] ss:$16 sps:$4 sm:$0xff]  }
 0x122   :  { %4149 = vmatpush1.bf16.msra.mxu0 %v6433_v6  ;;  %v6507_v6 = vld [vmem:[#allocation5 + $0xd24] ss:$16 sps:$4 sm:$0xff]  }
 0x123   :  { %4190 = vmatpush1.bf16.msra.mxu1 %v6436_v7  ;;  %4150 = vmatprep.subr.bf16.mxu0 %v6441_v8  ;;  %v6510_v7 = vld [vmem:[#allocation5 + $0xf24] ss:$16 sps:$4 sm:$0xff]   ;;  %v6505_v8 = vld [vmem:[#allocation5 + $0xd20] ss:$16 sps:$4 sm:$0xff]  }
 0x124   :  { %4191 = vmatprep.subr.bf16.mxu1 %v6444_v9  ;;  %v6508_v9 = vld [vmem:[#allocation5 + $0xf20] ss:$16 sps:$4 sm:$0xff]  }
 0x126   :  { %4151 = vmatpush1.bf16.msra.mxu0 %v6439_v10  ;;  %v6513_v10 = vld [vmem:[#allocation5 + $0xd04] ss:$16 sps:$4 sm:$0xff]  }
 0x127   :  { %4192 = vmatpush1.bf16.msra.mxu1 %v6442_v11  ;;  %4152 = vmatprep.subr.bf16.mxu0 %v6447_v12  ;;  %v6516_v11 = vld [vmem:[#allocation5 + $0xf04] ss:$16 sps:$4 sm:$0xff]   ;;  %v6511_v12 = vld [vmem:[#allocation5 + $0xd00] ss:$16 sps:$4 sm:$0xff]  }
 0x128   :  { %4193 = vmatprep.subr.bf16.mxu1 %v6450_v13  ;;  %v6514_v13 = vld [vmem:[#allocation5 + $0xf00] ss:$16 sps:$4 sm:$0xff]  }
 0x12a   :  { %4153 = vmatpush1.bf16.msra.mxu0 %v6445_v14  ;;  %v728_v14 = vld [vmem:[#allocation7] sm:$0xf] }
 0x12b   :  { %4194 = vmatpush1.bf16.msra.mxu1 %v6448_v15  ;;  %4154 = vmatprep.subr.bf16.mxu0 %v6453_v16  ;;  %v732_v15 = vsub.s32 0, %v7407_v42  ;;  %v6520_v16 = vld [vmem:[#allocation5 + $0x10e4] ss:$16 sps:$4 sm:$0xff]  }
 0x12c   :  { %4195 = vmatprep.subr.bf16.mxu1 %v6456_v17  ;;  %v6523_v17 = vld [vmem:[#allocation5 + $0x12e4] ss:$16 sps:$4 sm:$0xff]  }
 0x12e   :  { %4155 = vmatpush1.bf16.msra.mxu0 %v6451_v18  ;;  %v7483_v18 = vld [vmem:[#allocation2 + $0x20] sm:$0x3f] }
 0x12f   :  { %4196 = vmatpush1.bf16.msra.mxu1 %v6454_v19  ;;  %4156 = vmatprep.subr.bf16.mxu0 %v6459_v20  ;;  %v736_v19 = vsub.s32 1, %v7407_v42  ;;  %v7488_v20 = vrot.slane %v7483_v18, %v7410_v49 }
 0x130   :  { %4197 = vmatprep.subr.bf16.mxu1 %v6462_v21  ;;  %v733_v21 = vrot.slane %v728_v14, %v732_v15 }
 0x132   :  { %4157 = vmatpush1.bf16.msra.mxu0 %v6457_v22  ;;  %v6518_v22 = vld [vmem:[#allocation5 + $0x10e0] ss:$16 sps:$4 sm:$0xff]  }
 0x133   :  { %4198 = vmatpush1.bf16.msra.mxu1 %v6460_v23  ;;  %4158 = vmatprep.subr.bf16.mxu0 %v6465_v24  ;;  %v6521_v23 = vld [vmem:[#allocation5 + $0x12e0] ss:$16 sps:$4 sm:$0xff]   ;;  %v6526_v24 = vld [vmem:[#allocation5 + $0x10c4] ss:$16 sps:$4 sm:$0xff]  }
 0x134   :  { %4199 = vmatprep.subr.bf16.mxu1 %v6468_v25  ;;  %v6529_v25 = vld [vmem:[#allocation5 + $0x12c4] ss:$16 sps:$4 sm:$0xff]  }
 0x136   :  { %4159 = vmatpush1.bf16.msra.mxu0 %v6463_v26  ;;  %v737_v26 = vrot.slane %v728_v14, %v736_v19  ;;  %v6559_v14 = vld [vmem:[#allocation5 + $0x1224] ss:$16 sps:$4 sm:$0xff]  }
 0x137   :  { %4200 = vmatpush1.bf16.msra.mxu1 %v6466_v27  ;;  %4160 = vmatprep.subr.bf16.mxu0 %v6471_v28  ;;  %v7496_v27 = vcombine.high %v7488_v20, %v7488_v20 }
 0x138   :  { %4201 = vmatprep.subr.bf16.mxu1 %v6474_v29 }
 0x13a   :  { %4161 = vmatpush2.bf16.msra.mxu0 %v6469_v30  ;;  %v6524_v30 = vld [vmem:[#allocation5 + $0x10c0] ss:$16 sps:$4 sm:$0xff]  }
 0x13b   :  { %4202 = vmatpush2.bf16.msra.mxu1 %v6472_v32  ;;  %4162 = vmatprep.subr.bf16.mxu0 %v6477_v33  ;;  %v6527_v33 = vld [vmem:[#allocation5 + $0x12c0] ss:$16 sps:$4 sm:$0xff]  }
 0x13c   :  { %4203 = vmatprep.subr.bf16.mxu1 %v6480_v36  ;;  %v6532_v36 = vld [vmem:[#allocation5 + $0x10a4] ss:$16 sps:$4 sm:$0xff]  }
 0x13e   :  { %4163 = vmatpush2.bf16.msra.mxu0 %v6475_v37 }
 0x13f   :  { %4204 = vmatpush2.bf16.msra.mxu1 %v6478_v38  ;;  %4164 = vmatprep.subr.bf16.mxu0 %v6483_v41  ;;  %v6535_v41 = vld [vmem:[#allocation5 + $0x12a4] ss:$16 sps:$4 sm:$0xff]  }
 0x140   :  { %4205 = vmatprep.subr.bf16.mxu1 %v6486_v43 }
 0x142   :  { %4165 = vmatpush2.bf16.msra.mxu0 %v6481_v46 }
 0x143   :  { %4206 = vmatpush2.bf16.msra.mxu1 %v6484_v47  ;;  %4166 = vmatprep.subr.bf16.mxu0 %v6489_v50  ;;  %v6530_v47 = vld [vmem:[#allocation5 + $0x10a0] ss:$16 sps:$4 sm:$0xff]   ;;  %v7344_v50 = vmov 0  }
 0x144   :  { %4207 = vmatprep.subr.bf16.mxu1 %v6492_v51 }
 0x146   :  { %4167 = vmatpush2.bf16.msra.mxu0 %v6487_v52 }
 0x147   :  { %4208 = vmatpush2.bf16.msra.mxu1 %v6490_v53  ;;  %4168 = vmatprep.subr.bf16.mxu0 %v6495_v57  ;;  %v6533_v53 = vld [vmem:[#allocation5 + $0x12a0] ss:$16 sps:$4 sm:$0xff]  }
 0x148   :  { %4209 = vmatprep.subr.bf16.mxu1 %v6498_v58 }
 0x14a   :  { %4169 = vmatpush2.bf16.msra.mxu0 %v6493_v61 }
 0x14b   :  { %4210 = vmatpush2.bf16.msra.mxu1 %v6496_v63  ;;  %4170 = vmatprep.subr.bf16.mxu0 %v6501_v2  ;;  %v6538_v63 = vld [vmem:[#allocation5 + $0x1084] ss:$16 sps:$4 sm:$0xff]  }
 0x14c   :  { %4211 = vmatprep.subr.bf16.mxu1 %v6504_v3  ;;  %v6541_v2 = vld [vmem:[#allocation5 + $0x1284] ss:$16 sps:$4 sm:$0xff]   ;;  %v6536_v3 = vld [vmem:[#allocation5 + $0x1080] ss:$16 sps:$4 sm:$0xff]  }
 0x14e   :  { %4171 = vmatpush2.bf16.msra.mxu0 %v6499_v4  ;;  %v6539_v4 = vld [vmem:[#allocation5 + $0x1280] ss:$16 sps:$4 sm:$0xff]  }
 0x14f   :  { %4212 = vmatpush2.bf16.msra.mxu1 %v6502_v5  ;;  %4172 = vmatprep.subr.bf16.mxu0 %v6507_v6  ;;  %v6544_v5 = vld [vmem:[#allocation5 + $0x1064] ss:$16 sps:$4 sm:$0xff]  }
 0x150   :  { %4213 = vmatprep.subr.bf16.mxu1 %v6510_v7  ;;  %v6547_v6 = vld [vmem:[#allocation5 + $0x1264] ss:$16 sps:$4 sm:$0xff]   ;;  %v6542_v7 = vld [vmem:[#allocation5 + $0x1060] ss:$16 sps:$4 sm:$0xff]  }
 0x152   :  { %4173 = vmatpush2.bf16.msra.mxu0 %v6505_v8  ;;  %v6545_v8 = vld [vmem:[#allocation5 + $0x1260] ss:$16 sps:$4 sm:$0xff]  }
 0x153   :  { %4214 = vmatpush2.bf16.msra.mxu1 %v6508_v9  ;;  %4174 = vmatprep.subr.bf16.mxu0 %v6513_v10  ;;  %v6550_v9 = vld [vmem:[#allocation5 + $0x1044] ss:$16 sps:$4 sm:$0xff]  }
 0x154   :  { %4215 = vmatprep.subr.bf16.mxu1 %v6516_v11  ;;  %v6553_v10 = vld [vmem:[#allocation5 + $0x1244] ss:$16 sps:$4 sm:$0xff]   ;;  %v6548_v11 = vld [vmem:[#allocation5 + $0x1040] ss:$16 sps:$4 sm:$0xff]  }
 0x156   :  { %4175 = vmatpush2.bf16.msra.mxu0 %v6511_v12  ;;  %v6551_v12 = vld [vmem:[#allocation5 + $0x1240] ss:$16 sps:$4 sm:$0xff]  }
 0x157   :  { %4216 = vmatpush2.bf16.msra.mxu1 %v6514_v13  ;;  %4226 = vmatprep.subr.bf16.mxu0 %v6520_v16  ;;  %v6556_v13 = vld [vmem:[#allocation5 + $0x1024] ss:$16 sps:$4 sm:$0xff]   ;;  %v6554_v16 = vld [vmem:[#allocation5 + $0x1020] ss:$16 sps:$4 sm:$0xff]  }
 0x158   :  { %4267 = vmatprep.subr.bf16.mxu1 %v6523_v17  ;;  %v6557_v17 = vld [vmem:[#allocation5 + $0x1220] ss:$16 sps:$4 sm:$0xff]  }
 0x159   :  { %v3932_v28 = vpop.f32.mrf.mxu0  ;;  %4177 = vmatmul.mubr.bf16.vlgmr.msra.gmra.mxu0 %v7465_v55 }
 0x15a   :  { %v3973_v29 = vpop.f32.mrf.mxu1  ;;  %4218 = vmatmul.mubr.bf16.vlgmr.msra.gmra.mxu1 %v7468_v56  ;;  %v3933_v32 = vadd.f32 %v3932_v28, %v733_v21  ;;  %4227 = vmatpush1.bf16.msra.mxu0 %v6518_v22  ;;  %v6562_v21 = vld [vmem:[#allocation5 + $0x1004] ss:$16 sps:$4 sm:$0xff]   ;;  %v6572_v28 = vld [vmem:[#allocation5 + $0xec] ss:$16 sps:$4 sm:$0xff]  }
 0x15b   :  { %4268 = vmatpush1.bf16.msra.mxu1 %v6521_v23  ;;  %v3934_v37 = vpop.f32.mrf.mxu0  ;;  %4228 = vmatprep.subr.bf16.mxu0 %v6526_v24  ;;  %v6565_v22 = vld [vmem:[#allocation5 + $0x1204] ss:$16 sps:$4 sm:$0xff]   ;;  %v823_v23 = vcombine.high %v7483_v18, %v7483_v18  ;;  %v6560_v24 = vld [vmem:[#allocation5 + $0x1000] ss:$16 sps:$4 sm:$0xff]  }
 0x15c   :  { %v3975_v38 = vpop.f32.mrf.mxu1  ;;  %4269 = vmatprep.subr.bf16.mxu1 %v6529_v25  ;;  %v7500_v43 = vadd.f32 %v3973_v29, %v3933_v32  ;;  %v3935_v46 = vadd.f32 %v3934_v37, %v737_v26  ;;  %4299 = vmatprep.mubr.bf16.mxu1 %v7344_v50  ;;  %v6563_v25 = vld [vmem:[#allocation5 + $0x1200] ss:$16 sps:$4 sm:$0xff]   ;;  %v6568_v26 = vld [vmem:[#allocation5 + $0x11e4] ss:$16 sps:$4 sm:$0xff]   ;;  %v6576_v37 = vld [vmem:[#allocation5 + $0xc8] ss:$16 sps:$4 sm:$0xff]  }
 0x15d   :  { %4258 = vmatprep.mubr.bf16.mxu0 %v7496_v27  ;;  %v3936_v51 = vpop.f32.mrf.mxu0  ;;  %v6566_v29 = vld [vmem:[#allocation5 + $0x11e0] ss:$16 sps:$4 sm:$0xff]   ;;  %v7509_v32 = vrot.slane %v823_v23, %v7410_v49  ;;  %v6626_v23 = vld [vmem:[#allocation5 + $0x2cc] ss:$16 sps:$4 sm:$0xff]  }
 0x15e   :  { %v3977_v52 = vpop.f32.mrf.mxu1  ;;  %v7504_v57 = vadd.f32 %v3975_v38, %v3935_v46  ;;  %4229 = vmatpush1.bf16.msra.mxu0 %v6524_v30  ;;  %v6570_v30 = vld [vmem:[#allocation5 + $0xe8] ss:$16 sps:$4 sm:$0xff]   ;;  %v6573_v18 = vld [vmem:[#allocation5 + $0x11c0] ss:$16 sps:$4 sm:$0xff]   ;;  %v6581_v38 = vld [vmem:[#allocation5 + $0x11a4] ss:$16 sps:$4 sm:$0xff]  }
 0x15f   :  { %4270 = vmatpush1.bf16.msra.mxu1 %v6527_v33  ;;  %v3937_v58 = vpop.f32.mrf.mxu0  ;;  %4230 = vmatprep.subr.bf16.mxu0 %v6532_v36  ;;  %v6575_v33 = vld [vmem:[#allocation5 + $0x11c4] ss:$16 sps:$4 sm:$0xff]   ;;  %v6578_v36 = vld [vmem:[#allocation5 + $0xcc] ss:$16 sps:$4 sm:$0xff]   ;;  %v6579_v49 = vld [vmem:[#allocation5 + $0x11a0] ss:$16 sps:$4 sm:$0xff]  }
 0x160   :  { %v3978_v61 = vpop.f32.mrf.mxu1  ;;  %4271 = vmatprep.subr.bf16.mxu1 %v6535_v41  ;;  %v6584_v41 = vld [vmem:[#allocation5 + $0xac] ss:$16 sps:$4 sm:$0xff]   ;;  %v6582_v46 = vld [vmem:[#allocation5 + $0xa8] ss:$16 sps:$4 sm:$0xff]   ;;  %v6585_v52 = vld [vmem:[#allocation5 + $0x1180] ss:$16 sps:$4 sm:$0xff]  }
 0x161   :  { %v6590_v51 = vld [vmem:[#allocation5 + $0x8c] ss:$16 sps:$4 sm:$0xff]   ;;  %v6593_v58 = vld [vmem:[#allocation5 + $0x1164] ss:$16 sps:$4 sm:$0xff]  }
 0x162   :  { %4231 = vmatpush1.bf16.msra.mxu0 %v6530_v47  ;;  %v6587_v47 = vld [vmem:[#allocation5 + $0x1184] ss:$16 sps:$4 sm:$0xff]   ;;  %v6596_v61 = vld [vmem:[#allocation5 + $0x6c] ss:$16 sps:$4 sm:$0xff]  }
 0x163   :  { %4272 = vmatpush1.bf16.msra.mxu1 %v6533_v53  ;;  %4232 = vmatprep.subr.bf16.mxu0 %v6538_v63  ;;  %v6588_v53 = vld [vmem:[#allocation5 + $0x88] ss:$16 sps:$4 sm:$0xff]   ;;  %v6591_v63 = vld [vmem:[#allocation5 + $0x1160] ss:$16 sps:$4 sm:$0xff]  }
 0x164   :  { %4273 = vmatprep.subr.bf16.mxu1 %v6541_v2  ;;  %v6599_v2 = vld [vmem:[#allocation5 + $0x1144] ss:$16 sps:$4 sm:$0xff]  }
 0x166   :  { %4233 = vmatpush1.bf16.msra.mxu0 %v6536_v3  ;;  %v6602_v3 = vld [vmem:[#allocation5 + $0x4c] ss:$16 sps:$4 sm:$0xff]  }
 0x167   :  { %4274 = vmatpush1.bf16.msra.mxu1 %v6539_v4  ;;  %4234 = vmatprep.subr.bf16.mxu0 %v6544_v5  ;;  %v6597_v4 = vld [vmem:[#allocation5 + $0x1140] ss:$16 sps:$4 sm:$0xff]   ;;  %v6600_v5 = vld [vmem:[#allocation5 + $0x48] ss:$16 sps:$4 sm:$0xff]  }
 0x168   :  { %4275 = vmatprep.subr.bf16.mxu1 %v6547_v6  ;;  %v6605_v6 = vld [vmem:[#allocation5 + $0x1124] ss:$16 sps:$4 sm:$0xff]  }
 0x16a   :  { %4235 = vmatpush1.bf16.msra.mxu0 %v6542_v7  ;;  %v6608_v7 = vld [vmem:[#allocation5 + $0x2c] ss:$16 sps:$4 sm:$0xff]  }
 0x16b   :  { %4276 = vmatpush1.bf16.msra.mxu1 %v6545_v8  ;;  %4236 = vmatprep.subr.bf16.mxu0 %v6550_v9  ;;  %v6603_v8 = vld [vmem:[#allocation5 + $0x1120] ss:$16 sps:$4 sm:$0xff]   ;;  %v6606_v9 = vld [vmem:[#allocation5 + $0x28] ss:$16 sps:$4 sm:$0xff]  }
 0x16c   :  { %4277 = vmatprep.subr.bf16.mxu1 %v6553_v10  ;;  %v6611_v10 = vld [vmem:[#allocation5 + $0x1104] ss:$16 sps:$4 sm:$0xff]  }
 0x16e   :  { %4237 = vmatpush1.bf16.msra.mxu0 %v6548_v11  ;;  %v6614_v11 = vld [vmem:[#allocation5 + $0xc] ss:$16 sps:$4 sm:$0xff]  }
 0x16f   :  { %4278 = vmatpush1.bf16.msra.mxu1 %v6551_v12  ;;  %4238 = vmatprep.subr.bf16.mxu0 %v6556_v13  ;;  %v6609_v12 = vld [vmem:[#allocation5 + $0x1100] ss:$16 sps:$4 sm:$0xff]   ;;  %v6612_v13 = vld [vmem:[#allocation5 + $0x8] ss:$16 sps:$4 sm:$0xff]  }
 0x170   :  { %4279 = vmatprep.subr.bf16.mxu1 %v6559_v14  ;;  %v6617_v14 = vld [vmem:[#allocation5 + $0x1ec] ss:$16 sps:$4 sm:$0xff]  }
 0x172   :  { %4239 = vmatpush1.bf16.msra.mxu0 %v6554_v16  ;;  %v6620_v16 = vld [vmem:[#allocation5 + $0x2ec] ss:$16 sps:$4 sm:$0xff]  }
 0x173   :  { %4280 = vmatpush1.bf16.msra.mxu1 %v6557_v17  ;;  %4240 = vmatprep.subr.bf16.mxu0 %v6562_v21  ;;  %v6615_v17 = vld [vmem:[#allocation5 + $0x1e8] ss:$16 sps:$4 sm:$0xff]  }
 0x174   :  { %4281 = vmatprep.subr.bf16.mxu1 %v6565_v22  ;;  %v6618_v21 = vld [vmem:[#allocation5 + $0x2e8] ss:$16 sps:$4 sm:$0xff]   ;;  %v6623_v22 = vld [vmem:[#allocation5 + $0x1cc] ss:$16 sps:$4 sm:$0xff]  }
 0x176   :  { %4241 = vmatpush1.bf16.msra.mxu0 %v6560_v24  ;;  %v6621_v24 = vld [vmem:[#allocation5 + $0x1c8] ss:$16 sps:$4 sm:$0xff]  }
 0x177   :  { %4282 = vmatpush1.bf16.msra.mxu1 %v6563_v25  ;;  %4242 = vmatprep.subr.bf16.mxu0 %v6568_v26  ;;  %v6624_v25 = vld [vmem:[#allocation5 + $0x2c8] ss:$16 sps:$4 sm:$0xff]  }
 0x178   :  { %4308 = vmatprep.subr.bf16.mxu1 %v6572_v28 }
 0x17a   :  { %4300 = vmatmul.mubr.bf16.vlgmr.msra.gmra.mxu1 %v7509_v32  ;;  %4243 = vmatpush2.bf16.msra.mxu0 %v6566_v29 }
 0x17b   :  { %4309 = vmatpush1.bf16.msra.mxu1 %v6570_v30  ;;  %4244 = vmatprep.subr.bf16.mxu0 %v6575_v33 }
 0x17c   :  { %4310 = vmatprep.subr.bf16.mxu1 %v6578_v36  ;;  %4340 = vmatprep.mubr.bf16.mxu1 %v7417_v59  ;;  %v6594_v59 = vld [vmem:[#allocation5 + $0x68] ss:$16 sps:$4 sm:$0xff]   ;;  %v6629_v36 = vld [vmem:[#allocation5 + $0x1ac] ss:$16 sps:$4 sm:$0xff]  }
 0x17e   :  { %4245 = vmatpush2.bf16.msra.mxu0 %v6573_v18  ;;  %v6632_v18 = vld [vmem:[#allocation5 + $0x2ac] ss:$16 sps:$4 sm:$0xff]  }
 0x17f   :  { %4311 = vmatpush1.bf16.msra.mxu1 %v6576_v37  ;;  %4246 = vmatprep.subr.bf16.mxu0 %v6581_v38 }
 0x180   :  { %4312 = vmatprep.subr.bf16.mxu1 %v6584_v41  ;;  %v6627_v41 = vld [vmem:[#allocation5 + $0x1a8] ss:$16 sps:$4 sm:$0xff]  }
 0x182   :  { %4247 = vmatpush2.bf16.msra.mxu0 %v6579_v49  ;;  %v6630_v49 = vld [vmem:[#allocation5 + $0x2a8] ss:$16 sps:$4 sm:$0xff]  }
 0x183   :  { %4313 = vmatpush1.bf16.msra.mxu1 %v6582_v46  ;;  %4248 = vmatprep.subr.bf16.mxu0 %v6587_v47 }
 0x184   :  { %4314 = vmatprep.subr.bf16.mxu1 %v6590_v51 }
 0x186   :  { %4249 = vmatpush2.bf16.msra.mxu0 %v6585_v52 }
 0x187   :  { %4315 = vmatpush1.bf16.msra.mxu1 %v6588_v53  ;;  %4250 = vmatprep.subr.bf16.mxu0 %v6593_v58  ;;  %v6635_v53 = vld [vmem:[#allocation5 + $0x18c] ss:$16 sps:$4 sm:$0xff]  }
 0x188   :  { %4316 = vmatprep.subr.bf16.mxu1 %v6596_v61  ;;  %v6638_v58 = vld [vmem:[#allocation5 + $0x28c] ss:$16 sps:$4 sm:$0xff]   ;;  %v6633_v61 = vld [vmem:[#allocation5 + $0x188] ss:$16 sps:$4 sm:$0xff]  }
 0x18a   :  { %4251 = vmatpush2.bf16.msra.mxu0 %v6591_v63  ;;  %v6641_v63 = vld [vmem:[#allocation5 + $0x16c] ss:$16 sps:$4 sm:$0xff]  }
 0x18b   :  { %4317 = vmatpush1.bf16.msra.mxu1 %v6594_v59  ;;  %4252 = vmatprep.subr.bf16.mxu0 %v6599_v2  ;;  %v6639_v59 = vld [vmem:[#allocation5 + $0x168] ss:$16 sps:$4 sm:$0xff]  }
 0x18c   :  { %4318 = vmatprep.subr.bf16.mxu1 %v6602_v3  ;;  %v6642_v2 = vld [vmem:[#allocation5 + $0x268] ss:$16 sps:$4 sm:$0xff]   ;;  %v6647_v3 = vld [vmem:[#allocation5 + $0x14c] ss:$16 sps:$4 sm:$0xff]  }
 0x18e   :  { %4253 = vmatpush2.bf16.msra.mxu0 %v6597_v4  ;;  %v6650_v4 = vld [vmem:[#allocation5 + $0x24c] ss:$16 sps:$4 sm:$0xff]  }
 0x18f   :  { %4319 = vmatpush1.bf16.msra.mxu1 %v6600_v5  ;;  %4254 = vmatprep.subr.bf16.mxu0 %v6605_v6  ;;  %v6645_v5 = vld [vmem:[#allocation5 + $0x148] ss:$16 sps:$4 sm:$0xff]  }
 0x190   :  { %4320 = vmatprep.subr.bf16.mxu1 %v6608_v7  ;;  %v6648_v6 = vld [vmem:[#allocation5 + $0x248] ss:$16 sps:$4 sm:$0xff]   ;;  %v6653_v7 = vld [vmem:[#allocation5 + $0x12c] ss:$16 sps:$4 sm:$0xff]  }
 0x192   :  { %4255 = vmatpush2.bf16.msra.mxu0 %v6603_v8  ;;  %v6656_v8 = vld [vmem:[#allocation5 + $0x22c] ss:$16 sps:$4 sm:$0xff]  }
 0x193   :  { %4321 = vmatpush1.bf16.msra.mxu1 %v6606_v9  ;;  %4256 = vmatprep.subr.bf16.mxu0 %v6611_v10  ;;  %v6651_v9 = vld [vmem:[#allocation5 + $0x128] ss:$16 sps:$4 sm:$0xff]  }
 0x194   :  { %4322 = vmatprep.subr.bf16.mxu1 %v6614_v11  ;;  %v6654_v10 = vld [vmem:[#allocation5 + $0x228] ss:$16 sps:$4 sm:$0xff]   ;;  %v6659_v11 = vld [vmem:[#allocation5 + $0x10c] ss:$16 sps:$4 sm:$0xff]  }
 0x196   :  { %4257 = vmatpush2.bf16.msra.mxu0 %v6609_v12  ;;  %v6662_v12 = vld [vmem:[#allocation5 + $0x20c] ss:$16 sps:$4 sm:$0xff]  }
 0x197   :  { %4323 = vmatpush1.bf16.msra.mxu1 %v6612_v13  ;;  %4349 = vmatprep.subr.bf16.mxu0 %v6620_v16  ;;  %v6657_v13 = vld [vmem:[#allocation5 + $0x108] ss:$16 sps:$4 sm:$0xff]   ;;  %v6665_v16 = vld [vmem:[#allocation5 + $0x3ec] ss:$16 sps:$4 sm:$0xff]  }
 0x198   :  { %4324 = vmatprep.subr.bf16.mxu1 %v6617_v14  ;;  %v6660_v14 = vld [vmem:[#allocation5 + $0x208] ss:$16 sps:$4 sm:$0xff]  }
 0x199   :  { %v4014_v26 = vpop.f32.mrf.mxu0  ;;  %4259 = vmatmul.mubr.bf16.vlgmr.msra.gmra.mxu0 %v7488_v20 }
 0x19a   :  { %v4055_v28 = vpop.f32.mrf.mxu1  ;;  %v4015_v29 = vadd.f32 %v4014_v26, %v7500_v43  ;;  %4350 = vmatpush1.bf16.msra.mxu0 %v6618_v21  ;;  %4381 = vmatprep.mubr.bf16.mxu0 %v7425_v62  ;;  %v6644_v62 = vld [vmem:[#allocation5 + $0x26c] ss:$16 sps:$4 sm:$0xff]   ;;  %v6663_v21 = vld [vmem:[#allocation5 + $0x3e8] ss:$16 sps:$4 sm:$0xff]  }
 0x19b   :  { %4325 = vmatpush2.bf16.msra.mxu1 %v6615_v17  ;;  %v4016_v30 = vpop.f32.mrf.mxu0  ;;  %4351 = vmatprep.subr.bf16.mxu0 %v6626_v23  ;;  %v6668_v17 = vld [vmem:[#allocation5 + $0x4ec] ss:$16 sps:$4 sm:$0xff]   ;;  %v6672_v26 = vld [vmem:[#allocation5 + $0x4c8] ss:$16 sps:$4 sm:$0xff]  }
 0x19c   :  { %v4057_v33 = vpop.f32.mrf.mxu1  ;;  %4326 = vmatprep.subr.bf16.mxu1 %v6623_v22  ;;  %v7515_v37 = vadd.f32 %v4055_v28, %v4015_v29  ;;  %v4017_v38 = vadd.f32 %v4016_v30, %v7504_v57  ;;  %v6636_v57 = vld [vmem:[#allocation5 + $0x288] ss:$16 sps:$4 sm:$0xff]   ;;  %v6671_v23 = vld [vmem:[#allocation5 + $0x3cc] ss:$16 sps:$4 sm:$0xff]  }
 0x19d   :  { %v4018_v46 = vpop.f32.mrf.mxu0  ;;  %v6666_v22 = vld [vmem:[#allocation5 + $0x4e8] ss:$16 sps:$4 sm:$0xff]   ;;  %v6677_v28 = vld [vmem:[#allocation5 + $0x3ac] ss:$16 sps:$4 sm:$0xff]  }
 0x19e   :  { %v4059_v47 = vpop.f32.mrf.mxu1  ;;  %v7519_v51 = vadd.f32 %v4057_v33, %v4017_v38  ;;  %4352 = vmatpush1.bf16.msra.mxu0 %v6624_v25  ;;  %v6669_v25 = vld [vmem:[#allocation5 + $0x3c8] ss:$16 sps:$4 sm:$0xff]   ;;  %v6680_v29 = vld [vmem:[#allocation5 + $0x4ac] ss:$16 sps:$4 sm:$0xff]  }
 0x19f   :  { %4327 = vmatpush2.bf16.msra.mxu1 %v6621_v24  ;;  %v4019_v43 = vpop.f32.mrf.mxu0  ;;  %4353 = vmatprep.subr.bf16.mxu0 %v6632_v18  ;;  %v6674_v24 = vld [vmem:[#allocation5 + $0x4cc] ss:$16 sps:$4 sm:$0xff]   ;;  %v6675_v30 = vld [vmem:[#allocation5 + $0x3a8] ss:$16 sps:$4 sm:$0xff]  }
 0x1a0   :  { %v4060_v52 = vpop.f32.mrf.mxu1  ;;  %4328 = vmatprep.subr.bf16.mxu1 %v6629_v36  ;;  %v6678_v33 = vld [vmem:[#allocation5 + $0x4a8] ss:$16 sps:$4 sm:$0xff]   ;;  %v6683_v36 = vld [vmem:[#allocation5 + $0x38c] ss:$16 sps:$4 sm:$0xff]  }
 0x1a1   :  { %v6686_v18 = vld [vmem:[#allocation5 + $0x48c] ss:$16 sps:$4 sm:$0xff]   ;;  %v6681_v38 = vld [vmem:[#allocation5 + $0x388] ss:$16 sps:$4 sm:$0xff]  }
 0x1a2   :  { %4354 = vmatpush1.bf16.msra.mxu0 %v6630_v49  ;;  %v6692_v49 = vld [vmem:[#allocation5 + $0x46c] ss:$16 sps:$4 sm:$0xff]   ;;  %v6687_v46 = vld [vmem:[#allocation5 + $0x368] ss:$16 sps:$4 sm:$0xff]  }
 0x1a3   :  { %4329 = vmatpush2.bf16.msra.mxu1 %v6627_v41  ;;  %4355 = vmatprep.subr.bf16.mxu0 %v6638_v58  ;;  %v6689_v41 = vld [vmem:[#allocation5 + $0x36c] ss:$16 sps:$4 sm:$0xff]   ;;  %v6690_v47 = vld [vmem:[#allocation5 + $0x468] ss:$16 sps:$4 sm:$0xff]  }
 0x1a4   :  { %4330 = vmatprep.subr.bf16.mxu1 %v6635_v53  ;;  %v6698_v43 = vld [vmem:[#allocation5 + $0x44c] ss:$16 sps:$4 sm:$0xff]   ;;  %v6693_v52 = vld [vmem:[#allocation5 + $0x348] ss:$16 sps:$4 sm:$0xff]  }
 0x1a5   :  { %v6696_v53 = vld [vmem:[#allocation5 + $0x448] ss:$16 sps:$4 sm:$0xff]   ;;  %v6701_v58 = vld [vmem:[#allocation5 + $0x32c] ss:$16 sps:$4 sm:$0xff]  }
 0x1a6   :  { %4356 = vmatpush1.bf16.msra.mxu0 %v6636_v57  ;;  %v6699_v57 = vld [vmem:[#allocation5 + $0x328] ss:$16 sps:$4 sm:$0xff]  }
 0x1a7   :  { %4331 = vmatpush2.bf16.msra.mxu1 %v6633_v61  ;;  %4357 = vmatprep.subr.bf16.mxu0 %v6644_v62  ;;  %v6704_v61 = vld [vmem:[#allocation5 + $0x42c] ss:$16 sps:$4 sm:$0xff]  }
 0x1a8   :  { %4332 = vmatprep.subr.bf16.mxu1 %v6641_v63  ;;  %v6702_v63 = vld [vmem:[#allocation5 + $0x428] ss:$16 sps:$4 sm:$0xff]   ;;  %v6707_v62 = vld [vmem:[#allocation5 + $0x30c] ss:$16 sps:$4 sm:$0xff]  }
 0x1aa   :  { %4358 = vmatpush1.bf16.msra.mxu0 %v6642_v2  ;;  %v6705_v2 = vld [vmem:[#allocation5 + $0x308] ss:$16 sps:$4 sm:$0xff]  }
 0x1ab   :  { %4333 = vmatpush2.bf16.msra.mxu1 %v6639_v59  ;;  %4359 = vmatprep.subr.bf16.mxu0 %v6650_v4  ;;  %v6710_v59 = vld [vmem:[#allocation5 + $0x40c] ss:$16 sps:$4 sm:$0xff]  }
 0x1ac   :  { %4334 = vmatprep.subr.bf16.mxu1 %v6647_v3  ;;  %v6708_v3 = vld [vmem:[#allocation5 + $0x408] ss:$16 sps:$4 sm:$0xff]   ;;  %v6713_v4 = vld [vmem:[#allocation5 + $0x5ec] ss:$16 sps:$4 sm:$0xff]  }
 0x1ae   :  { %4360 = vmatpush1.bf16.msra.mxu0 %v6648_v6  ;;  %v6711_v6 = vld [vmem:[#allocation5 + $0x5e8] ss:$16 sps:$4 sm:$0xff]  }
 0x1af   :  { %4335 = vmatpush2.bf16.msra.mxu1 %v6645_v5  ;;  %4361 = vmatprep.subr.bf16.mxu0 %v6656_v8  ;;  %v6716_v5 = vld [vmem:[#allocation5 + $0x6ec] ss:$16 sps:$4 sm:$0xff]  }
 0x1b0   :  { %4336 = vmatprep.subr.bf16.mxu1 %v6653_v7  ;;  %v6714_v7 = vld [vmem:[#allocation5 + $0x6e8] ss:$16 sps:$4 sm:$0xff]   ;;  %v6719_v8 = vld [vmem:[#allocation5 + $0x5cc] ss:$16 sps:$4 sm:$0xff]  }
 0x1b2   :  { %4362 = vmatpush1.bf16.msra.mxu0 %v6654_v10  ;;  %v6717_v10 = vld [vmem:[#allocation5 + $0x5c8] ss:$16 sps:$4 sm:$0xff]  }
 0x1b3   :  { %4337 = vmatpush2.bf16.msra.mxu1 %v6651_v9  ;;  %4363 = vmatprep.subr.bf16.mxu0 %v6662_v12  ;;  %v6722_v9 = vld [vmem:[#allocation5 + $0x6cc] ss:$16 sps:$4 sm:$0xff]  }
 0x1b4   :  { %4338 = vmatprep.subr.bf16.mxu1 %v6659_v11  ;;  %v6720_v11 = vld [vmem:[#allocation5 + $0x6c8] ss:$16 sps:$4 sm:$0xff]  }
 0x1b6   :  { %4364 = vmatpush1.bf16.msra.mxu0 %v6660_v14 }
 0x1b7   :  { %4339 = vmatpush2.bf16.msra.mxu1 %v6657_v13  ;;  %4365 = vmatprep.subr.bf16.mxu0 %v6665_v16 }
 0x1b8   :  { %4390 = vmatprep.subr.bf16.mxu1 %v6668_v17 }
 0x1ba   :  { %4341 = vmatmul.mubr.bf16.vlgmr.msra.gmra.mxu1 %v7413_v54  ;;  %4366 = vmatpush2.bf16.msra.mxu0 %v6663_v21  ;;  %v6684_v54 = vld [vmem:[#allocation5 + $0x488] ss:$16 sps:$4 sm:$0xff]   ;;  %v6725_v21 = vld [vmem:[#allocation5 + $0x5ac] ss:$16 sps:$4 sm:$0xff]  }
 0x1bb   :  { %4391 = vmatpush1.bf16.msra.mxu1 %v6666_v22  ;;  %4367 = vmatprep.subr.bf16.mxu0 %v6671_v23  ;;  %v6728_v22 = vld [vmem:[#allocation5 + $0x6ac] ss:$16 sps:$4 sm:$0xff]  }
 0x1bc   :  { %4392 = vmatprep.subr.bf16.mxu1 %v6674_v24  ;;  %4422 = vmatprep.mubr.bf16.mxu1 %v7435_v44  ;;  %v6695_v44 = vld [vmem:[#allocation5 + $0x34c] ss:$16 sps:$4 sm:$0xff]  }
 0x1be   :  { %4368 = vmatpush2.bf16.msra.mxu0 %v6669_v25  ;;  %v6723_v25 = vld [vmem:[#allocation5 + $0x5a8] ss:$16 sps:$4 sm:$0xff]  }
 0x1bf   :  { %4393 = vmatpush1.bf16.msra.mxu1 %v6672_v26  ;;  %4369 = vmatprep.subr.bf16.mxu0 %v6677_v28  ;;  %v6726_v26 = vld [vmem:[#allocation5 + $0x6a8] ss:$16 sps:$4 sm:$0xff]  }
 0x1c0   :  { %4394 = vmatprep.subr.bf16.mxu1 %v6680_v29 }
 0x1c2   :  { %4370 = vmatpush2.bf16.msra.mxu0 %v6675_v30 }
 0x1c3   :  { %4395 = vmatpush1.bf16.msra.mxu1 %v6678_v33  ;;  %4371 = vmatprep.subr.bf16.mxu0 %v6683_v36  ;;  %v6731_v33 = vld [vmem:[#allocation5 + $0x58c] ss:$16 sps:$4 sm:$0xff]  }
 0x1c4   :  { %4396 = vmatprep.subr.bf16.mxu1 %v6686_v18  ;;  %v6734_v36 = vld [vmem:[#allocation5 + $0x68c] ss:$16 sps:$4 sm:$0xff]   ;;  %v6729_v18 = vld [vmem:[#allocation5 + $0x588] ss:$16 sps:$4 sm:$0xff]  }
 0x1c6   :  { %4372 = vmatpush2.bf16.msra.mxu0 %v6681_v38  ;;  %v6737_v38 = vld [vmem:[#allocation5 + $0x56c] ss:$16 sps:$4 sm:$0xff]  }
 0x1c7   :  { %4397 = vmatpush1.bf16.msra.mxu1 %v6684_v54  ;;  %4373 = vmatprep.subr.bf16.mxu0 %v6689_v41  ;;  %v6735_v54 = vld [vmem:[#allocation5 + $0x568] ss:$16 sps:$4 sm:$0xff]  }
 0x1c8   :  { %4398 = vmatprep.subr.bf16.mxu1 %v6692_v49  ;;  %v6738_v41 = vld [vmem:[#allocation5 + $0x668] ss:$16 sps:$4 sm:$0xff]   ;;  %v6743_v49 = vld [vmem:[#allocation5 + $0x54c] ss:$16 sps:$4 sm:$0xff]  }
 0x1ca   :  { %4374 = vmatpush2.bf16.msra.mxu0 %v6687_v46  ;;  %v6746_v46 = vld [vmem:[#allocation5 + $0x64c] ss:$16 sps:$4 sm:$0xff]  }
 0x1cb   :  { %4399 = vmatpush1.bf16.msra.mxu1 %v6690_v47  ;;  %4375 = vmatprep.subr.bf16.mxu0 %v6695_v44  ;;  %v6741_v47 = vld [vmem:[#allocation5 + $0x548] ss:$16 sps:$4 sm:$0xff]  }
 0x1cc   :  { %4400 = vmatprep.subr.bf16.mxu1 %v6698_v43  ;;  %v6744_v44 = vld [vmem:[#allocation5 + $0x648] ss:$16 sps:$4 sm:$0xff]   ;;  %v6749_v43 = vld [vmem:[#allocation5 + $0x52c] ss:$16 sps:$4 sm:$0xff]  }
 0x1ce   :  { %4376 = vmatpush2.bf16.msra.mxu0 %v6693_v52  ;;  %v6752_v52 = vld [vmem:[#allocation5 + $0x62c] ss:$16 sps:$4 sm:$0xff]  }
 0x1cf   :  { %4401 = vmatpush1.bf16.msra.mxu1 %v6696_v53  ;;  %4377 = vmatprep.subr.bf16.mxu0 %v6701_v58  ;;  %v6747_v53 = vld [vmem:[#allocation5 + $0x528] ss:$16 sps:$4 sm:$0xff]  }
 0x1d0   :  { %4402 = vmatprep.subr.bf16.mxu1 %v6704_v61  ;;  %v6750_v58 = vld [vmem:[#allocation5 + $0x628] ss:$16 sps:$4 sm:$0xff]   ;;  %v6755_v61 = vld [vmem:[#allocation5 + $0x50c] ss:$16 sps:$4 sm:$0xff]  }
 0x1d2   :  { %4378 = vmatpush2.bf16.msra.mxu0 %v6699_v57  ;;  %v6758_v57 = vld [vmem:[#allocation5 + $0x60c] ss:$16 sps:$4 sm:$0xff]  }
 0x1d3   :  { %4403 = vmatpush1.bf16.msra.mxu1 %v6702_v63  ;;  %4379 = vmatprep.subr.bf16.mxu0 %v6707_v62  ;;  %v6753_v63 = vld [vmem:[#allocation5 + $0x508] ss:$16 sps:$4 sm:$0xff]  }
 0x1d4   :  { %4404 = vmatprep.subr.bf16.mxu1 %v6710_v59  ;;  %v6756_v62 = vld [vmem:[#allocation5 + $0x608] ss:$16 sps:$4 sm:$0xff]   ;;  %v6761_v59 = vld [vmem:[#allocation5 + $0x7ec] ss:$16 sps:$4 sm:$0xff]  }
 0x1d6   :  { %4380 = vmatpush2.bf16.msra.mxu0 %v6705_v2  ;;  %v6764_v2 = vld [vmem:[#allocation5 + $0x8ec] ss:$16 sps:$4 sm:$0xff]  }
 0x1d7   :  { %4405 = vmatpush1.bf16.msra.mxu1 %v6708_v3  ;;  %4431 = vmatprep.subr.bf16.mxu0 %v6716_v5  ;;  %v6759_v3 = vld [vmem:[#allocation5 + $0x7e8] ss:$16 sps:$4 sm:$0xff]   ;;  %v6767_v5 = vld [vmem:[#allocation5 + $0x7cc] ss:$16 sps:$4 sm:$0xff]  }
 0x1d8   :  { %4406 = vmatprep.subr.bf16.mxu1 %v6713_v4  ;;  %v6762_v4 = vld [vmem:[#allocation5 + $0x8e8] ss:$16 sps:$4 sm:$0xff]  }
 0x1d9   :  { %v4096_v12 = vpop.f32.mrf.mxu0  ;;  %4382 = vmatmul.mubr.bf16.vlgmr.msra.gmra.mxu0 %v7420_v60 }
 0x1da   :  { %v4137_v13 = vpop.f32.mrf.mxu1  ;;  %v4097_v14 = vadd.f32 %v4096_v12, %v7515_v37  ;;  %4432 = vmatpush1.bf16.msra.mxu0 %v6714_v7  ;;  %4463 = vmatprep.mubr.bf16.mxu0 %v7443_v48  ;;  %v6740_v48 = vld [vmem:[#allocation5 + $0x66c] ss:$16 sps:$4 sm:$0xff]   ;;  %v6765_v7 = vld [vmem:[#allocation5 + $0x7c8] ss:$16 sps:$4 sm:$0xff]  }
 0x1db   :  { %4407 = vmatpush2.bf16.msra.mxu1 %v6711_v6  ;;  %v4098_v16 = vpop.f32.mrf.mxu0  ;;  %4433 = vmatprep.subr.bf16.mxu0 %v6722_v9  ;;  %v6770_v6 = vld [vmem:[#allocation5 + $0x8cc] ss:$16 sps:$4 sm:$0xff]   ;;  %v6774_v12 = vld [vmem:[#allocation5 + $0x8a8] ss:$16 sps:$4 sm:$0xff]  }
 0x1dc   :  { %v4139_v17 = vpop.f32.mrf.mxu1  ;;  %4408 = vmatprep.subr.bf16.mxu1 %v6719_v8  ;;  %v7525_v23 = vadd.f32 %v4137_v13, %v4097_v14  ;;  %v4099_v24 = vadd.f32 %v4098_v16, %v7519_v51  ;;  %v6732_v51 = vld [vmem:[#allocation5 + $0x688] ss:$16 sps:$4 sm:$0xff]   ;;  %v6773_v9 = vld [vmem:[#allocation5 + $0x7ac] ss:$16 sps:$4 sm:$0xff]  }
 0x1dd   :  { %v4100_v28 = vpop.f32.mrf.mxu0  ;;  %v6768_v8 = vld [vmem:[#allocation5 + $0x8c8] ss:$16 sps:$4 sm:$0xff]   ;;  %v6779_v13 = vld [vmem:[#allocation5 + $0x78c] ss:$16 sps:$4 sm:$0xff]  }
 0x1de   :  { %v4141_v60 = vpop.f32.mrf.mxu1  ;;  %v7529_v29 = vadd.f32 %v4139_v17, %v4099_v24  ;;  %4434 = vmatpush1.bf16.msra.mxu0 %v6720_v11  ;;  %v6771_v11 = vld [vmem:[#allocation5 + $0x7a8] ss:$16 sps:$4 sm:$0xff]   ;;  %v6782_v14 = vld [vmem:[#allocation5 + $0x88c] ss:$16 sps:$4 sm:$0xff]  }
 0x1df   :  { %4409 = vmatpush2.bf16.msra.mxu1 %v6717_v10  ;;  %v4101_v37 = vpop.f32.mrf.mxu0  ;;  %4435 = vmatprep.subr.bf16.mxu0 %v6728_v22  ;;  %v6776_v10 = vld [vmem:[#allocation5 + $0x8ac] ss:$16 sps:$4 sm:$0xff]   ;;  %v6780_v16 = vld [vmem:[#allocation5 + $0x888] ss:$16 sps:$4 sm:$0xff]  }
 0x1e0   :  { %v4142_v30 = vpop.f32.mrf.mxu1  ;;  %4410 = vmatprep.subr.bf16.mxu1 %v6725_v21  ;;  %v6785_v17 = vld [vmem:[#allocation5 + $0x76c] ss:$16 sps:$4 sm:$0xff]   ;;  %v6783_v22 = vld [vmem:[#allocation5 + $0x768] ss:$16 sps:$4 sm:$0xff]  }
 0x1e1   :  { %v6788_v21 = vld [vmem:[#allocation5 + $0x86c] ss:$16 sps:$4 sm:$0xff]   ;;  %v6792_v28 = vld [vmem:[#allocation5 + $0x848] ss:$16 sps:$4 sm:$0xff]  }
 0x1e2   :  { %4436 = vmatpush1.bf16.msra.mxu0 %v6726_v26  ;;  %v6791_v24 = vld [vmem:[#allocation5 + $0x74c] ss:$16 sps:$4 sm:$0xff]   ;;  %v6789_v26 = vld [vmem:[#allocation5 + $0x748] ss:$16 sps:$4 sm:$0xff]  }
 0x1e3   :  { %4411 = vmatpush2.bf16.msra.mxu1 %v6723_v25  ;;  %4437 = vmatprep.subr.bf16.mxu0 %v6734_v36  ;;  %v6794_v25 = vld [vmem:[#allocation5 + $0x84c] ss:$16 sps:$4 sm:$0xff]   ;;  %v6795_v30 = vld [vmem:[#allocation5 + $0x728] ss:$16 sps:$4 sm:$0xff]  }
 0x1e4   :  { %4412 = vmatprep.subr.bf16.mxu1 %v6731_v33  ;;  %v6797_v60 = vld [vmem:[#allocation5 + $0x72c] ss:$16 sps:$4 sm:$0xff]   ;;  %v6798_v33 = vld [vmem:[#allocation5 + $0x828] ss:$16 sps:$4 sm:$0xff]  }
 0x1e5   :  { %v6800_v37 = vld [vmem:[#allocation5 + $0x82c] ss:$16 sps:$4 sm:$0xff]  }
 0x1e6   :  { %4438 = vmatpush1.bf16.msra.mxu0 %v6732_v51  ;;  %v6803_v36 = vld [vmem:[#allocation5 + $0x70c] ss:$16 sps:$4 sm:$0xff]   ;;  %v6801_v51 = vld [vmem:[#allocation5 + $0x708] ss:$16 sps:$4 sm:$0xff]  }
 0x1e7   :  { %4413 = vmatpush2.bf16.msra.mxu1 %v6729_v18  ;;  %4439 = vmatprep.subr.bf16.mxu0 %v6740_v48  ;;  %v6806_v18 = vld [vmem:[#allocation5 + $0x80c] ss:$16 sps:$4 sm:$0xff]  }
 0x1e8   :  { %4414 = vmatprep.subr.bf16.mxu1 %v6737_v38  ;;  %v6804_v38 = vld [vmem:[#allocation5 + $0x808] ss:$16 sps:$4 sm:$0xff]   ;;  %v6809_v48 = vld [vmem:[#allocation5 + $0x9ec] ss:$16 sps:$4 sm:$0xff]  }
 0x1ea   :  { %4440 = vmatpush1.bf16.msra.mxu0 %v6738_v41  ;;  %v6807_v41 = vld [vmem:[#allocation5 + $0x9e8] ss:$16 sps:$4 sm:$0xff]  }
 0x1eb   :  { %4415 = vmatpush2.bf16.msra.mxu1 %v6735_v54  ;;  %4441 = vmatprep.subr.bf16.mxu0 %v6746_v46  ;;  %v6812_v54 = vld [vmem:[#allocation5 + $0xaec] ss:$16 sps:$4 sm:$0xff]  }
 0x1ec   :  { %4416 = vmatprep.subr.bf16.mxu1 %v6743_v49  ;;  %v6810_v49 = vld [vmem:[#allocation5 + $0xae8] ss:$16 sps:$4 sm:$0xff]   ;;  %v6815_v46 = vld [vmem:[#allocation5 + $0x9cc] ss:$16 sps:$4 sm:$0xff]  }
 0x1ee   :  { %4442 = vmatpush1.bf16.msra.mxu0 %v6744_v44 }
 0x1ef   :  { %4417 = vmatpush2.bf16.msra.mxu1 %v6741_v47  ;;  %4443 = vmatprep.subr.bf16.mxu0 %v6752_v52  ;;  %v6818_v47 = vld [vmem:[#allocation5 + $0xacc] ss:$16 sps:$4 sm:$0xff]  }
 0x1f0   :  { %4418 = vmatprep.subr.bf16.mxu1 %v6749_v43 }
 0x1f2   :  { %4444 = vmatpush1.bf16.msra.mxu0 %v6750_v58  ;;  %v6816_v58 = vld [vmem:[#allocation5 + $0xac8] ss:$16 sps:$4 sm:$0xff]  }
 0x1f3   :  { %4419 = vmatpush2.bf16.msra.mxu1 %v6747_v53  ;;  %4445 = vmatprep.subr.bf16.mxu0 %v6758_v57  ;;  %v6813_v53 = vld [vmem:[#allocation5 + $0x9c8] ss:$16 sps:$4 sm:$0xff]  }
 0x1f4   :  { %4420 = vmatprep.subr.bf16.mxu1 %v6755_v61 }
 0x1f6   :  { %4446 = vmatpush1.bf16.msra.mxu0 %v6756_v62  ;;  %v6824_v62 = vld [vmem:[#allocation5 + $0xaac] ss:$16 sps:$4 sm:$0xff]  }
 0x1f7   :  { %4421 = vmatpush2.bf16.msra.mxu1 %v6753_v63  ;;  %4447 = vmatprep.subr.bf16.mxu0 %v6761_v59  ;;  %v6821_v63 = vld [vmem:[#allocation5 + $0x9ac] ss:$16 sps:$4 sm:$0xff]  }
 0x1f8   :  { %4472 = vmatprep.subr.bf16.mxu1 %v6764_v2 }
 0x1fa   :  { %4423 = vmatmul.mubr.bf16.vlgmr.msra.gmra.mxu1 %v7431_v39  ;;  %4448 = vmatpush2.bf16.msra.mxu0 %v6759_v3  ;;  %v6777_v39 = vld [vmem:[#allocation5 + $0x788] ss:$16 sps:$4 sm:$0xff]  }
 0x1fb   :  { %4473 = vmatpush1.bf16.msra.mxu1 %v6762_v4  ;;  %4449 = vmatprep.subr.bf16.mxu0 %v6767_v5  ;;  %v6822_v5 = vld [vmem:[#allocation5 + $0xaa8] ss:$16 sps:$4 sm:$0xff]  }
 0x1fc   :  { %4474 = vmatprep.subr.bf16.mxu1 %v6770_v6  ;;  %4504 = vmatprep.mubr.bf16.mxu1 %v7453_v34  ;;  %v6786_v34 = vld [vmem:[#allocation5 + $0x868] ss:$16 sps:$4 sm:$0xff]  }
 0x1fe   :  { %4450 = vmatpush2.bf16.msra.mxu0 %v6765_v7 }
 0x1ff   :  { %4475 = vmatpush1.bf16.msra.mxu1 %v6768_v8  ;;  %4451 = vmatprep.subr.bf16.mxu0 %v6773_v9  ;;  %v6827_v8 = vld [vmem:[#allocation5 + $0x98c] ss:$16 sps:$4 sm:$0xff]  }
 0x200   :  { %4476 = vmatprep.subr.bf16.mxu1 %v6776_v10  ;;  %v6830_v9 = vld [vmem:[#allocation5 + $0xa8c] ss:$16 sps:$4 sm:$0xff]   ;;  %v6825_v10 = vld [vmem:[#allocation5 + $0x988] ss:$16 sps:$4 sm:$0xff]  }
 0x202   :  { %4452 = vmatpush2.bf16.msra.mxu0 %v6771_v11  ;;  %v6836_v11 = vld [vmem:[#allocation5 + $0xa6c] ss:$16 sps:$4 sm:$0xff]  }
 0x203   :  { %4477 = vmatpush1.bf16.msra.mxu1 %v6774_v12  ;;  %4453 = vmatprep.subr.bf16.mxu0 %v6779_v13  ;;  %v6831_v12 = vld [vmem:[#allocation5 + $0x968] ss:$16 sps:$4 sm:$0xff]  }
 0x204   :  { %4478 = vmatprep.subr.bf16.mxu1 %v6782_v14  ;;  %v6834_v13 = vld [vmem:[#allocation5 + $0xa68] ss:$16 sps:$4 sm:$0xff]   ;;  %v6839_v14 = vld [vmem:[#allocation5 + $0x94c] ss:$16 sps:$4 sm:$0xff]  }
 0x206   :  { %4454 = vmatpush2.bf16.msra.mxu0 %v6777_v39  ;;  %v6842_v39 = vld [vmem:[#allocation5 + $0xa4c] ss:$16 sps:$4 sm:$0xff]  }
 0x207   :  { %4479 = vmatpush1.bf16.msra.mxu1 %v6780_v16  ;;  %4455 = vmatprep.subr.bf16.mxu0 %v6785_v17  ;;  %v6837_v16 = vld [vmem:[#allocation5 + $0x948] ss:$16 sps:$4 sm:$0xff]  }
 0x208   :  { %4480 = vmatprep.subr.bf16.mxu1 %v6788_v21  ;;  %v6840_v17 = vld [vmem:[#allocation5 + $0xa48] ss:$16 sps:$4 sm:$0xff]   ;;  %v6845_v21 = vld [vmem:[#allocation5 + $0x92c] ss:$16 sps:$4 sm:$0xff]  }
 0x20a   :  { %4456 = vmatpush2.bf16.msra.mxu0 %v6783_v22  ;;  %v6848_v22 = vld [vmem:[#allocation5 + $0xa2c] ss:$16 sps:$4 sm:$0xff]  }
 0x20b   :  { %4481 = vmatpush1.bf16.msra.mxu1 %v6786_v34  ;;  %4457 = vmatprep.subr.bf16.mxu0 %v6791_v24  ;;  %v6843_v34 = vld [vmem:[#allocation5 + $0x928] ss:$16 sps:$4 sm:$0xff]  }
 0x20c   :  { %4482 = vmatprep.subr.bf16.mxu1 %v6794_v25  ;;  %v6846_v24 = vld [vmem:[#allocation5 + $0xa28] ss:$16 sps:$4 sm:$0xff]   ;;  %v6851_v25 = vld [vmem:[#allocation5 + $0x90c] ss:$16 sps:$4 sm:$0xff]  }
 0x20e   :  { %4458 = vmatpush2.bf16.msra.mxu0 %v6789_v26  ;;  %v6854_v26 = vld [vmem:[#allocation5 + $0xa0c] ss:$16 sps:$4 sm:$0xff]  }
 0x20f   :  { %4483 = vmatpush1.bf16.msra.mxu1 %v6792_v28  ;;  %4459 = vmatprep.subr.bf16.mxu0 %v6797_v60  ;;  %v6849_v28 = vld [vmem:[#allocation5 + $0x908] ss:$16 sps:$4 sm:$0xff]  }
 0x210   :  { %4484 = vmatprep.subr.bf16.mxu1 %v6800_v37  ;;  %v6852_v60 = vld [vmem:[#allocation5 + $0xa08] ss:$16 sps:$4 sm:$0xff]   ;;  %v6857_v37 = vld [vmem:[#allocation5 + $0xbec] ss:$16 sps:$4 sm:$0xff]  }
 0x212   :  { %4460 = vmatpush2.bf16.msra.mxu0 %v6795_v30  ;;  %v6860_v30 = vld [vmem:[#allocation5 + $0xcec] ss:$16 sps:$4 sm:$0xff]  }
 0x213   :  { %4485 = vmatpush1.bf16.msra.mxu1 %v6798_v33  ;;  %4461 = vmatprep.subr.bf16.mxu0 %v6803_v36  ;;  %v6855_v33 = vld [vmem:[#allocation5 + $0xbe8] ss:$16 sps:$4 sm:$0xff]  }
 0x214   :  { %4486 = vmatprep.subr.bf16.mxu1 %v6806_v18  ;;  %v6858_v36 = vld [vmem:[#allocation5 + $0xce8] ss:$16 sps:$4 sm:$0xff]   ;;  %v6863_v18 = vld [vmem:[#allocation5 + $0xbcc] ss:$16 sps:$4 sm:$0xff]  }
 0x216   :  { %4462 = vmatpush2.bf16.msra.mxu0 %v6801_v51  ;;  %v6866_v51 = vld [vmem:[#allocation5 + $0xccc] ss:$16 sps:$4 sm:$0xff]  }
 0x217   :  { %4487 = vmatpush1.bf16.msra.mxu1 %v6804_v38  ;;  %4513 = vmatprep.subr.bf16.mxu0 %v6812_v54  ;;  %v6864_v54 = vld [vmem:[#allocation5 + $0xcc8] ss:$16 sps:$4 sm:$0xff]  }
 0x218   :  { %4488 = vmatprep.subr.bf16.mxu1 %v6809_v48  ;;  %v6861_v48 = vld [vmem:[#allocation5 + $0xbc8] ss:$16 sps:$4 sm:$0xff]  }
 0x219   :  { %v4178_v44 = vpop.f32.mrf.mxu0  ;;  %4464 = vmatmul.mubr.bf16.vlgmr.msra.gmra.mxu0 %v7438_v45 }
 0x21a   :  { %v4219_v43 = vpop.f32.mrf.mxu1  ;;  %v4179_v52 = vadd.f32 %v4178_v44, %v7525_v23  ;;  %4514 = vmatpush1.bf16.msra.mxu0 %v6810_v49  ;;  %4545 = vmatprep.mubr.bf16.mxu0 %v7460_v40  ;;  %v6819_v23 = vld [vmem:[#allocation5 + $0x9a8] ss:$16 sps:$4 sm:$0xff]   ;;  %v6833_v40 = vld [vmem:[#allocation5 + $0x96c] ss:$16 sps:$4 sm:$0xff]  }
 0x21b   :  { %4489 = vmatpush2.bf16.msra.mxu1 %v6807_v41  ;;  %v4180_v61 = vpop.f32.mrf.mxu0  ;;  %4515 = vmatprep.subr.bf16.mxu0 %v6818_v47  ;;  %v6869_v49 = vld [vmem:[#allocation5 + $0xbac] ss:$16 sps:$4 sm:$0xff]   ;;  %v6867_v44 = vld [vmem:[#allocation5 + $0xba8] ss:$16 sps:$4 sm:$0xff]  }
 0x21c   :  { %v4221_v57 = vpop.f32.mrf.mxu1  ;;  %4490 = vmatprep.subr.bf16.mxu1 %v6815_v46  ;;  %v7535_v59 = vadd.f32 %v4219_v43, %v4179_v52  ;;  %v4181_v2 = vadd.f32 %v4180_v61, %v7529_v29  ;;  %v6828_v29 = vld [vmem:[#allocation5 + $0xa88] ss:$16 sps:$4 sm:$0xff]   ;;  %v6872_v46 = vld [vmem:[#allocation5 + $0xcac] ss:$16 sps:$4 sm:$0xff]  }
 0x21d   :  { %v4182_v3 = vpop.f32.mrf.mxu0  ;;  %v6870_v43 = vld [vmem:[#allocation5 + $0xca8] ss:$16 sps:$4 sm:$0xff]  }
 0x21e   :  { %v4223_v45 = vpop.f32.mrf.mxu1  ;;  %v7539_v4 = vadd.f32 %v4221_v57, %v4181_v2  ;;  %4516 = vmatpush1.bf16.msra.mxu0 %v6816_v58  ;;  %v6873_v58 = vld [vmem:[#allocation5 + $0xb88] ss:$16 sps:$4 sm:$0xff]   ;;  %v6881_v57 = vld [vmem:[#allocation5 + $0xb6c] ss:$16 sps:$4 sm:$0xff]  }
 0x21f   :  { %4491 = vmatpush2.bf16.msra.mxu1 %v6813_v53  ;;  %v4183_v6 = vpop.f32.mrf.mxu0  ;;  %4517 = vmatprep.subr.bf16.mxu0 %v6824_v62  ;;  %v6878_v53 = vld [vmem:[#allocation5 + $0xc8c] ss:$16 sps:$4 sm:$0xff]   ;;  %v6876_v61 = vld [vmem:[#allocation5 + $0xc88] ss:$16 sps:$4 sm:$0xff]  }
 0x220   :  { %v4224_v7 = vpop.f32.mrf.mxu1  ;;  %4492 = vmatprep.subr.bf16.mxu1 %v6821_v63  ;;  %v6884_v63 = vld [vmem:[#allocation5 + $0xc6c] ss:$16 sps:$4 sm:$0xff]   ;;  %v6882_v62 = vld [vmem:[#allocation5 + $0xc68] ss:$16 sps:$4 sm:$0xff]  }
 0x221   :  { %v6887_v2 = vld [vmem:[#allocation5 + $0xb4c] ss:$16 sps:$4 sm:$0xff]   ;;  %v6885_v45 = vld [vmem:[#allocation5 + $0xb48] ss:$16 sps:$4 sm:$0xff]  }
 0x222   :  { %4518 = vmatpush1.bf16.msra.mxu0 %v6822_v5  ;;  %v6890_v3 = vld [vmem:[#allocation5 + $0xc4c] ss:$16 sps:$4 sm:$0xff]   ;;  %v6891_v7 = vld [vmem:[#allocation5 + $0xb28] ss:$16 sps:$4 sm:$0xff]  }
 0x223   :  { %4493 = vmatpush2.bf16.msra.mxu1 %v6819_v23  ;;  %4519 = vmatprep.subr.bf16.mxu0 %v6830_v9  ;;  %v6888_v23 = vld [vmem:[#allocation5 + $0xc48] ss:$16 sps:$4 sm:$0xff]   ;;  %v6893_v5 = vld [vmem:[#allocation5 + $0xb2c] ss:$16 sps:$4 sm:$0xff]  }
 0x224   :  { %4494 = vmatprep.subr.bf16.mxu1 %v6827_v8  ;;  %v6896_v6 = vld [vmem:[#allocation5 + $0xc2c] ss:$16 sps:$4 sm:$0xff]   ;;  %v6894_v8 = vld [vmem:[#allocation5 + $0xc28] ss:$16 sps:$4 sm:$0xff]  }
 0x225   :  { %v6899_v9 = vld [vmem:[#allocation5 + $0xb0c] ss:$16 sps:$4 sm:$0xff]  }
 0x226   :  { %4520 = vmatpush1.bf16.msra.mxu0 %v6828_v29  ;;  %v6897_v29 = vld [vmem:[#allocation5 + $0xb08] ss:$16 sps:$4 sm:$0xff]  }
 0x227   :  { %4495 = vmatpush2.bf16.msra.mxu1 %v6825_v10  ;;  %4521 = vmatprep.subr.bf16.mxu0 %v6836_v11  ;;  %v6902_v10 = vld [vmem:[#allocation5 + $0xc0c] ss:$16 sps:$4 sm:$0xff]  }
 0x228   :  { %4496 = vmatprep.subr.bf16.mxu1 %v6833_v40  ;;  %v6900_v40 = vld [vmem:[#allocation5 + $0xc08] ss:$16 sps:$4 sm:$0xff]   ;;  %v6905_v11 = vld [vmem:[#allocation5 + $0xdec] ss:$16 sps:$4 sm:$0xff]  }
 0x22a   :  { %4522 = vmatpush1.bf16.msra.mxu0 %v6834_v13  ;;  %v6903_v13 = vld [vmem:[#allocation5 + $0xde8] ss:$16 sps:$4 sm:$0xff]  }
 0x22b   :  { %4497 = vmatpush2.bf16.msra.mxu1 %v6831_v12  ;;  %4523 = vmatprep.subr.bf16.mxu0 %v6842_v39  ;;  %v6908_v12 = vld [vmem:[#allocation5 + $0xeec] ss:$16 sps:$4 sm:$0xff]  }
 0x22c   :  { %4498 = vmatprep.subr.bf16.mxu1 %v6839_v14  ;;  %v6906_v14 = vld [vmem:[#allocation5 + $0xee8] ss:$16 sps:$4 sm:$0xff]   ;;  %v6911_v39 = vld [vmem:[#allocation5 + $0xdcc] ss:$16 sps:$4 sm:$0xff]  }
 0x22e   :  { %4524 = vmatpush1.bf16.msra.mxu0 %v6840_v17 }
 0x22f   :  { %4499 = vmatpush2.bf16.msra.mxu1 %v6837_v16  ;;  %4525 = vmatprep.subr.bf16.mxu0 %v6848_v22  ;;  %v6914_v16 = vld [vmem:[#allocation5 + $0xecc] ss:$16 sps:$4 sm:$0xff]   ;;  %v6909_v22 = vld [vmem:[#allocation5 + $0xdc8] ss:$16 sps:$4 sm:$0xff]  }
 0x230   :  { %4500 = vmatprep.subr.bf16.mxu1 %v6845_v21 }
 0x232   :  { %4526 = vmatpush1.bf16.msra.mxu0 %v6846_v24 }
 0x233   :  { %4501 = vmatpush2.bf16.msra.mxu1 %v6843_v34  ;;  %4527 = vmatprep.subr.bf16.mxu0 %v6854_v26  ;;  %v6912_v34 = vld [vmem:[#allocation5 + $0xec8] ss:$16 sps:$4 sm:$0xff]   ;;  %v6920_v26 = vld [vmem:[#allocation5 + $0xeac] ss:$16 sps:$4 sm:$0xff]  }
 0x234   :  { %4502 = vmatprep.subr.bf16.mxu1 %v6851_v25  ;;  %v6917_v25 = vld [vmem:[#allocation5 + $0xdac] ss:$16 sps:$4 sm:$0xff]  }
 0x236   :  { %4528 = vmatpush1.bf16.msra.mxu0 %v6852_v60 }
 0x237   :  { %4503 = vmatpush2.bf16.msra.mxu1 %v6849_v28  ;;  %4529 = vmatprep.subr.bf16.mxu0 %v6857_v37 }
 0x238   :  { %4554 = vmatprep.subr.bf16.mxu1 %v6860_v30  ;;  %v6918_v30 = vld [vmem:[#allocation5 + $0xea8] ss:$16 sps:$4 sm:$0xff]  }
 0x23a   :  { %v7541_v38 = vpop.f32.mrf.mxu1  ;;  %4505 = vmatmul.mubr.bf16.vlgmr.msra.gmra.mxu1 %v7447_v31  ;;  %4530 = vmatpush2.bf16.msra.mxu0 %v6855_v33  ;;  %v6875_v31 = vld [vmem:[#allocation5 + $0xb8c] ss:$16 sps:$4 sm:$0xff]  }
 0x23b   :  { %4555 = vmatpush1.bf16.msra.mxu1 %v6858_v36  ;;  %4531 = vmatprep.subr.bf16.mxu0 %v6863_v18  ;;  %v6923_v36 = vld [vmem:[#allocation5 + $0xd8c] ss:$16 sps:$4 sm:$0xff]  }
 0x23c   :  { %v7544_v41 = vpop.f32.mrf.mxu1  ;;  %4556 = vmatprep.subr.bf16.mxu1 %v6866_v51  ;;  %4586 = vmatprep.mubr.bf16.mxu1 %v7472_v0  ;;  %v6879_v0 = vld [vmem:[#allocation5 + $0xb68] ss:$16 sps:$4 sm:$0xff]   ;;  %v6926_v18 = vld [vmem:[#allocation5 + $0xe8c] ss:$16 sps:$4 sm:$0xff]  }
 0x23d   :  { %v6921_v51 = vld [vmem:[#allocation5 + $0xd88] ss:$16 sps:$4 sm:$0xff]  }
 0x23e   :  { %v4305_v47 = vpop.f32.mrf.mxu1  ;;  %4532 = vmatpush2.bf16.msra.mxu0 %v6861_v48  ;;  %v6927_v48 = vld [vmem:[#allocation5 + $0xd68] ss:$16 sps:$4 sm:$0xff]  }
 0x23f   :  { %4557 = vmatpush1.bf16.msra.mxu1 %v6864_v54  ;;  %4533 = vmatprep.subr.bf16.mxu0 %v6869_v49  ;;  %v6930_v54 = vld [vmem:[#allocation5 + $0xe68] ss:$16 sps:$4 sm:$0xff]   ;;  %v6938_v49 = vld [vmem:[#allocation5 + $0xe4c] ss:$16 sps:$4 sm:$0xff]  }
 0x240   :  { %v4306_v52 = vpop.f32.mrf.mxu1  ;;  %4558 = vmatprep.subr.bf16.mxu1 %v6872_v46  ;;  %v6933_v46 = vld [vmem:[#allocation5 + $0xd48] ss:$16 sps:$4 sm:$0xff]  }
 0x241   :  { %v6936_v47 = vld [vmem:[#allocation5 + $0xe48] ss:$16 sps:$4 sm:$0xff]  }
 0x242   :  { %4534 = vmatpush2.bf16.msra.mxu0 %v6867_v44  ;;  %v6941_v44 = vld [vmem:[#allocation5 + $0xd2c] ss:$16 sps:$4 sm:$0xff]   ;;  %v6939_v52 = vld [vmem:[#allocation5 + $0xd28] ss:$16 sps:$4 sm:$0xff]  }
 0x243   :  { %4559 = vmatpush1.bf16.msra.mxu1 %v6870_v43  ;;  %4535 = vmatprep.subr.bf16.mxu0 %v6875_v31  ;;  %v6944_v43 = vld [vmem:[#allocation5 + $0xe2c] ss:$16 sps:$4 sm:$0xff]   ;;  %v6942_v31 = vld [vmem:[#allocation5 + $0xe28] ss:$16 sps:$4 sm:$0xff]  }
 0x244   :  { %4560 = vmatprep.subr.bf16.mxu1 %v6878_v53  ;;  %v6947_v53 = vld [vmem:[#allocation5 + $0xd0c] ss:$16 sps:$4 sm:$0xff]  }
 0x246   :  { %4536 = vmatpush2.bf16.msra.mxu0 %v6873_v58  ;;  %v6950_v58 = vld [vmem:[#allocation5 + $0xe0c] ss:$16 sps:$4 sm:$0xff]  }
 0x247   :  { %4561 = vmatpush1.bf16.msra.mxu1 %v6876_v61  ;;  %4537 = vmatprep.subr.bf16.mxu0 %v6881_v57  ;;  %v6945_v61 = vld [vmem:[#allocation5 + $0xd08] ss:$16 sps:$4 sm:$0xff]  }
 0x248   :  { %4562 = vmatprep.subr.bf16.mxu1 %v6884_v63  ;;  %v6948_v57 = vld [vmem:[#allocation5 + $0xe08] ss:$16 sps:$4 sm:$0xff]   ;;  %v6953_v63 = vld [vmem:[#allocation5 + $0xfec] ss:$16 sps:$4 sm:$0xff]  }
 0x24a   :  { %4538 = vmatpush2.bf16.msra.mxu0 %v6879_v0  ;;  %v6956_v0 = vld [vmem:[#allocation5 + $0x10ec] ss:$16 sps:$4 sm:$0xff]  }
 0x24b   :  { %4563 = vmatpush1.bf16.msra.mxu1 %v6882_v62  ;;  %4539 = vmatprep.subr.bf16.mxu0 %v6887_v2  ;;  %v6951_v62 = vld [vmem:[#allocation5 + $0xfe8] ss:$16 sps:$4 sm:$0xff]  }
 0x24c   :  { %4564 = vmatprep.subr.bf16.mxu1 %v6890_v3  ;;  %v6954_v2 = vld [vmem:[#allocation5 + $0x10e8] ss:$16 sps:$4 sm:$0xff]   ;;  %v6959_v3 = vld [vmem:[#allocation5 + $0xfcc] ss:$16 sps:$4 sm:$0xff]  }
 0x24e   :  { %4540 = vmatpush2.bf16.msra.mxu0 %v6885_v45  ;;  %v6962_v45 = vld [vmem:[#allocation5 + $0x10cc] ss:$16 sps:$4 sm:$0xff]  }
 0x24f   :  { %4565 = vmatpush1.bf16.msra.mxu1 %v6888_v23  ;;  %4541 = vmatprep.subr.bf16.mxu0 %v6893_v5  ;;  %v6957_v5 = vld [vmem:[#allocation5 + $0xfc8] ss:$16 sps:$4 sm:$0xff]  }
 0x250   :  { %4566 = vmatprep.subr.bf16.mxu1 %v6896_v6  ;;  %v6960_v6 = vld [vmem:[#allocation5 + $0x10c8] ss:$16 sps:$4 sm:$0xff]  }
 0x252   :  { %4542 = vmatpush2.bf16.msra.mxu0 %v6891_v7 }
 0x253   :  { %4567 = vmatpush1.bf16.msra.mxu1 %v6894_v8  ;;  %4543 = vmatprep.subr.bf16.mxu0 %v6899_v9  ;;  %v6965_v8 = vld [vmem:[#allocation5 + $0xfac] ss:$16 sps:$4 sm:$0xff]  }
 0x254   :  { %4568 = vmatprep.subr.bf16.mxu1 %v6902_v10  ;;  %v6968_v9 = vld [vmem:[#allocation5 + $0x10ac] ss:$16 sps:$4 sm:$0xff]  }
 0x256   :  { %4544 = vmatpush2.bf16.msra.mxu0 %v6897_v29  ;;  %v6963_v29 = vld [vmem:[#allocation5 + $0xfa8] ss:$16 sps:$4 sm:$0xff]  }
 0x257   :  { %4569 = vmatpush1.bf16.msra.mxu1 %v6900_v40  ;;  %4595 = vmatprep.subr.bf16.mxu0 %v6908_v12  ;;  %v6966_v40 = vld [vmem:[#allocation5 + $0x10a8] ss:$16 sps:$4 sm:$0xff]   ;;  %v6974_v12 = vld [vmem:[#allocation5 + $0x108c] ss:$16 sps:$4 sm:$0xff]  }
 0x258   :  { %4570 = vmatprep.subr.bf16.mxu1 %v6905_v11 }
 0x259   :  { %v4260_v17 = vpop.f32.mrf.mxu0  ;;  %4546 = vmatmul.mubr.bf16.vlgmr.msra.gmra.mxu0 %v7456_v35 }
 0x25a   :  { %v4261_v21 = vadd.f32 %v4260_v17, %v7535_v59  ;;  %4596 = vmatpush1.bf16.msra.mxu0 %v6906_v14  ;;  %4627 = vmatprep.mubr.bf16.mxu0 %v7476_v1  ;;  %v6915_v59 = vld [vmem:[#allocation5 + $0xda8] ss:$16 sps:$4 sm:$0xff]   ;;  %v6929_v1 = vld [vmem:[#allocation5 + $0xd6c] ss:$16 sps:$4 sm:$0xff]  }
 0x25b   :  { %4571 = vmatpush2.bf16.msra.mxu1 %v6903_v13  ;;  %v4262_v24 = vpop.f32.mrf.mxu0  ;;  %4597 = vmatprep.subr.bf16.mxu0 %v6914_v16  ;;  %v6969_v13 = vld [vmem:[#allocation5 + $0xf88] ss:$16 sps:$4 sm:$0xff]   ;;  %v6980_v16 = vld [vmem:[#allocation5 + $0x106c] ss:$16 sps:$4 sm:$0xff]  }
 0x25c   :  { %4572 = vmatprep.subr.bf16.mxu1 %v6911_v39  ;;  %v7550_v28 = vadd.f32 %v7541_v38, %v4261_v21  ;;  %v4263_v60 = vadd.f32 %v4262_v24, %v7539_v4  ;;  %v6924_v38 = vld [vmem:[#allocation5 + $0xe88] ss:$16 sps:$4 sm:$0xff]   ;;  %v6932_v4 = vld [vmem:[#allocation5 + $0xe6c] ss:$16 sps:$4 sm:$0xff]  }
 0x25d   :  { %v4264_v37 = vpop.f32.mrf.mxu0  ;;  %v6972_v14 = vld [vmem:[#allocation5 + $0x1088] ss:$16 sps:$4 sm:$0xff]   ;;  %v6977_v39 = vld [vmem:[#allocation5 + $0xf6c] ss:$16 sps:$4 sm:$0xff]  }
 0x25e   :  { %v7555_v35 = vadd.f32 %v7544_v41, %v4263_v60  ;;  %4598 = vmatpush1.bf16.msra.mxu0 %v6912_v34  ;;  %v6935_v41 = vld [vmem:[#allocation5 + $0xd4c] ss:$16 sps:$4 sm:$0xff]   ;;  %v6978_v17 = vld [vmem:[#allocation5 + $0x1068] ss:$16 sps:$4 sm:$0xff]  }
 0x25f   :  { %4573 = vmatpush2.bf16.msra.mxu1 %v6909_v22  ;;  %v4265_v33 = vpop.f32.mrf.mxu0  ;;  %4599 = vmatprep.subr.bf16.mxu0 %v6920_v26  ;;  %v6983_v21 = vld [vmem:[#allocation5 + $0xf4c] ss:$16 sps:$4 sm:$0xff]   ;;  %v6981_v34 = vld [vmem:[#allocation5 + $0xf48] ss:$16 sps:$4 sm:$0xff]  }
 0x260   :  { %4574 = vmatprep.subr.bf16.mxu1 %v6917_v25  ;;  %v6986_v22 = vld [vmem:[#allocation5 + $0x104c] ss:$16 sps:$4 sm:$0xff]   ;;  %v6984_v24 = vld [vmem:[#allocation5 + $0x1048] ss:$16 sps:$4 sm:$0xff]   ;;  %v740_v33 = vsub.s32 2, %v7407_v42 }
 0x261   :  { %v6989_v25 = vld [vmem:[#allocation5 + $0xf2c] ss:$16 sps:$4 sm:$0xff]   ;;  %v6987_v60 = vld [vmem:[#allocation5 + $0xf28] ss:$16 sps:$4 sm:$0xff]  }
 0x262   :  { %4600 = vmatpush1.bf16.msra.mxu0 %v6918_v30  ;;  %v6992_v26 = vld [vmem:[#allocation5 + $0x102c] ss:$16 sps:$4 sm:$0xff]   ;;  %v6990_v37 = vld [vmem:[#allocation5 + $0x1028] ss:$16 sps:$4 sm:$0xff]  }
 0x263   :  { %4575 = vmatpush2.bf16.msra.mxu1 %v6915_v59  ;;  %4601 = vmatprep.subr.bf16.mxu0 %v6926_v18  ;;  %v6995_v59 = vld [vmem:[#allocation5 + $0xf0c] ss:$16 sps:$4 sm:$0xff]   ;;  %v6993_v18 = vld [vmem:[#allocation5 + $0xf08] ss:$16 sps:$4 sm:$0xff]  }
 0x264   :  { %4576 = vmatprep.subr.bf16.mxu1 %v6923_v36  ;;  %v6998_v30 = vld [vmem:[#allocation5 + $0x100c] ss:$16 sps:$4 sm:$0xff]   ;;  %v744_v36 = vsub.s32 3, %v7407_v42 }
 0x266   :  { %4602 = vmatpush1.bf16.msra.mxu0 %v6924_v38  ;;  %v7001_v38 = vld [vmem:[#allocation5 + $0x11ec] ss:$16 sps:$4 sm:$0xff]  }
 0x267   :  { %4577 = vmatpush2.bf16.msra.mxu1 %v6921_v51  ;;  %4603 = vmatprep.subr.bf16.mxu0 %v6932_v4  ;;  %v6996_v51 = vld [vmem:[#allocation5 + $0x1008] ss:$16 sps:$4 sm:$0xff]   ;;  %v7159_v4 = vld [vmem:[#allocation7] sm:$0xf] }
 0x268   :  { %4578 = vmatprep.subr.bf16.mxu1 %v6929_v1  ;;  %v7004_v1 = vld [vmem:[#allocation5 + $0x12ec] ss:$16 sps:$4 sm:$0xff]  }
 0x26a   :  { %4604 = vmatpush1.bf16.msra.mxu0 %v6930_v54  ;;  %v745_v54 = vrot.slane %v7159_v4, %v744_v36  ;;  %v7053_v36 = vld [vmem:[#allocation8 + $0x50] ss:$8 sps:$4 sm:$0xff]  }
 0x26b   :  { %4579 = vmatpush2.bf16.msra.mxu1 %v6927_v48  ;;  %4605 = vmatprep.subr.bf16.mxu0 %v6938_v49  ;;  %v741_v48 = vrot.slane %v7159_v4, %v740_v33  ;;  %v7002_v49 = vld [vmem:[#allocation5 + $0x12e8] ss:$16 sps:$4 sm:$0xff]   ;;  %v7098_v4 = vld [vmem:[#allocation8 + $0x160] ss:$8 sps:$4 sm:$0xff]  }
 0x26c   :  { %4580 = vmatprep.subr.bf16.mxu1 %v6935_v41  ;;  %v6999_v41 = vld [vmem:[#allocation5 + $0x11e8] ss:$16 sps:$4 sm:$0xff]  }
 0x26e   :  { %4606 = vmatpush1.bf16.msra.mxu0 %v6936_v47  ;;  %v7010_v47 = vld [vmem:[#allocation5 + $0x12cc] ss:$16 sps:$4 sm:$0xff]  }
 0x26f   :  { %4581 = vmatpush2.bf16.msra.mxu1 %v6933_v46  ;;  %4607 = vmatprep.subr.bf16.mxu0 %v6944_v43  ;;  %v7007_v46 = vld [vmem:[#allocation5 + $0x11cc] ss:$16 sps:$4 sm:$0xff]  }
 0x270   :  { %4582 = vmatprep.subr.bf16.mxu1 %v6941_v44 }
 0x272   :  { %4608 = vmatpush1.bf16.msra.mxu0 %v6942_v31 }
 0x273   :  { %4583 = vmatpush2.bf16.msra.mxu1 %v6939_v52  ;;  %4609 = vmatprep.subr.bf16.mxu0 %v6950_v58  ;;  %v7008_v58 = vld [vmem:[#allocation5 + $0x12c8] ss:$16 sps:$4 sm:$0xff]  }
 0x274   :  { %4584 = vmatprep.subr.bf16.mxu1 %v6947_v53  ;;  %v7005_v53 = vld [vmem:[#allocation5 + $0x11c8] ss:$16 sps:$4 sm:$0xff]  }
 0x276   :  { %4610 = vmatpush1.bf16.msra.mxu0 %v6948_v57  ;;  %v7013_v57 = vld [vmem:[#allocation5 + $0x11ac] ss:$16 sps:$4 sm:$0xff]  }
 0x277   :  { %4585 = vmatpush2.bf16.msra.mxu1 %v6945_v61  ;;  %4611 = vmatprep.subr.bf16.mxu0 %v6953_v63  ;;  %v7016_v63 = vld [vmem:[#allocation5 + $0x12ac] ss:$16 sps:$4 sm:$0xff]  }
 0x278   :  { %4636 = vmatprep.subr.bf16.mxu1 %v6956_v0 }
 0x27a   :  { %v7557_v23 = vpop.f32.mrf.mxu1  ;;  %4587 = vmatmul.mubr.bf16.vlgmr.msra.gmra.mxu1 %v7465_v55  ;;  %4612 = vmatpush2.bf16.msra.mxu0 %v6951_v62  ;;  %v6971_v55 = vld [vmem:[#allocation5 + $0xf8c] ss:$16 sps:$4 sm:$0xff]  }
 0x27b   :  { %4637 = vmatpush1.bf16.msra.mxu1 %v6954_v2  ;;  %4613 = vmatprep.subr.bf16.mxu0 %v6959_v3  ;;  %v4343_v44 = vadd.f32 %v7557_v23, %v741_v48  ;;  %v7014_v2 = vld [vmem:[#allocation5 + $0x12a8] ss:$16 sps:$4 sm:$0xff]   ;;  %v7022_v23 = vld [vmem:[#allocation5 + $0x128c] ss:$16 sps:$4 sm:$0xff]  }
 0x27c   :  { %v7560_v7 = vpop.f32.mrf.mxu1  ;;  %4638 = vmatprep.subr.bf16.mxu1 %v6962_v45  ;;  %4668 = vmatprep.mubr.bf16.mxu1 %v7496_v27  ;;  %v6975_v27 = vld [vmem:[#allocation5 + $0xf68] ss:$16 sps:$4 sm:$0xff]   ;;  %v7019_v45 = vld [vmem:[#allocation5 + $0x118c] ss:$16 sps:$4 sm:$0xff]  }
 0x27d   :  { %v4345_v52 = vadd.f32 %v7560_v7, %v745_v54  ;;  %v7025_v7 = vld [vmem:[#allocation5 + $0x116c] ss:$16 sps:$4 sm:$0xff]   ;;  %v7061_v48 = vld [vmem:[#allocation8 + $0x34] ss:$8 sps:$4 sm:$0xff]  }
 0x27e   :  { %v4346_v10 = vpop.f32.mrf.mxu1  ;;  %4614 = vmatpush2.bf16.msra.mxu0 %v6957_v5  ;;  %v7017_v5 = vld [vmem:[#allocation5 + $0x1188] ss:$16 sps:$4 sm:$0xff]  }
 0x27f   :  { %4639 = vmatpush1.bf16.msra.mxu1 %v6960_v6  ;;  %4615 = vmatprep.subr.bf16.mxu0 %v6965_v8  ;;  %v7020_v6 = vld [vmem:[#allocation5 + $0x1288] ss:$16 sps:$4 sm:$0xff]   ;;  %v7028_v8 = vld [vmem:[#allocation5 + $0x126c] ss:$16 sps:$4 sm:$0xff]  }
 0x280   :  { %v4347_v11 = vpop.f32.mrf.mxu1  ;;  %4640 = vmatprep.subr.bf16.mxu1 %v6968_v9  ;;  %v7026_v9 = vld [vmem:[#allocation5 + $0x1268] ss:$16 sps:$4 sm:$0xff]   ;;  %v7031_v10 = vld [vmem:[#allocation5 + $0x114c] ss:$16 sps:$4 sm:$0xff]  }
 0x281   :  { %v7032_v11 = vld [vmem:[#allocation5 + $0x1248] ss:$16 sps:$4 sm:$0xff]  }
 0x282   :  { %4616 = vmatpush2.bf16.msra.mxu0 %v6963_v29  ;;  %v7034_v29 = vld [vmem:[#allocation5 + $0x124c] ss:$16 sps:$4 sm:$0xff]   ;;  %v7103_v54 = vld [vmem:[#allocation8 + $0x154] ss:$8 sps:$4 sm:$0xff]  }
 0x283   :  { %4641 = vmatpush1.bf16.msra.mxu1 %v6966_v40  ;;  %4617 = vmatprep.subr.bf16.mxu0 %v6971_v55  ;;  %v7029_v40 = vld [vmem:[#allocation5 + $0x1148] ss:$16 sps:$4 sm:$0xff]   ;;  %v7037_v55 = vld [vmem:[#allocation5 + $0x112c] ss:$16 sps:$4 sm:$0xff]  }
 0x284   :  { %4642 = vmatprep.subr.bf16.mxu1 %v6974_v12  ;;  %v7040_v12 = vld [vmem:[#allocation5 + $0x122c] ss:$16 sps:$4 sm:$0xff]  }
 0x286   :  { %4618 = vmatpush2.bf16.msra.mxu0 %v6969_v13  ;;  %v7035_v13 = vld [vmem:[#allocation5 + $0x1128] ss:$16 sps:$4 sm:$0xff]  }
 0x287   :  { %4643 = vmatpush1.bf16.msra.mxu1 %v6972_v14  ;;  %4619 = vmatprep.subr.bf16.mxu0 %v6977_v39  ;;  %v7038_v14 = vld [vmem:[#allocation5 + $0x1228] ss:$16 sps:$4 sm:$0xff]   ;;  %v7043_v39 = vld [vmem:[#allocation5 + $0x110c] ss:$16 sps:$4 sm:$0xff]  }
 0x288   :  { %4644 = vmatprep.subr.bf16.mxu1 %v6980_v16  ;;  %v7046_v16 = vld [vmem:[#allocation5 + $0x120c] ss:$16 sps:$4 sm:$0xff]  }
 0x28a   :  { %4620 = vmatpush2.bf16.msra.mxu0 %v6975_v27  ;;  %v7041_v27 = vld [vmem:[#allocation5 + $0x1108] ss:$16 sps:$4 sm:$0xff]  }
 0x28b   :  { %4645 = vmatpush1.bf16.msra.mxu1 %v6978_v17  ;;  %4621 = vmatprep.subr.bf16.mxu0 %v6983_v21  ;;  %v7044_v17 = vld [vmem:[#allocation5 + $0x1208] ss:$16 sps:$4 sm:$0xff]  }
 0x28c   :  { %4646 = vmatprep.subr.bf16.mxu1 %v6986_v22  ;;  %v7049_v21 = vld [vmem:[#allocation8 + $0x74] ss:$8 sps:$4 sm:$0xff]   ;;  %v4719_v22 = vmax.f32 %v7555_v35, 0.0 }
 0x28e   :  { %4622 = vmatpush2.bf16.msra.mxu0 %v6981_v34  ;;  %v7047_v34 = vld [vmem:[#allocation8 + $0x70] ss:$8 sps:$4 sm:$0xff]  }
 0x28f   :  { %4647 = vmatpush1.bf16.msra.mxu1 %v6984_v24  ;;  %4623 = vmatprep.subr.bf16.mxu0 %v6989_v25  ;;  %v7052_v24 = vld [vmem:[#allocation8 + $0x64] ss:$8 sps:$4 sm:$0xff]   ;;  %v4723_v25 = vpack.c.bf16 %v4719_v22, %v4719_v22  ;;  %v7127_v22 = vld [vmem:[#allocation8 + $0x1d4] ss:$8 sps:$4 sm:$0xff]  }
 0x290   :  { %4648 = vmatprep.subr.bf16.mxu1 %v6992_v26 }
 0x292   :  { %4624 = vmatpush2.bf16.msra.mxu0 %v6987_v60 }
 0x293   :  { %4649 = vmatpush1.bf16.msra.mxu1 %v6990_v37  ;;  %4625 = vmatprep.subr.bf16.mxu0 %v6995_v59  ;;  %v7050_v37 = vld [vmem:[#allocation8 + $0x60] ss:$8 sps:$4 sm:$0xff]  }
 0x294   :  { %4650 = vmatprep.subr.bf16.mxu1 %v6998_v30  ;;  %v7055_v30 = vld [vmem:[#allocation8 + $0x54] ss:$8 sps:$4 sm:$0xff]  }
 0x296   :  { %4626 = vmatpush2.bf16.msra.mxu0 %v6993_v18 }
 0x297   :  { %4651 = vmatpush1.bf16.msra.mxu1 %v6996_v51  ;;  %4677 = vmatprep.subr.bf16.mxu0 %v7004_v1  ;;  %v7058_v51 = vld [vmem:[#allocation8 + $0x44] ss:$8 sps:$4 sm:$0xff]   ;;  %v7056_v1 = vld [vmem:[#allocation8 + $0x40] ss:$8 sps:$4 sm:$0xff]  }
 0x298   :  { %4652 = vmatprep.subr.bf16.mxu1 %v7001_v38  ;;  %v7097_v38 = vld [vmem:[#allocation8 + $0x174] ss:$8 sps:$4 sm:$0xff]  }
 0x299   :  { %v4383_v43 = vpop.f32.mrf.mxu0  ;;  %4628 = vmatmul.mubr.bf16.vlgmr.msra.gmra.mxu0 %v7468_v56  ;;  %v7011_v56 = vld [vmem:[#allocation5 + $0x11a8] ss:$16 sps:$4 sm:$0xff]  }
 0x29a   :  { %v7568_v31 = vadd.f32 %v4383_v43, %v4343_v44  ;;  %4678 = vmatpush1.bf16.msra.mxu0 %v7002_v49  ;;  %4709 = vmatprep.mubr.bf16.mxu0 %v7344_v50  ;;  %v7023_v50 = vld [vmem:[#allocation5 + $0x1168] ss:$16 sps:$4 sm:$0xff]   ;;  %v7101_v49 = vld [vmem:[#allocation8 + $0x150] ss:$8 sps:$4 sm:$0xff]   ;;  %v7062_v44 = vld [vmem:[#allocation8 + $0x20] ss:$8 sps:$4 sm:$0xff]  }
 0x29b   :  { %4653 = vmatpush2.bf16.msra.mxu1 %v6999_v41  ;;  %v4385_v61 = vpop.f32.mrf.mxu0  ;;  %4679 = vmatprep.subr.bf16.mxu0 %v7010_v47  ;;  %v7059_v41 = vld [vmem:[#allocation8 + $0x30] ss:$8 sps:$4 sm:$0xff]   ;;  %v7106_v47 = vld [vmem:[#allocation8 + $0x144] ss:$8 sps:$4 sm:$0xff]   ;;  %v7104_v43 = vld [vmem:[#allocation8 + $0x140] ss:$8 sps:$4 sm:$0xff]  }
 0x29c   :  { %4654 = vmatprep.subr.bf16.mxu1 %v7007_v46  ;;  %v7570_v0 = vadd.f32 %v4385_v61, %v4345_v52  ;;  %v7064_v46 = vld [vmem:[#allocation8 + $0x24] ss:$8 sps:$4 sm:$0xff]   ;;  %v7067_v52 = vld [vmem:[#allocation8 + $0x14] ss:$8 sps:$4 sm:$0xff]  }
 0x29d   :  { %v4387_v62 = vpop.f32.mrf.mxu0  ;;  %v7070_v61 = vld [vmem:[#allocation8 + $0x4] ss:$8 sps:$4 sm:$0xff]  }
 0x29e   :  { %4680 = vmatpush1.bf16.msra.mxu0 %v7008_v58  ;;  %v7107_v58 = vld [vmem:[#allocation8 + $0x130] ss:$8 sps:$4 sm:$0xff]   ;;  %v7076_v62 = vld [vmem:[#allocation8 + $0xe4] ss:$8 sps:$4 sm:$0xff]  }
 0x29f   :  { %4655 = vmatpush2.bf16.msra.mxu1 %v7005_v53  ;;  %v4388_v3 = vpop.f32.mrf.mxu0  ;;  %4681 = vmatprep.subr.bf16.mxu0 %v7016_v63  ;;  %v7065_v53 = vld [vmem:[#allocation8 + $0x10] ss:$8 sps:$4 sm:$0xff]   ;;  %v7073_v63 = vld [vmem:[#allocation8 + $0xf4] ss:$8 sps:$4 sm:$0xff]  }
 0x2a0   :  { %4656 = vmatprep.subr.bf16.mxu1 %v7013_v57  ;;  %v7068_v57 = vld [vmem:[#allocation8] ss:$8 sps:$4 sm:$0xff]  }
 0x2a2   :  { %4682 = vmatpush1.bf16.msra.mxu0 %v7014_v2  ;;  %v7110_v2 = vld [vmem:[#allocation8 + $0x120] ss:$8 sps:$4 sm:$0xff]  }
 0x2a3   :  { %4657 = vmatpush2.bf16.msra.mxu1 %v7011_v56  ;;  %4683 = vmatprep.subr.bf16.mxu0 %v7022_v23  ;;  %v7112_v56 = vld [vmem:[#allocation8 + $0x124] ss:$8 sps:$4 sm:$0xff]   ;;  %v7074_v23 = vld [vmem:[#allocation8 + $0xe0] ss:$8 sps:$4 sm:$0xff]  }
 0x2a4   :  { %4658 = vmatprep.subr.bf16.mxu1 %v7019_v45 }
 0x2a6   :  { %4684 = vmatpush1.bf16.msra.mxu0 %v7020_v6  ;;  %v7079_v6 = vld [vmem:[#allocation8 + $0xd4] ss:$8 sps:$4 sm:$0xff]  }
 0x2a7   :  { %4659 = vmatpush2.bf16.msra.mxu1 %v7017_v5  ;;  %4685 = vmatprep.subr.bf16.mxu0 %v7028_v8 }
 0x2a8   :  { %4660 = vmatprep.subr.bf16.mxu1 %v7025_v7  ;;  %v7115_v7 = vld [vmem:[#allocation8 + $0x114] ss:$8 sps:$4 sm:$0xff]  }
 0x2aa   :  { %4686 = vmatpush1.bf16.msra.mxu0 %v7026_v9 }
 0x2ab   :  { %4661 = vmatpush2.bf16.msra.mxu1 %v7023_v50  ;;  %4687 = vmatprep.subr.bf16.mxu0 %v7034_v29  ;;  %v7113_v50 = vld [vmem:[#allocation8 + $0x110] ss:$8 sps:$4 sm:$0xff]  }
 0x2ac   :  { %4662 = vmatprep.subr.bf16.mxu1 %v7031_v10  ;;  %v7077_v10 = vld [vmem:[#allocation8 + $0xd0] ss:$8 sps:$4 sm:$0xff]  }
 0x2ae   :  { %4688 = vmatpush1.bf16.msra.mxu0 %v7032_v11  ;;  %v7116_v11 = vld [vmem:[#allocation8 + $0x100] ss:$8 sps:$4 sm:$0xff]  }
 0x2af   :  { %4663 = vmatpush2.bf16.msra.mxu1 %v7029_v40  ;;  %4689 = vmatprep.subr.bf16.mxu0 %v7040_v12  ;;  %v7082_v40 = vld [vmem:[#allocation8 + $0xc4] ss:$8 sps:$4 sm:$0xff]   ;;  %v7121_v12 = vld [vmem:[#allocation8 + $0x1f4] ss:$8 sps:$4 sm:$0xff]  }
 0x2b0   :  { %4664 = vmatprep.subr.bf16.mxu1 %v7037_v55  ;;  %v7118_v55 = vld [vmem:[#allocation8 + $0x104] ss:$8 sps:$4 sm:$0xff]  }
 0x2b2   :  { %4690 = vmatpush1.bf16.msra.mxu0 %v7038_v14  ;;  %v7119_v14 = vld [vmem:[#allocation8 + $0x1f0] ss:$8 sps:$4 sm:$0xff]  }
 0x2b3   :  { %4665 = vmatpush2.bf16.msra.mxu1 %v7035_v13  ;;  %4691 = vmatprep.subr.bf16.mxu0 %v7046_v16  ;;  %v7080_v13 = vld [vmem:[#allocation8 + $0xc0] ss:$8 sps:$4 sm:$0xff]   ;;  %v7124_v16 = vld [vmem:[#allocation8 + $0x1e4] ss:$8 sps:$4 sm:$0xff]  }
 0x2b4   :  { %4666 = vmatprep.subr.bf16.mxu1 %v7043_v39  ;;  %v7085_v39 = vld [vmem:[#allocation8 + $0xb4] ss:$8 sps:$4 sm:$0xff]  }
 0x2b6   :  { %4692 = vmatpush1.bf16.msra.mxu0 %v7044_v17  ;;  %v7122_v17 = vld [vmem:[#allocation8 + $0x1e0] ss:$8 sps:$4 sm:$0xff]  }
 0x2b7   :  { %4667 = vmatpush2.bf16.msra.mxu1 %v7041_v27  ;;  %5122 = vmatprep.subr.bf16.mxu0 %v7049_v21  ;;  %v7083_v27 = vld [vmem:[#allocation8 + $0xb0] ss:$8 sps:$4 sm:$0xff]   ;;  %v7088_v21 = vld [vmem:[#allocation8 + $0xa4] ss:$8 sps:$4 sm:$0xff]  }
 0x2b8   :  { %5163 = vmatprep.subr.bf16.mxu1 %v7097_v38 }
 0x2b9   :  { %4710 = vmatmul.mubr.bf16.vlgmr.msra.gmra.mxu0 %v7509_v32  ;;  %v7100_v32 = vld [vmem:[#allocation8 + $0x164] ss:$8 sps:$4 sm:$0xff]  }
 0x2ba   :  { %v4424_v26 = vpop.f32.mrf.mxu1  ;;  %4669 = vmatmul.mubr.bf16.vlgmr.msra.gmra.mxu1 %v7488_v20  ;;  %5123 = vmatpush1.bf16.msra.mxu0 %v7047_v34  ;;  %v7095_v20 = vld [vmem:[#allocation8 + $0x170] ss:$8 sps:$4 sm:$0xff]   ;;  %v7086_v34 = vld [vmem:[#allocation8 + $0xa0] ss:$8 sps:$4 sm:$0xff]  }
 0x2bb   :  { %v4425_v60 = vadd.f32 %v4424_v26, %v7568_v31  ;;  %5154 = vmatprep.mubr.bf16.mxu0 %v4723_v25  ;;  %5124 = vmatprep.subr.bf16.mxu0 %v7052_v24  ;;  %v7109_v31 = vld [vmem:[#allocation8 + $0x134] ss:$8 sps:$4 sm:$0xff]   ;;  %v7125_v24 = vld [vmem:[#allocation8 + $0x1d0] ss:$8 sps:$4 sm:$0xff]   ;;  %v7130_v26 = vld [vmem:[#allocation8 + $0x1c4] ss:$8 sps:$4 sm:$0xff]  }
 0x2bc   :  { %v4426_v59 = vpop.f32.mrf.mxu1  ;;  %5164 = vmatpush1.bf16.msra.mxu1 %v7095_v20  ;;  %v7091_v25 = vld [vmem:[#allocation8 + $0x94] ss:$8 sps:$4 sm:$0xff]   ;;  %v7134_v20 = vld [vmem:[#allocation8 + $0x1a0] ss:$8 sps:$4 sm:$0xff]  }
 0x2bd   :  { %v7578_v35 = vadd.f32 %v4426_v59, %v7570_v0  ;;  %5165 = vmatprep.subr.bf16.mxu1 %v7100_v32  ;;  %v7071_v0 = vld [vmem:[#allocation8 + $0xf0] ss:$8 sps:$4 sm:$0xff]   ;;  %v7094_v59 = vld [vmem:[#allocation8 + $0x84] ss:$8 sps:$4 sm:$0xff]  }
 0x2be   :  { %v4428_v33 = vpop.f32.mrf.mxu1  ;;  %5125 = vmatpush1.bf16.msra.mxu0 %v7050_v37  ;;  %v7128_v37 = vld [vmem:[#allocation8 + $0x1c0] ss:$8 sps:$4 sm:$0xff]  }
 0x2bf   :  { %5126 = vmatprep.subr.bf16.mxu0 %v7055_v30  ;;  %v7133_v30 = vld [vmem:[#allocation8 + $0x1b4] ss:$8 sps:$4 sm:$0xff]   ;;  %v7131_v33 = vld [vmem:[#allocation8 + $0x1b0] ss:$8 sps:$4 sm:$0xff]  }
 0x2c0   :  { %v4429_v18 = vpop.f32.mrf.mxu1  ;;  %5166 = vmatpush1.bf16.msra.mxu1 %v7098_v4  ;;  %v7139_v4 = vld [vmem:[#allocation8 + $0x194] ss:$8 sps:$4 sm:$0xff]  }
 0x2c1   :  { %5167 = vmatprep.subr.bf16.mxu1 %v7103_v54  ;;  %v7137_v54 = vld [vmem:[#allocation8 + $0x190] ss:$8 sps:$4 sm:$0xff]  }
 0x2c2   :  { %5127 = vmatpush1.bf16.msra.mxu0 %v7053_v36  ;;  %v4718_v36 = vmax.f32 %v7550_v28, 0.0 }
 0x2c3   :  { %5128 = vmatprep.subr.bf16.mxu0 %v7058_v51  ;;  %v7136_v51 = vld [vmem:[#allocation8 + $0x1a4] ss:$8 sps:$4 sm:$0xff]  }
 0x2c4   :  { %5168 = vmatpush1.bf16.msra.mxu1 %v7101_v49  ;;  %v4722_v18 = vpack.c.bf16 %v4718_v36, %v4718_v36  ;;  %v7142_v49 = vld [vmem:[#allocation8 + $0x184] ss:$8 sps:$4 sm:$0xff]  }
 0x2c5   :  { %5169 = vmatprep.subr.bf16.mxu1 %v7106_v47 }
 0x2c6   :  { %5129 = vmatpush1.bf16.msra.mxu0 %v7056_v1 }
 0x2c7   :  { %5130 = vmatprep.subr.bf16.mxu0 %v7061_v48 }
 0x2c8   :  { %5170 = vmatpush1.bf16.msra.mxu1 %v7104_v43 }
 0x2c9   :  { %5171 = vmatprep.subr.bf16.mxu1 %v7109_v31 }
 0x2ca   :  { %5131 = vmatpush1.bf16.msra.mxu0 %v7059_v41 }
 0x2cb   :  { %5132 = vmatprep.subr.bf16.mxu0 %v7064_v46  ;;  %v7140_v46 = vld [vmem:[#allocation8 + $0x180] ss:$8 sps:$4 sm:$0xff]  }
 0x2cc   :  { %5172 = vmatpush1.bf16.msra.mxu1 %v7107_v58 }
 0x2cd   :  { %5173 = vmatprep.subr.bf16.mxu1 %v7112_v56  ;;  %v7145_v56 = vld [vmem:[#allocation11 + $0x70] sm:$0xff]  }
 0x2ce   :  { %5133 = vmatpush1.bf16.msra.mxu0 %v7062_v44 }
 0x2cf   :  { %5134 = vmatprep.subr.bf16.mxu0 %v7067_v52 }
 0x2d0   :  { %5174 = vmatpush1.bf16.msra.mxu1 %v7110_v2  ;;  %v7146_v2 = vld [vmem:[#allocation11 + $0x30] sm:$0xff]  }
 0x2d1   :  { %5175 = vmatprep.subr.bf16.mxu1 %v7115_v7  ;;  %v7152_v7 = vld [vmem:[#allocation11 + $0x18] sm:$0xff]  }
 0x2d2   :  { %5135 = vmatpush1.bf16.msra.mxu0 %v7065_v53 }
 0x2d3   :  { %5136 = vmatprep.subr.bf16.mxu0 %v7070_v61 }
 0x2d4   :  { %5176 = vmatpush1.bf16.msra.mxu1 %v7113_v50  ;;  %v7154_v50 = vld [vmem:[#allocation11 + $0x10] sm:$0xff]  }
 0x2d5   :  { %5177 = vmatprep.subr.bf16.mxu1 %v7118_v55 }
 0x2d6   :  { %5137 = vmatpush1.bf16.msra.mxu0 %v7068_v57 }
 0x2d7   :  { %5138 = vmatprep.subr.bf16.mxu0 %v7073_v63 }
 0x2d8   :  { %5178 = vmatpush1.bf16.msra.mxu1 %v7116_v11 }
 0x2d9   :  { %v4465_v3 = vpop.f32.mrf.mxu0  ;;  %5179 = vmatprep.subr.bf16.mxu1 %v7121_v12 }
 0x2da   :  { %v7580_v45 = vadd.f32 %v4465_v3, %v4425_v60  ;;  %5139 = vmatpush2.bf16.msra.mxu0 %v7071_v0  ;;  %v7089_v60 = vld [vmem:[#allocation8 + $0x90] ss:$8 sps:$4 sm:$0xff]  }
 0x2db   :  { %v4467_v5 = vpop.f32.mrf.mxu0  ;;  %5140 = vmatprep.subr.bf16.mxu0 %v7076_v62  ;;  %v7143_v0 = vld [vmem:[#allocation11 + $0x78] sm:$0xff]   ;;  %v7147_v3 = vld [vmem:[#allocation11 + $0x68] sm:$0xff]  }
 0x2dc   :  { %v7583_v8 = vadd.f32 %v4467_v5, %v7578_v35  ;;  %5180 = vmatpush2.bf16.msra.mxu1 %v7119_v14  ;;  %v7092_v35 = vld [vmem:[#allocation8 + $0x80] ss:$8 sps:$4 sm:$0xff]  }
 0x2dd   :  { %v4469_v9 = vpop.f32.mrf.mxu0  ;;  %5181 = vmatprep.subr.bf16.mxu1 %v7124_v16  ;;  %v7144_v62 = vld [vmem:[#allocation11 + $0x38] sm:$0xff]   ;;  %v7150_v5 = vld [vmem:[#allocation11 + $0x20] sm:$0xff]  }
 0x2de   :  { %5141 = vmatpush2.bf16.msra.mxu0 %v7074_v23  ;;  %v7149_v23 = vld [vmem:[#allocation11 + $0x60] sm:$0xff]  }
 0x2df   :  { %v4470_v29 = vpop.f32.mrf.mxu0  ;;  %5142 = vmatprep.subr.bf16.mxu0 %v7079_v6  ;;  %v7151_v6 = vld [vmem:[#allocation11 + $0x58] sm:$0xff]  }
 0x2e0   :  { %5182 = vmatpush2.bf16.msra.mxu1 %v7122_v17 }
 0x2e1   :  { %5183 = vmatprep.subr.bf16.mxu1 %v7127_v22 }
 0x2e2   :  { %5143 = vmatpush2.bf16.msra.mxu0 %v7077_v10 }
 0x2e3   :  { %5144 = vmatprep.subr.bf16.mxu0 %v7082_v40 }
 0x2e4   :  { %5184 = vmatpush2.bf16.msra.mxu1 %v7125_v24 }
 0x2e5   :  { %5185 = vmatprep.subr.bf16.mxu1 %v7130_v26 }
 0x2e6   :  { %5145 = vmatpush2.bf16.msra.mxu0 %v7080_v13 }
 0x2e7   :  { %5146 = vmatprep.subr.bf16.mxu0 %v7085_v39 }
 0x2e8   :  { %5186 = vmatpush2.bf16.msra.mxu1 %v7128_v37 }
 0x2e9   :  { %5187 = vmatprep.subr.bf16.mxu1 %v7133_v30 }
 0x2ea   :  { %5147 = vmatpush2.bf16.msra.mxu0 %v7083_v27 }
 0x2eb   :  { %5148 = vmatprep.subr.bf16.mxu0 %v7088_v21 }
 0x2ec   :  { %5188 = vmatpush2.bf16.msra.mxu1 %v7131_v33 }
 0x2ed   :  { %5189 = vmatprep.subr.bf16.mxu1 %v7136_v51 }
 0x2ee   :  { %5149 = vmatpush2.bf16.msra.mxu0 %v7086_v34 }
 0x2ef   :  { %5150 = vmatprep.subr.bf16.mxu0 %v7091_v25 }
 0x2f0   :  { %5190 = vmatpush2.bf16.msra.mxu1 %v7134_v20  ;;  %v7155_v20 = vld [vmem:[#allocation11 + $0x48] sm:$0xff]  }
 0x2f1   :  { %5191 = vmatprep.subr.bf16.mxu1 %v7139_v4  ;;  %v4790_v4 = vld [vmem:[#allocation10] sm:$0x3] }
 0x2f2   :  { %5151 = vmatpush2.bf16.msra.mxu0 %v7089_v60 }
 0x2f3   :  { %5152 = vmatprep.subr.bf16.mxu0 %v7094_v59 }
 0x2f4   :  { %5192 = vmatpush2.bf16.msra.mxu1 %v7137_v54  ;;  %v4799_v54 = vrot.slane %v4790_v4, %v736_v19 }
 0x2f5   :  { %5193 = vmatprep.subr.bf16.mxu1 %v7142_v49 }
 0x2f6   :  { %5153 = vmatpush2.bf16.msra.mxu0 %v7092_v35 }
 0x2f7   :  { %6092 = vmatprep.subr.bf16.mxu0 %v7143_v0 }
 0x2f8   :  { %5194 = vmatpush2.bf16.msra.mxu1 %v7140_v46 }
 0x2f9   :  { %5155 = vmatmul.mubr.bf16.vlgmr.msra.gmra.mxu0 %v4722_v18 }
 0x2fa   :  { %v4506_v38 = vpop.f32.mrf.mxu1  ;;  %6093 = vmatpush3.bf16.msra.mxu0 %v7144_v62 }
 0x2fb   :  { %v4507_v32 = vadd.f32 %v4506_v38, %v7580_v45  ;;  %6094 = vmatprep.subr.bf16.mxu0 %v7145_v56  ;;  %v7148_v45 = vld [vmem:[#allocation11 + $0x28] sm:$0xff]  }
 0x2fc   :  { %v4508_v1 = vpop.f32.mrf.mxu1  ;;  %v7156_v38 = vld [vmem:[#allocation11 + $0x8] sm:$0xff]  }
 0x2fd   :  { %v4509_v48 = vadd.f32 %v4508_v1, %v7583_v8  ;;  %v7153_v8 = vld [vmem:[#allocation11 + $0x50] sm:$0xff]   ;;  %v7158_v1 = vld [vmem:[#allocation11] sm:$0xff]  }
 0x2fe   :  { %v4510_v41 = vpop.f32.mrf.mxu1  ;;  %6095 = vmatpush3.bf16.msra.mxu0 %v7146_v2 }
 0x2ff   :  { %6096 = vmatprep.subr.bf16.mxu0 %v7147_v3 }
 0x300   :  { %v4511_v28 = vpop.f32.mrf.mxu1 }
 0x302   :  { %6097 = vmatpush3.bf16.msra.mxu0 %v7148_v45 }
 0x303   :  { %6098 = vmatprep.subr.bf16.mxu0 %v7149_v23 }
 0x306   :  { %6099 = vmatpush3.bf16.msra.mxu0 %v7150_v5 }
 0x307   :  { %6100 = vmatprep.subr.bf16.mxu0 %v7151_v6 }
 0x30a   :  { %6101 = vmatpush3.bf16.msra.mxu0 %v7152_v7 }
 0x30b   :  { %6102 = vmatprep.subr.bf16.mxu0 %v7153_v8 }
 0x30e   :  { %6103 = vmatpush3.bf16.msra.mxu0 %v7154_v50 }
 0x30f   :  { %6104 = vmatprep.subr.bf16.mxu0 %v7155_v20 }
 0x312   :  { %6105 = vmatpush3.bf16.msra.mxu0 %v7156_v38 }
 0x319   :  { %v4547_v47 = vpop.f32.mrf.mxu0 }
 0x31a   :  { %v4548_v44 = vadd.f32 %v4547_v47, %v4507_v32  ;;  %v7157_v32 = vld [vmem:[#allocation11 + $0x40] sm:$0xff]  }
 0x31b   :  { %v4549_v43 = vpop.f32.mrf.mxu0  ;;  %6106 = vmatprep.subr.bf16.mxu0 %v7157_v32 }
 0x31c   :  { %v4550_v52 = vadd.f32 %v4549_v43, %v4509_v48  ;;  %6107 = vmatpush3.bf16.msra.mxu0 %v7158_v1  ;;  %v4795_v48 = vrot.slane %v4790_v4, %v732_v15 }
 0x31d   :  { %v4551_v31 = vpop.f32.mrf.mxu0 }
 0x31f   :  { %v4552_v53 = vpop.f32.mrf.mxu0 }
 0x33a   :  { %v4588_v58 = vpop.f32.mrf.mxu1 }
 0x33b   :  { %v4589_v11 = vadd.f32 %v4588_v58, %v4548_v44 }
 0x33c   :  { %v4590_v61 = vpop.f32.mrf.mxu1 }
 0x33d   :  { %v4591_v55 = vadd.f32 %v4590_v61, %v4550_v52 }
 0x33e   :  { %v4592_v57 = vpop.f32.mrf.mxu1 }
 0x340   :  { %v4593_v63 = vpop.f32.mrf.mxu1 }
 0x341   :  { %v6075_v63 = vld [vmem:[#allocation13] ss:$0 sm:$0xff] }
 0x359   :  { %v4629_v9 = vpop.f32.mrf.mxu0 }
 0x35a   :  { %v4630_v12 = vadd.f32 %v4629_v9, %v4589_v11 }
 0x35b   :  { %v4631_v10 = vpop.f32.mrf.mxu0 }
 0x35c   :  { %v4632_v39 = vadd.f32 %v4631_v10, %v4591_v55 }
 0x35d   :  { %v4633_v29 = vpop.f32.mrf.mxu0 }
 0x35f   :  { %v4634_v40 = vpop.f32.mrf.mxu0 }
 0x379   :  { %v4711_v14 = vpop.f32.mrf.mxu0 }
 0x37a   :  { %v4670_v13 = vpop.f32.mrf.mxu1 }
 0x37b   :  { %v4671_v16 = vadd.f32 %v4670_v13, %v4630_v12  ;;  %v4713_v17 = vpop.f32.mrf.mxu0 }
 0x37c   :  { %v4672_v27 = vpop.f32.mrf.mxu1 }
 0x37d   :  { %v4712_v21 = vadd.f32 %v4711_v14, %v4671_v16  ;;  %v4673_v22 = vadd.f32 %v4672_v27, %v4632_v39  ;;  %v4715_v24 = vpop.f32.mrf.mxu0 }
 0x37e   :  { %v4674_v34 = vpop.f32.mrf.mxu1 }
 0x37f   :  { %v4714_v25 = vadd.f32 %v4713_v17, %v4673_v22  ;;  %v4720_v26 = vmax.f32 %v4712_v21, 0.0  ;;  %v4716_v37 = vpop.f32.mrf.mxu0 }
 0x380   :  { %v4675_v60 = vpop.f32.mrf.mxu1 }
 0x381   :  { %v4721_v59 = vmax.f32 %v4714_v25, 0.0  ;;  %v4724_v35 = vpack.c.bf16 %v4720_v26, %v4720_v26 }
 0x383   :  { %v4725_v30 = vpack.c.bf16 %v4721_v59, %v4721_v59 }
 0x385   :  { %5195 = vmatprep.mubr.bf16.mxu1 %v4725_v30 }
 0x386   :  { %5196 = vmatmul.mubr.bf16.vlgmr.msra.gmra.mxu1 %v4724_v35 }
 0x3b9   :  { %v5156_v33 = vpop.f32.mrf.mxu0 }
 0x3ba   :  { %v5157_v41 = vadd.f32 %v5156_v33, %v4795_v48 }
 0x3bb   :  { %v5158_v36 = vpop.f32.mrf.mxu0 }
 0x3bc   :  { %v5159_v49 = vadd.f32 %v5158_v36, %v4799_v54 }
 0x3bd   :  { %v5160_v18 = vpop.f32.mrf.mxu0 }
 0x3bf   :  { %v5161_v51 = vpop.f32.mrf.mxu0 }
 0x446   :  { %v5197_v28 = vpop.f32.mrf.mxu1 }
 0x447   :  { %v5198_v46 = vadd.f32 %v5197_v28, %v5157_v41 }
 0x448   :  { %v5199_v47 = vpop.f32.mrf.mxu1 }
 0x449   :  { %v5200_v44 = vadd.f32 %v5199_v47, %v5159_v49  ;;  %v5204_v43 = vmax.f32 %v5198_v46, 0.0 }
 0x44a   :  { %v5201_v52 = vpop.f32.mrf.mxu1 }
 0x44b   :  { %v5205_v31 = vmax.f32 %v5200_v44, 0.0  ;;  %v5206_v61 = vpack.c.bf16 %v5204_v43, %v5204_v43 }
 0x44c   :  { %v5202_v53 = vpop.f32.mrf.mxu1 }
 0x44d   :  { %v5207_v58 = vpack.c.bf16 %v5205_v31, %v5205_v31 }
 0x44f   :  { %5375 = vmatprep.mubr.bf16.mxu0 %v5207_v58 }
 0x450   :  { %5376 = vmatmul.mubr.bf16.vlgmr.msra.gmra.mxu0 %v5206_v61 }
 0x510   :  { %v6108_v57 = vpop.f32.mrf.mxu0 }
 0x512   :  { %v6109_v15 = vpop.f32.mrf.mxu0 }
 0x513   :  { %v6110_v0 = vadd.f32 %v6109_v15, %v6108_v57 }
 0x514   :  { %v6111_v42 = vpop.f32.mrf.mxu0 }
 0x515   :  { %v5378_v19 = vadd.f32 %v6110_v0, %v6075_v63 }
 0x516   :  { %v6112_v62 = vpop.f32.mrf.mxu0 }
 0x517   :  { %v5383_v56 = vmax.f32 %v5378_v19, 0.0 }
 0x519   :  { %5384 = vst [vmem:[#allocation14] sm:$0xf] %v5383_v56 }
 0x51a   :  { %7311 = shalt.err (!%p7308_p11)
}
 0x51b   :  { %5394 = dma.vmem_to_hbm [thread:$0]  %s5392_s6, 64, %s7602_s7, [#allocation4]  }
 0x51c   :  { %7328 = dma.done.wait [#allocation4], 64  }
 0x51d   :  { %7329 = vsyncadd [#allocation4], 4294967232 }
 0x51e   :  { %5398 = vsyncpa [#allocation3], 1 }
 0x51f   :  { %5399 = vsyncpa [#allocation6], 1 }
 0x520   :  { %5400 = vsyncpa [#allocation9], 1 }
 0x521   :  { %5401 = vsyncpa [#allocation12], 1 }
 0x522   :  { %5402 = vsyncpa [#allocation4], 1 }

</bundles_post_ra>
